<compile_context>
chip_gen: v7x
topology: tpu7x:2x2x1
jax: 0.10.0
libtpu: 0.0.40
codegen_flags: <defaults>
</compile_context>

<pallas_src>
import functools

import numpy as np
import jax
import jax.numpy as jnp
from jax.experimental import pallas as pl
from jax.experimental.pallas import tpu as pltpu

TN = 32            # images per grid step (must be a multiple of 8)
RPI = 7            # physical rows per image (4 image rows per physical row)
C1 = 6             # conv1 out channels
C2 = 16            # conv2 out channels


# ----------------------------- fused Pallas kernel -----------------------------

def _fused_cnn_kernel(x_ref, w1_ref, w2_ref, f1_ref, f2_ref, f3_ref, b_ref,
                      o_ref, p1_ref, p2_ref, *, tn):
    rows = tn * RPI
    bf16 = jnp.bfloat16
    dot = functools.partial(jnp.dot, preferred_element_type=jnp.float32)

    # ---------------- conv1 (5x5, 1->6) + bias + ReLU + 2x2 maxpool ----------------
    # One dot: K=224 (this physical row's 4 image rows + the next row's 4, baked
    # into the input by the wrapper), N=1024 = 8 blocks of 128 lanes:
    # block (t, x-parity), t = y-offset 0..3, 12*6 = 72 valid lanes per block.
    a1 = dot(x_ref[...], w1_ref[...])                               # (rows, 1024) f32
    m_ev = jnp.maximum(jnp.maximum(a1[:, 0:128], a1[:, 128:256]),
                       jnp.maximum(a1[:, 256:384], a1[:, 384:512]))  # pooled row j=2m
    m_od = jnp.maximum(jnp.maximum(a1[:, 512:640], a1[:, 640:768]),
                       jnp.maximum(a1[:, 768:896], a1[:, 896:1024]))  # pooled row j=2m+1
    b1 = b_ref[0:1, :]
    # relu(max(.) + b) == maxpool(relu(. + b)) since bias is constant per window.
    p1_ref[0:rows, 0:128] = jnp.maximum(m_ev + b1, 0.0)
    p1_ref[0:rows, 128:256] = jnp.maximum(m_od + b1, 0.0)
    p1_ref[rows:rows + 16, :] = jnp.zeros((16, 256), jnp.float32)    # pad rows for shifted reads

    # ---------------- conv2 (5x5, 6->16) + bias + ReLU + 2x2 maxpool ----------------
    # 3 row-shifted dots, K=256 (two pooled rows per physical row), N=512 =
    # 4 blocks of 128 lanes: block (y2-parity, x2-parity), 4*16 = 64 valid lanes.
    a2 = dot(p1_ref[0:rows, :].astype(bf16), w2_ref[0])
    a2 = a2 + dot(p1_ref[1:rows + 1, :].astype(bf16), w2_ref[1])
    a2 = a2 + dot(p1_ref[2:rows + 2, :].astype(bf16), w2_ref[2])
    m2 = jnp.maximum(jnp.maximum(a2[:, 0:128], a2[:, 128:256]),
                     jnp.maximum(a2[:, 256:384], a2[:, 384:512]))
    p2_ref[0:rows, :] = jnp.maximum(m2 + b_ref[1:2, :], 0.0)
    p2_ref[rows:rows + 16, :] = jnp.zeros((16, 128), jnp.float32)

    # ---------------- classifier: fc1+ReLU, fc2+ReLU, fc3 ----------------
    # fc1 gathers the 4 pooled rows of each image with 4 row-shifted dots
    # (torch's NCHW flatten order is folded into the f1 slabs).
    g = dot(p2_ref[0:rows, :].astype(bf16), f1_ref[0])
    g = g + dot(p2_ref[1:rows + 1, :].astype(bf16), f1_ref[1])
    g = g + dot(p2_ref[2:rows + 2, :].astype(bf16), f1_ref[2])
    g = g + dot(p2_ref[3:rows + 3, :].astype(bf16), f1_ref[3])
    h1 = jnp.maximum(g + b_ref[2:3, :], 0.0)                         # valid at rows n*7
    h2 = jnp.maximum(dot(h1.astype(bf16), f2_ref[...]) + b_ref[3:4, :], 0.0)
    o_ref[...] = dot(h2.astype(bf16), f3_ref[...]) + b_ref[4:5, :]   # lane-dense (rows,128)


# ----------------------------- parameter handling -----------------------------

def init_params(key):
    """Parameters in the same layout as the torch module (weights are (out, in))."""
    ks = jax.random.split(key, 10)
    s = 0.05
    return {
        "conv1_w": s * jax.random.normal(ks[0], (6, 1, 5, 5), jnp.float32),
        "conv1_b": s * jax.random.normal(ks[1], (6,), jnp.float32),
        "conv2_w": s * jax.random.normal(ks[2], (16, 6, 5, 5), jnp.float32),
        "conv2_b": s * jax.random.normal(ks[3], (16,), jnp.float32),
        "fc1_w": s * jax.random.normal(ks[4], (128, 256), jnp.float32),
        "fc1_b": s * jax.random.normal(ks[5], (128,), jnp.float32),
        "fc2_w": s * jax.random.normal(ks[6], (90, 128), jnp.float32),
        "fc2_b": s * jax.random.normal(ks[7], (90,), jnp.float32),
        "fc3_w": s * jax.random.normal(ks[8], (10, 90), jnp.float32),
        "fc3_b": s * jax.random.normal(ks[9], (10,), jnp.float32),
    }


def prepare_operands(params):
    """One-time (outside jit) repack of torch-layout weights into the lane-space
    bf16 matrices consumed by the fused kernel."""
    w1 = np.asarray(params["conv1_w"], np.float32)   # (6,1,5,5)
    b1 = np.asarray(params["conv1_b"], np.float32)
    w2 = np.asarray(params["conv2_w"], np.float32)   # (16,6,5,5)
    b2 = np.asarray(params["conv2_b"], np.float32)
    fc1_w = np.asarray(params["fc1_w"], np.float32)  # (128,256)
    fc1_b = np.asarray(params["fc1_b"], np.float32)
    fc2_w = np.asarray(params["fc2_w"], np.float32)  # (90,128)
    fc2_b = np.asarray(params["fc2_b"], np.float32)
    fc3_w = np.asarray(params["fc3_w"], np.float32)  # (10,90)
    fc3_b = np.asarray(params["fc3_b"], np.float32)

    # conv1: input lane = t*28 + x (t = y mod 4), shift s selects this/next
    # physical row; output lane = (t_out*2 + x_par)*128 + u*6 + co.
    w1s = np.zeros((2, 112, 1024), np.float32)
    for t in range(4):
        for p in range(2):
            blk = (t * 2 + p) * 128
            for u in range(12):
                for co in range(C1):
                    col = blk + u * C1 + co
                    for ky in range(5):
                        s, tt = divmod(t + ky, 4)
                        for kx in range(5):
                            w1s[s, tt * 28 + 2 * u + p + kx, col] += w1[co, 0, ky, kx]
    w1cat = np.concatenate([w1s[0], w1s[1]], axis=0)                 # (224, 1024)

    # conv2: p1 lane = jj*128 + xx*6 + ci (jj = pooled-row parity within the
    # physical row); output lane = (y2_par*2 + x2_par)*128 + u2*16 + co.
    w2s = np.zeros((3, 256, 512), np.float32)
    for q in range(2):
        for p in range(2):
            blk = (q * 2 + p) * 128
            for u in range(4):
                for co in range(C2):
                    col = blk + u * C2 + co
                    for ky in range(5):
                        s, jj = divmod(q + ky, 2)
                        for kx in range(5):
                            row0 = jj * 128 + (2 * u + p + kx) * C1
                            for ci in range(C1):
                                w2s[s, row0 + ci, col] += w2[co, ci, ky, kx]

    # fc1: slab h maps p2's lane order (w*16 + c) to torch's flatten order
    # (c*16 + h*4 + w).
    f1w = np.zeros((4, 128, 128), np.float32)
    for h in range(4):
        for w in range(4):
            for c in range(C2):
                f1w[h, w * C2 + c, :] = fc1_w[:, c * 16 + h * 4 + w]

    # fc2 / fc3: zero-pad features to 128 so every store is lane-dense.
    f2w = np.zeros((128, 128), np.float32)
    f2w[:, :90] = fc2_w.T
    f3w = np.zeros((128, 128), np.float32)
    f3w[:90, :10] = fc3_w.T

    # One coalesced bias bundle: rows 0..4 = conv1, conv2, fc1, fc2, fc3.
    biases = np.zeros((8, 128), np.float32)
    biases[0, :12 * C1] = np.tile(b1, 12)
    biases[1, :4 * C2] = np.tile(b2, 4)
    biases[2, :128] = fc1_b
    biases[3, :90] = fc2_b
    biases[4, :10] = fc3_b

    bf = jnp.bfloat16
    return (jnp.asarray(w1cat, bf), jnp.asarray(w2s, bf), jnp.asarray(f1w, bf),
            jnp.asarray(f2w, bf), jnp.asarray(f3w, bf),
            jnp.asarray(biases, jnp.float32))


# --------------------------------- forward ---------------------------------

def nn_conv_fashion_mnist_forward(x, operands, tn=TN):
    """x: (N, 1, 28, 28) f32 NCHW -> (N, 10) logits, one fused Pallas kernel."""
    assert tn % 8 == 0
    n = x.shape[0]
    n_pad = ((n + tn - 1) // tn) * tn
    xs = x.reshape(n, 28, 28).astype(jnp.float32)
    if n_pad != n:
        xs = jnp.pad(xs, ((0, n_pad - n), (0, 0), (0, 0)))
    # Row r = n*7 + m holds image rows 4m..4m+3 (pure reshape); lanes 112..223
    # hold the NEXT physical row, baking the conv1 row-shift into K.
    x7 = xs.reshape(n_pad * RPI, 4 * 28)
    xcat = jnp.concatenate([x7, jnp.roll(x7, -1, axis=0)], axis=1).astype(jnp.bfloat16)

    (w1cat, w2s, f1w, f2w, f3w, biases) = operands
    nb = n_pad // tn
    rows = tn * RPI

    def whole(arr):
        nd = arr.ndim
        def imap(i):
            return (0,) * nd
        return pl.BlockSpec(arr.shape, imap)

    in_specs = [
        pl.BlockSpec((rows, 224), lambda i: (i, 0)),     # xcat: tiled over batch
        whole(w1cat), whole(w2s), whole(f1w), whole(f2w), whole(f3w), whole(biases),
    ]

    flops_per_step = 2 * rows * (224 * 1024 + 3 * 256 * 512 + 6 * 128 * 128)
    bytes_w = sum(int(a.size) * a.dtype.itemsize for a in operands)
    cost = pl.CostEstimate(
        flops=int(flops_per_step) * nb,
        transcendentals=0,
        bytes_accessed=int(xcat.size) * 2 + int(n_pad * RPI * 128) * 4 + int(bytes_w),
    )

    out = pl.pallas_call(
        functools.partial(_fused_cnn_kernel, tn=tn),
        out_shape=jax.ShapeDtypeStruct((n_pad * RPI, 128), jnp.float32),
        grid=(nb,),
        in_specs=in_specs,
        out_specs=pl.BlockSpec((rows, 128), lambda i: (i, 0)),
        scratch_shapes=[
            pltpu.VMEM((rows + 16, 256), jnp.float32),   # p1 (post pool1), +pad rows
            pltpu.VMEM((rows + 16, 128), jnp.float32),   # p2 (post pool2), +pad rows
        ],
        compiler_params=pltpu.CompilerParams(
            dimension_semantics=("parallel",),           # v7x: shard steps over 2 TCs
            vmem_limit_bytes=32 * 1024 * 1024,           # safe on v5e/v6e/v7x
        ),
        cost_estimate=cost,
    )(xcat, w1cat, w2s, f1w, f2w, f3w, biases)

    # Row 0 of each image's 7-row group holds the logits; lanes 10..127 are pad.
    return out.reshape(n_pad, RPI, 128)[:n, 0, :10]


if __name__ == "__main__":
    key = jax.random.PRNGKey(0)
    k_x, k_p = jax.random.split(key)
    params = init_params(k_p)
    operands = prepare_operands(params)      # one-time weight repack (outside jit)

    x = jax.random.normal(k_x, (2, 1, 28, 28), dtype=jnp.float32)

    fwd = jax.jit(functools.partial(nn_conv_fashion_mnist_forward, tn=TN))
    out = jax.block_until_ready(fwd(x, operands))

    assert out.shape == (2, 10), out.shape
    assert out.dtype == jnp.float32
    assert bool(jnp.all(jnp.isfinite(out)))
    print("KERNEL_OK")
</pallas_src>

<mosaic_0001>
module attributes {stable_mosaic.version = 11 : i64} {
  func.func @_fused_cnn_kernel(%arg0: i32, %arg1: memref<224x224xbf16, #tpu.memory_space<vmem>>, %arg2: memref<224x1024xbf16, #tpu.memory_space<vmem>>, %arg3: memref<3x256x512xbf16, #tpu.memory_space<vmem>>, %arg4: memref<4x128x128xbf16, #tpu.memory_space<vmem>>, %arg5: memref<128x128xbf16, #tpu.memory_space<vmem>>, %arg6: memref<128x128xbf16, #tpu.memory_space<vmem>>, %arg7: memref<8x128xf32, #tpu.memory_space<vmem>>, %arg8: memref<224x128xf32, #tpu.memory_space<vmem>>, %arg9: memref<240x256xf32, #tpu.memory_space<vmem>>, %arg10: memref<240x128xf32, #tpu.memory_space<vmem>>) attributes {dimension_semantics = [#tpu.dimension_semantics<parallel>], iteration_bounds = array<i64: 1>, scalar_prefetch = 0 : i64, scratch_operands = 2 : i64, tpu.core_type = #tpu.core_type<tc>, window_params = [{transform_indices = @transform_0, window_bounds = array<i64: 224, 224>}, {pipeline_mode = #tpu.pipeline_mode<synchronous>, transform_indices = @transform_1, window_bounds = array<i64: 224, 1024>}, {pipeline_mode = #tpu.pipeline_mode<synchronous>, transform_indices = @transform_2, window_bounds = array<i64: 3, 256, 512>}, {pipeline_mode = #tpu.pipeline_mode<synchronous>, transform_indices = @transform_3, window_bounds = array<i64: 4, 128, 128>}, {pipeline_mode = #tpu.pipeline_mode<synchronous>, transform_indices = @transform_4, window_bounds = array<i64: 128, 128>}, {pipeline_mode = #tpu.pipeline_mode<synchronous>, transform_indices = @transform_5, window_bounds = array<i64: 128, 128>}, {pipeline_mode = #tpu.pipeline_mode<synchronous>, transform_indices = @transform_6, window_bounds = array<i64: 8, 128>}, {transform_indices = @transform_7, window_bounds = array<i64: 224, 128>}]} {
    %c0 = arith.constant 0 : index
    %c0_0 = arith.constant 0 : index
    %0 = vector.load %arg1[%c0, %c0_0] : memref<224x224xbf16, #tpu.memory_space<vmem>>, vector<224x224xbf16>
    %c0_1 = arith.constant 0 : index
    %c0_2 = arith.constant 0 : index
    %1 = vector.load %arg2[%c0_1, %c0_2] : memref<224x1024xbf16, #tpu.memory_space<vmem>>, vector<224x1024xbf16>
    %cst = arith.constant dense<0.000000e+00> : vector<224x1024xf32>
    %2 = tpu.matmul %0, %1, %cst {dimension_numbers = #tpu.dot_dimension_numbers<[1], [0], [0], [1], [0, 0, 1, 1], [], []>} : vector<224x224xbf16>, vector<224x1024xbf16>, vector<224x1024xf32> -> vector<224x1024xf32>
    %3 = vector.extract_strided_slice %2 {offsets = [0, 0], sizes = [224, 128], strides = [1, 1]} : vector<224x1024xf32> to vector<224x128xf32>
    %4 = vector.extract_strided_slice %2 {offsets = [0, 128], sizes = [224, 128], strides = [1, 1]} : vector<224x1024xf32> to vector<224x128xf32>
    %5 = arith.maximumf %3, %4 : vector<224x128xf32>
    %6 = vector.extract_strided_slice %2 {offsets = [0, 256], sizes = [224, 128], strides = [1, 1]} : vector<224x1024xf32> to vector<224x128xf32>
    %7 = vector.extract_strided_slice %2 {offsets = [0, 384], sizes = [224, 128], strides = [1, 1]} : vector<224x1024xf32> to vector<224x128xf32>
    %8 = arith.maximumf %6, %7 : vector<224x128xf32>
    %9 = arith.maximumf %5, %8 : vector<224x128xf32>
    %10 = vector.extract_strided_slice %2 {offsets = [0, 512], sizes = [224, 128], strides = [1, 1]} : vector<224x1024xf32> to vector<224x128xf32>
    %11 = vector.extract_strided_slice %2 {offsets = [0, 640], sizes = [224, 128], strides = [1, 1]} : vector<224x1024xf32> to vector<224x128xf32>
    %12 = arith.maximumf %10, %11 : vector<224x128xf32>
    %13 = vector.extract_strided_slice %2 {offsets = [0, 768], sizes = [224, 128], strides = [1, 1]} : vector<224x1024xf32> to vector<224x128xf32>
    %14 = vector.extract_strided_slice %2 {offsets = [0, 896], sizes = [224, 128], strides = [1, 1]} : vector<224x1024xf32> to vector<224x128xf32>
    %15 = arith.maximumf %13, %14 : vector<224x128xf32>
    %16 = arith.maximumf %12, %15 : vector<224x128xf32>
    %c0_3 = arith.constant 0 : index
    %c0_4 = arith.constant 0 : index
    %17 = vector.load %arg7[%c0_3, %c0_4] : memref<8x128xf32, #tpu.memory_space<vmem>>, vector<1x128xf32>
    %18 = vector.broadcast %17 : vector<1x128xf32> to vector<224x128xf32>
    %19 = arith.addf %9, %18 : vector<224x128xf32>
    %cst_5 = arith.constant 0.000000e+00 : f32
    %20 = vector.broadcast %cst_5 : f32 to vector<224x128xf32>
    %21 = arith.maximumf %19, %20 : vector<224x128xf32>
    %c0_6 = arith.constant 0 : index
    %c0_7 = arith.constant 0 : index
    %22 = vector.load %arg9[%c0_6, %c0_7] : memref<240x256xf32, #tpu.memory_space<vmem>>, vector<224x128xf32>
    tpu.vector_store %arg9[%c0_6, %c0_7], %21 {strides = array<i32>} : memref<240x256xf32, #tpu.memory_space<vmem>>, vector<224x128xf32>,
    %23 = vector.broadcast %17 : vector<1x128xf32> to vector<224x128xf32>
    %24 = arith.addf %16, %23 : vector<224x128xf32>
    %cst_8 = arith.constant 0.000000e+00 : f32
    %25 = vector.broadcast %cst_8 : f32 to vector<224x128xf32>
    %26 = arith.maximumf %24, %25 : vector<224x128xf32>
    %c0_9 = arith.constant 0 : index
    %c128 = arith.constant 128 : index
    %27 = vector.load %arg9[%c0_9, %c128] : memref<240x256xf32, #tpu.memory_space<vmem>>, vector<224x128xf32>
    tpu.vector_store %arg9[%c0_9, %c128], %26 {strides = array<i32>} : memref<240x256xf32, #tpu.memory_space<vmem>>, vector<224x128xf32>,
    %cst_10 = arith.constant 0.000000e+00 : f32
    %28 = vector.broadcast %cst_10 : f32 to vector<16x256xf32>
    %c224 = arith.constant 224 : index
    %c0_11 = arith.constant 0 : index
    %29 = vector.load %arg9[%c224, %c0_11] : memref<240x256xf32, #tpu.memory_space<vmem>>, vector<16x256xf32>
    tpu.vector_store %arg9[%c224, %c0_11], %28 {strides = array<i32>} : memref<240x256xf32, #tpu.memory_space<vmem>>, vector<16x256xf32>,
    %c0_12 = arith.constant 0 : index
    %c0_13 = arith.constant 0 : index
    %30 = vector.load %arg9[%c0_12, %c0_13] : memref<240x256xf32, #tpu.memory_space<vmem>>, vector<224x256xf32>
    %31 = arith.truncf %30 : vector<224x256xf32> to vector<224x256xbf16>
    %c0_14 = arith.constant 0 : index
    %c0_15 = arith.constant 0 : index
    %c0_16 = arith.constant 0 : index
    %32 = vector.load %arg3[%c0_14, %c0_15, %c0_16] : memref<3x256x512xbf16, #tpu.memory_space<vmem>>, vector<1x256x512xbf16>
    %33 = vector.shape_cast %32 : vector<1x256x512xbf16> to vector<256x512xbf16>
    %cst_17 = arith.constant dense<0.000000e+00> : vector<224x512xf32>
    %34 = tpu.matmul %31, %33, %cst_17 {dimension_numbers = #tpu.dot_dimension_numbers<[1], [0], [0], [1], [0, 0, 1, 1], [], []>} : vector<224x256xbf16>, vector<256x512xbf16>, vector<224x512xf32> -> vector<224x512xf32>
    %c1 = arith.constant 1 : index
    %c0_18 = arith.constant 0 : index
    %35 = vector.load %arg9[%c1, %c0_18] : memref<240x256xf32, #tpu.memory_space<vmem>>, vector<224x256xf32>
    %36 = arith.truncf %35 : vector<224x256xf32> to vector<224x256xbf16>
    %c1_19 = arith.constant 1 : index
    %c0_20 = arith.constant 0 : index
    %c0_21 = arith.constant 0 : index
    %37 = vector.load %arg3[%c1_19, %c0_20, %c0_21] : memref<3x256x512xbf16, #tpu.memory_space<vmem>>, vector<1x256x512xbf16>
    %38 = vector.shape_cast %37 : vector<1x256x512xbf16> to vector<256x512xbf16>
    %cst_22 = arith.constant dense<0.000000e+00> : vector<224x512xf32>
    %39 = tpu.matmul %36, %38, %cst_22 {dimension_numbers = #tpu.dot_dimension_numbers<[1], [0], [0], [1], [0, 0, 1, 1], [], []>} : vector<224x256xbf16>, vector<256x512xbf16>, vector<224x512xf32> -> vector<224x512xf32>
    %40 = arith.addf %34, %39 : vector<224x512xf32>
    %c2 = arith.constant 2 : index
    %c0_23 = arith.constant 0 : index
    %41 = vector.load %arg9[%c2, %c0_23] : memref<240x256xf32, #tpu.memory_space<vmem>>, vector<224x256xf32>
    %42 = arith.truncf %41 : vector<224x256xf32> to vector<224x256xbf16>
    %c2_24 = arith.constant 2 : index
    %c0_25 = arith.constant 0 : index
    %c0_26 = arith.constant 0 : index
    %43 = vector.load %arg3[%c2_24, %c0_25, %c0_26] : memref<3x256x512xbf16, #tpu.memory_space<vmem>>, vector<1x256x512xbf16>
    %44 = vector.shape_cast %43 : vector<1x256x512xbf16> to vector<256x512xbf16>
    %cst_27 = arith.constant dense<0.000000e+00> : vector<224x512xf32>
    %45 = tpu.matmul %42, %44, %cst_27 {dimension_numbers = #tpu.dot_dimension_numbers<[1], [0], [0], [1], [0, 0, 1, 1], [], []>} : vector<224x256xbf16>, vector<256x512xbf16>, vector<224x512xf32> -> vector<224x512xf32>
    %46 = arith.addf %40, %45 : vector<224x512xf32>
    %47 = vector.extract_strided_slice %46 {offsets = [0, 0], sizes = [224, 128], strides = [1, 1]} : vector<224x512xf32> to vector<224x128xf32>
    %48 = vector.extract_strided_slice %46 {offsets = [0, 128], sizes = [224, 128], strides = [1, 1]} : vector<224x512xf32> to vector<224x128xf32>
    %49 = arith.maximumf %47, %48 : vector<224x128xf32>
    %50 = vector.extract_strided_slice %46 {offsets = [0, 256], sizes = [224, 128], strides = [1, 1]} : vector<224x512xf32> to vector<224x128xf32>
    %51 = vector.extract_strided_slice %46 {offsets = [0, 384], sizes = [224, 128], strides = [1, 1]} : vector<224x512xf32> to vector<224x128xf32>
    %52 = arith.maximumf %50, %51 : vector<224x128xf32>
    %53 = arith.maximumf %49, %52 : vector<224x128xf32>
    %c1_28 = arith.constant 1 : index
    %c0_29 = arith.constant 0 : index
    %54 = vector.load %arg7[%c1_28, %c0_29] : memref<8x128xf32, #tpu.memory_space<vmem>>, vector<1x128xf32>
    %55 = vector.broadcast %54 : vector<1x128xf32> to vector<224x128xf32>
    %56 = arith.addf %53, %55 : vector<224x128xf32>
    %cst_30 = arith.constant 0.000000e+00 : f32
    %57 = vector.broadcast %cst_30 : f32 to vector<224x128xf32>
    %58 = arith.maximumf %56, %57 : vector<224x128xf32>
    %c0_31 = arith.constant 0 : index
    %c0_32 = arith.constant 0 : index
    %59 = vector.load %arg10[%c0_31, %c0_32] : memref<240x128xf32, #tpu.memory_space<vmem>>, vector<224x128xf32>
    tpu.vector_store %arg10[%c0_31, %c0_32], %58 {strides = array<i32>} : memref<240x128xf32, #tpu.memory_space<vmem>>, vector<224x128xf32>,
    %cst_33 = arith.constant 0.000000e+00 : f32
    %60 = vector.broadcast %cst_33 : f32 to vector<16x128xf32>
    %c224_34 = arith.constant 224 : index
    %c0_35 = arith.constant 0 : index
    %61 = vector.load %arg10[%c224_34, %c0_35] : memref<240x128xf32, #tpu.memory_space<vmem>>, vector<16x128xf32>
    tpu.vector_store %arg10[%c224_34, %c0_35], %60 {strides = array<i32>} : memref<240x128xf32, #tpu.memory_space<vmem>>, vector<16x128xf32>,
    %c0_36 = arith.constant 0 : index
    %c0_37 = arith.constant 0 : index
    %62 = vector.load %arg10[%c0_36, %c0_37] : memref<240x128xf32, #tpu.memory_space<vmem>>, vector<224x128xf32>
    %63 = arith.truncf %62 : vector<224x128xf32> to vector<224x128xbf16>
    %c0_38 = arith.constant 0 : index
    %c0_39 = arith.constant 0 : index
    %c0_40 = arith.constant 0 : index
    %64 = vector.load %arg4[%c0_38, %c0_39, %c0_40] : memref<4x128x128xbf16, #tpu.memory_space<vmem>>, vector<1x128x128xbf16>
    %65 = vector.shape_cast %64 : vector<1x128x128xbf16> to vector<128x128xbf16>
    %cst_41 = arith.constant dense<0.000000e+00> : vector<224x128xf32>
    %66 = tpu.matmul %63, %65, %cst_41 {dimension_numbers = #tpu.dot_dimension_numbers<[1], [0], [0], [1], [0, 0, 1, 1], [], []>} : vector<224x128xbf16>, vector<128x128xbf16>, vector<224x128xf32> -> vector<224x128xf32>
    %c1_42 = arith.constant 1 : index
    %c0_43 = arith.constant 0 : index
    %67 = vector.load %arg10[%c1_42, %c0_43] : memref<240x128xf32, #tpu.memory_space<vmem>>, vector<224x128xf32>
    %68 = arith.truncf %67 : vector<224x128xf32> to vector<224x128xbf16>
    %c1_44 = arith.constant 1 : index
    %c0_45 = arith.constant 0 : index
    %c0_46 = arith.constant 0 : index
    %69 = vector.load %arg4[%c1_44, %c0_45, %c0_46] : memref<4x128x128xbf16, #tpu.memory_space<vmem>>, vector<1x128x128xbf16>
    %70 = vector.shape_cast %69 : vector<1x128x128xbf16> to vector<128x128xbf16>
    %cst_47 = arith.constant dense<0.000000e+00> : vector<224x128xf32>
    %71 = tpu.matmul %68, %70, %cst_47 {dimension_numbers = #tpu.dot_dimension_numbers<[1], [0], [0], [1], [0, 0, 1, 1], [], []>} : vector<224x128xbf16>, vector<128x128xbf16>, vector<224x128xf32> -> vector<224x128xf32>
    %72 = arith.addf %66, %71 : vector<224x128xf32>
    %c2_48 = arith.constant 2 : index
    %c0_49 = arith.constant 0 : index
    %73 = vector.load %arg10[%c2_48, %c0_49] : memref<240x128xf32, #tpu.memory_space<vmem>>, vector<224x128xf32>
    %74 = arith.truncf %73 : vector<224x128xf32> to vector<224x128xbf16>
    %c2_50 = arith.constant 2 : index
    %c0_51 = arith.constant 0 : index
    %c0_52 = arith.constant 0 : index
    %75 = vector.load %arg4[%c2_50, %c0_51, %c0_52] : memref<4x128x128xbf16, #tpu.memory_space<vmem>>, vector<1x128x128xbf16>
    %76 = vector.shape_cast %75 : vector<1x128x128xbf16> to vector<128x128xbf16>
    %cst_53 = arith.constant dense<0.000000e+00> : vector<224x128xf32>
    %77 = tpu.matmul %74, %76, %cst_53 {dimension_numbers = #tpu.dot_dimension_numbers<[1], [0], [0], [1], [0, 0, 1, 1], [], []>} : vector<224x128xbf16>, vector<128x128xbf16>, vector<224x128xf32> -> vector<224x128xf32>
    %78 = arith.addf %72, %77 : vector<224x128xf32>
    %c3 = arith.constant 3 : index
    %c0_54 = arith.constant 0 : index
    %79 = vector.load %arg10[%c3, %c0_54] : memref<240x128xf32, #tpu.memory_space<vmem>>, vector<224x128xf32>
    %80 = arith.truncf %79 : vector<224x128xf32> to vector<224x128xbf16>
    %c3_55 = arith.constant 3 : index
    %c0_56 = arith.constant 0 : index
    %c0_57 = arith.constant 0 : index
    %81 = vector.load %arg4[%c3_55, %c0_56, %c0_57] : memref<4x128x128xbf16, #tpu.memory_space<vmem>>, vector<1x128x128xbf16>
    %82 = vector.shape_cast %81 : vector<1x128x128xbf16> to vector<128x128xbf16>
    %cst_58 = arith.constant dense<0.000000e+00> : vector<224x128xf32>
    %83 = tpu.matmul %80, %82, %cst_58 {dimension_numbers = #tpu.dot_dimension_numbers<[1], [0], [0], [1], [0, 0, 1, 1], [], []>} : vector<224x128xbf16>, vector<128x128xbf16>, vector<224x128xf32> -> vector<224x128xf32>
    %84 = arith.addf %78, %83 : vector<224x128xf32>
    %c2_59 = arith.constant 2 : index
    %c0_60 = arith.constant 0 : index
    %85 = vector.load %arg7[%c2_59, %c0_60] : memref<8x128xf32, #tpu.memory_space<vmem>>, vector<1x128xf32>
    %86 = vector.broadcast %85 : vector<1x128xf32> to vector<224x128xf32>
    %87 = arith.addf %84, %86 : vector<224x128xf32>
    %cst_61 = arith.constant 0.000000e+00 : f32
    %88 = vector.broadcast %cst_61 : f32 to vector<224x128xf32>
    %89 = arith.maximumf %87, %88 : vector<224x128xf32>
    %90 = arith.truncf %89 : vector<224x128xf32> to vector<224x128xbf16>
    %c0_62 = arith.constant 0 : index
    %c0_63 = arith.constant 0 : index
    %91 = vector.load %arg5[%c0_62, %c0_63] : memref<128x128xbf16, #tpu.memory_space<vmem>>, vector<128x128xbf16>
    %cst_64 = arith.constant dense<0.000000e+00> : vector<224x128xf32>
    %92 = tpu.matmul %90, %91, %cst_64 {dimension_numbers = #tpu.dot_dimension_numbers<[1], [0], [0], [1], [0, 0, 1, 1], [], []>} : vector<224x128xbf16>, vector<128x128xbf16>, vector<224x128xf32> -> vector<224x128xf32>
    %c3_65 = arith.constant 3 : index
    %c0_66 = arith.constant 0 : index
    %93 = vector.load %arg7[%c3_65, %c0_66] : memref<8x128xf32, #tpu.memory_space<vmem>>, vector<1x128xf32>
    %94 = vector.broadcast %93 : vector<1x128xf32> to vector<224x128xf32>
    %95 = arith.addf %92, %94 : vector<224x128xf32>
    %cst_67 = arith.constant 0.000000e+00 : f32
    %96 = vector.broadcast %cst_67 : f32 to vector<224x128xf32>
    %97 = arith.maximumf %95, %96 : vector<224x128xf32>
    %98 = arith.truncf %97 : vector<224x128xf32> to vector<224x128xbf16>
    %c0_68 = arith.constant 0 : index
    %c0_69 = arith.constant 0 : index
    %99 = vector.load %arg6[%c0_68, %c0_69] : memref<128x128xbf16, #tpu.memory_space<vmem>>, vector<128x128xbf16>
    %cst_70 = arith.constant dense<0.000000e+00> : vector<224x128xf32>
    %100 = tpu.matmul %98, %99, %cst_70 {dimension_numbers = #tpu.dot_dimension_numbers<[1], [0], [0], [1], [0, 0, 1, 1], [], []>} : vector<224x128xbf16>, vector<128x128xbf16>, vector<224x128xf32> -> vector<224x128xf32>
    %c4 = arith.constant 4 : index
    %c0_71 = arith.constant 0 : index
    %101 = vector.load %arg7[%c4, %c0_71] : memref<8x128xf32, #tpu.memory_space<vmem>>, vector<1x128xf32>
    %102 = vector.broadcast %101 : vector<1x128xf32> to vector<224x128xf32>
    %103 = arith.addf %100, %102 : vector<224x128xf32>
    %c0_72 = arith.constant 0 : index
    %c0_73 = arith.constant 0 : index
    %104 = vector.load %arg8[%c0_72, %c0_73] : memref<224x128xf32, #tpu.memory_space<vmem>>, vector<224x128xf32>
    tpu.vector_store %arg8[%c0_72, %c0_73], %103 {strides = array<i32>} : memref<224x128xf32, #tpu.memory_space<vmem>>, vector<224x128xf32>,
    return
  }
  func.func @transform_0(%arg0: i32) -> (i32, i32) {
    %c0_i32 = arith.constant 0 : i32
    %c0_i32_0 = arith.constant 0 : i32
    return %arg0, %c0_i32 : i32, i32
  }
  func.func @transform_1(%arg0: i32) -> (i32, i32) {
    %c0_i32 = arith.constant 0 : i32
    %c0_i32_0 = arith.constant 0 : i32
    %c0_i32_1 = arith.constant 0 : i32
    return %c0_i32, %c0_i32_0 : i32, i32
  }
  func.func @transform_2(%arg0: i32) -> (i32, i32, i32) {
    %c0_i32 = arith.constant 0 : i32
    %c0_i32_0 = arith.constant 0 : i32
    %c0_i32_1 = arith.constant 0 : i32
    %c0_i32_2 = arith.constant 0 : i32
    return %c0_i32, %c0_i32_0, %c0_i32_1 : i32, i32, i32
  }
  func.func @transform_3(%arg0: i32) -> (i32, i32, i32) {
    %c0_i32 = arith.constant 0 : i32
    %c0_i32_0 = arith.constant 0 : i32
    %c0_i32_1 = arith.constant 0 : i32
    %c0_i32_2 = arith.constant 0 : i32
    return %c0_i32, %c0_i32_0, %c0_i32_1 : i32, i32, i32
  }
  func.func @transform_4(%arg0: i32) -> (i32, i32) {
    %c0_i32 = arith.constant 0 : i32
    %c0_i32_0 = arith.constant 0 : i32
    %c0_i32_1 = arith.constant 0 : i32
    return %c0_i32, %c0_i32_0 : i32, i32
  }
  func.func @transform_5(%arg0: i32) -> (i32, i32) {
    %c0_i32 = arith.constant 0 : i32
    %c0_i32_0 = arith.constant 0 : i32
    %c0_i32_1 = arith.constant 0 : i32
    return %c0_i32, %c0_i32_0 : i32, i32
  }
  func.func @transform_6(%arg0: i32) -> (i32, i32) {
    %c0_i32 = arith.constant 0 : i32
    %c0_i32_0 = arith.constant 0 : i32
    %c0_i32_1 = arith.constant 0 : i32
    return %c0_i32, %c0_i32_0 : i32, i32
  }
  func.func @transform_7(%arg0: i32) -> (i32, i32) {
    %c0_i32 = arith.constant 0 : i32
    %c0_i32_0 = arith.constant 0 : i32
    return %arg0, %c0_i32 : i32, i32
  }
}

</mosaic_0001>

<bundles_post_ra>
// kernel: nn_conv_fashion_mnist_forward.1
= control target key start
LH: loop header
LB: loop body
LE: loop exit
PB: predicated region body
PF: predicated region fallthrough
CT: control target
= control target key end

     0   :  { %vm853_vm0 = vcmask 785408   ;;  %vm2154_vm1 = vsmask.f32 7424  ;;  %vm3850_vm2 = vcmask 1046528   ;;  %s10792_s1 = inlined_call_operand.vmem [shape: bf16[224,1024], index: 1, kind: input, shape index: {}]   ;;  %s10793_s0 = inlined_call_operand.vmem [shape: bf16[224,224], index: 0, kind: input, shape index: {}]   ;;  %s10794_s2 = inlined_call_operand.vmem [shape: bf16[3,256,512], index: 2, kind: input, shape index: {}]   ;;  %s10795_s6 = inlined_call_operand.vmem [shape: f32[8,128], index: 6, kind: input, shape index: {}]   ;;  %s10796_s3 = inlined_call_operand.vmem [shape: bf16[4,128,128], index: 3, kind: input, shape index: {}]   ;;  %s10797_s4 = inlined_call_operand.vmem [shape: bf16[128,128], index: 4, kind: input, shape index: {}]   ;;  %s10798_s5 = inlined_call_operand.vmem [shape: bf16[128,128], index: 5, kind: input, shape index: {}]   ;;  %s10799_s7 = inlined_call_operand.vmem [shape: f32[224,128], index: 7, kind: output, shape index: {}]  }
   0x1   :  { %v55_v0 = vld [vmem:[%s10792_s1] sm:$0xff]  ;;  %v8349_v17 = vld [vmem:[%s10793_s0 + $0x74] ss:$8 sps:$4 sm:$0xff]   ;;  %v56_v57 = vld [vmem:[%s10792_s1 + $0x8] sm:$0xff] }
   0x2   :  { %v59_v1 = vld [vmem:[%s10792_s1 + $0x20] sm:$0xff]  ;;  %6677 = vmatprep.mubr.msk.bf16.mxu1 %vm853_vm0, %v8349_v17  ;;  %v60_v58 = vld [vmem:[%s10792_s1 + $0x28] sm:$0xff]  ;;  %v57_v59 = vld [vmem:[%s10792_s1 + $0x10] sm:$0xff] }
   0x3   :  { %v63_v2 = vld [vmem:[%s10792_s1 + $0x40] sm:$0xff]  ;;  %v6559_v3 = vcombine.high %v55_v0, %v59_v1  ;;  %v6558_v4 = vcombine.low %v55_v0, %v59_v1  ;;  %v61_v60 = vld [vmem:[%s10792_s1 + $0x30] sm:$0xff]  ;;  %v6561_v62 = vcombine.high %v56_v57, %v60_v58  ;;  %v64_v63 = vld [vmem:[%s10792_s1 + $0x48] sm:$0xff] }
   0x4   :  { %v67_v5 = vld [vmem:[%s10792_s1 + $0x60] sm:$0xff]  ;;  %v68_v0 = vld [vmem:[%s10792_s1 + $0x68] sm:$0xff]  ;;  %v6563_v1 = vcombine.high %v57_v59, %v61_v60 }
   0x5   :  { %v6567_v6 = vcombine.high %v63_v2, %v67_v5  ;;  %v71_v7 = vld [vmem:[%s10792_s1 + $0x80] sm:$0xff]  ;;  %7543 = vmatprep.subr.bf16.mxu1 %v6559_v3  ;;  %896 = vmatprep.subr.bf16.mxu0 %v6559_v3  ;;  %v6566_v9 = vcombine.low %v63_v2, %v67_v5  ;;  %v8435_v2 = vld [vmem:[%s10793_s0 + $0x70] ss:$8 sps:$4 sm:$0xff]   ;;  %v6560_v3 = vcombine.low %v56_v57, %v60_v58 }
   0x6   :  { %v75_v8 = vld [vmem:[%s10792_s1 + $0xa0] sm:$0xff]  ;;  %7557 = vmatpush1.bf16.msra.mxu1 %v6558_v4  ;;  %897 = vmatpush1.bf16.msra.mxu0 %v6558_v4  ;;  %v65_v5 = vld [vmem:[%s10792_s1 + $0x50] sm:$0xff] }
   0x7   :  { %7544 = vmatprep.subr.bf16.mxu1 %v6567_v6  ;;  %v6575_v10 = vcombine.high %v71_v7, %v75_v8  ;;  %v79_v11 = vld [vmem:[%s10792_s1 + $0xc0] sm:$0xff]  ;;  %898 = vmatprep.subr.bf16.mxu0 %v6567_v6  ;;  %v6574_v13 = vcombine.low %v71_v7, %v75_v8  ;;  %v69_v6 = vld [vmem:[%s10792_s1 + $0x70] sm:$0xff]  ;;  %v6569_v7 = vcombine.high %v64_v63, %v68_v0 }
   0x8   :  { %v83_v12 = vld [vmem:[%s10792_s1 + $0xe0] sm:$0xff]  ;;  %v105_v57 = vld [vmem:[%s10792_s1 + $0x190] sm:$0xff] }
   0x9   :  { %v6583_v14 = vcombine.high %v79_v11, %v83_v12  ;;  %v87_v15 = vld [vmem:[%s10792_s1 + $0x100] sm:$0xff]  ;;  %v6582_v18 = vcombine.low %v79_v11, %v83_v12  ;;  %v8462_v11 = vld [vmem:[%s10793_s0 + $0x14] ss:$8 sps:$4 sm:$0xff]   ;;  %v6562_v12 = vcombine.low %v57_v59, %v61_v60  ;;  %v112_v60 = vld [vmem:[%s10792_s1 + $0x1c8] sm:$0xff] }
   0xa   :  { %7558 = vmatpush1.bf16.msra.mxu1 %v6566_v9  ;;  %899 = vmatpush1.bf16.msra.mxu0 %v6566_v9  ;;  %v91_v16 = vld [vmem:[%s10792_s1 + $0x120] sm:$0xff]  ;;  %v72_v9 = vld [vmem:[%s10792_s1 + $0x88] sm:$0xff]  ;;  %v109_v58 = vld [vmem:[%s10792_s1 + $0x1b0] sm:$0xff] }
   0xb   :  { %7545 = vmatprep.subr.bf16.mxu1 %v6575_v10  ;;  %900 = vmatprep.subr.bf16.mxu0 %v6575_v10  ;;  %v6591_v19 = vcombine.high %v87_v15, %v91_v16  ;;  %v95_v20 = vld [vmem:[%s10792_s1 + $0x140] sm:$0xff]  ;;  %v6590_v22 = vcombine.low %v87_v15, %v91_v16  ;;  %v76_v10 = vld [vmem:[%s10792_s1 + $0xa8] sm:$0xff]  ;;  %v73_v15 = vld [vmem:[%s10792_s1 + $0x90] sm:$0xff] }
   0xc   :  { %v99_v21 = vld [vmem:[%s10792_s1 + $0x160] sm:$0xff]  ;;  %v77_v16 = vld [vmem:[%s10792_s1 + $0xb0] sm:$0xff] }
   0xd   :  { %v6599_v23 = vcombine.high %v95_v20, %v99_v21  ;;  %v103_v24 = vld [vmem:[%s10792_s1 + $0x180] sm:$0xff]  ;;  %v6598_v26 = vcombine.low %v95_v20, %v99_v21  ;;  %v84_v20 = vld [vmem:[%s10792_s1 + $0xe8] sm:$0xff]  ;;  %v6570_v21 = vcombine.low %v65_v5, %v69_v6 }
   0xe   :  { %7559 = vmatpush1.bf16.msra.mxu1 %v6574_v13  ;;  %901 = vmatpush1.bf16.msra.mxu0 %v6574_v13  ;;  %v107_v25 = vld [vmem:[%s10792_s1 + $0x1a0] sm:$0xff]  ;;  %v6571_v13 = vcombine.high %v65_v5, %v69_v6  ;;  %v113_v5 = vld [vmem:[%s10792_s1 + $0x1d0] sm:$0xff] }
   0xf   :  { %7546 = vmatprep.subr.bf16.mxu1 %v6583_v14  ;;  %902 = vmatprep.subr.bf16.mxu0 %v6583_v14  ;;  %v6607_v27 = vcombine.high %v103_v24, %v107_v25  ;;  %v111_v28 = vld [vmem:[%s10792_s1 + $0x1c0] sm:$0xff]  ;;  %v6606_v30 = vcombine.low %v103_v24, %v107_v25  ;;  %v6568_v14 = vcombine.low %v64_v63, %v68_v0  ;;  %v8490_v25 = vld [vmem:[%s10793_s0 + $0x94] ss:$8 sps:$4 sm:$0xff]  }
  0x10   :  { %v115_v29 = vld [vmem:[%s10792_s1 + $0x1e0] sm:$0xff]  ;;  %v6576_v24 = vcombine.low %v72_v9, %v76_v10  ;;  %v6611_v0 = vcombine.high %v105_v57, %v109_v58  ;;  %v117_v6 = vld [vmem:[%s10792_s1 + $0x1f0] sm:$0xff] }
  0x11   :  { %v6615_v31 = vcombine.high %v111_v28, %v115_v29  ;;  %v119_v32 = vld [vmem:[%s10792_s1 + $0x200] sm:$0xff]  ;;  %v6614_v34 = vcombine.low %v111_v28, %v115_v29  ;;  %v8501_v29 = vld [vmem:[%s10793_s0 + $0x10] ss:$8 sps:$4 sm:$0xff]  }
  0x12   :  { %7560 = vmatpush1.bf16.msra.mxu1 %v6582_v18  ;;  %903 = vmatpush1.bf16.msra.mxu0 %v6582_v18  ;;  %v123_v33 = vld [vmem:[%s10792_s1 + $0x220] sm:$0xff]  ;;  %v6577_v18 = vcombine.high %v72_v9, %v76_v10  ;;  %v8601_v9 = vld [vmem:[%s10793_s0 + $0x30] ss:$8 sps:$4 sm:$0xff]   ;;  %v120_v10 = vld [vmem:[%s10792_s1 + $0x208] sm:$0xff] }
  0x13   :  { %7547 = vmatprep.subr.bf16.mxu1 %v6591_v19  ;;  %904 = vmatprep.subr.bf16.mxu0 %v6591_v19  ;;  %v8380_v35 = vld [vmem:[%s10793_s0 + $0x4] ss:$8 sps:$4 sm:$0xff]   ;;  %v6623_v36 = vcombine.high %v119_v32, %v123_v33  ;;  %v6622_v39 = vcombine.low %v119_v32, %v123_v33  ;;  %v8451_v8 = vld [vmem:[%s10793_s0] ss:$8 sps:$4 sm:$0xff]   ;;  %v6578_v33 = vcombine.low %v73_v15, %v77_v16 }
  0x14   :  { %v127_v37 = vld [vmem:[%s10792_s1 + $0x240] sm:$0xff]  ;;  %6670 = vmatprep.mubr.msk.bf16.mxu0 %vm853_vm0, %v8380_v35  ;;  %v80_v19 = vld [vmem:[%s10792_s1 + $0xc8] sm:$0xff] }
  0x15   :  { %v131_v38 = vld [vmem:[%s10792_s1 + $0x260] sm:$0xff]  ;;  %v6585_v28 = vcombine.high %v80_v19, %v84_v20 }
  0x16   :  { %7561 = vmatpush1.bf16.msra.mxu1 %v6590_v22  ;;  %905 = vmatpush1.bf16.msra.mxu0 %v6590_v22  ;;  %v6631_v40 = vcombine.high %v127_v37, %v131_v38  ;;  %v135_v41 = vld [vmem:[%s10792_s1 + $0x280] sm:$0xff]  ;;  %v6630_v43 = vcombine.low %v127_v37, %v131_v38  ;;  %v89_v37 = vld [vmem:[%s10792_s1 + $0x110] sm:$0xff] }
  0x17   :  { %7548 = vmatprep.subr.bf16.mxu1 %v6599_v23  ;;  %906 = vmatprep.subr.bf16.mxu0 %v6599_v23  ;;  %v139_v42 = vld [vmem:[%s10792_s1 + $0x2a0] sm:$0xff]  ;;  %v6579_v23 = vcombine.high %v73_v15, %v77_v16  ;;  %v93_v38 = vld [vmem:[%s10792_s1 + $0x130] sm:$0xff]  ;;  %v6619_v15 = vcombine.high %v113_v5, %v117_v6 }
  0x18   :  { %v6639_v44 = vcombine.high %v135_v41, %v139_v42  ;;  %v143_v45 = vld [vmem:[%s10792_s1 + $0x2c0] sm:$0xff]  ;;  %v6638_v47 = vcombine.low %v135_v41, %v139_v42  ;;  %v100_v41 = vld [vmem:[%s10792_s1 + $0x168] sm:$0xff] }
  0x19   :  { %v147_v46 = vld [vmem:[%s10792_s1 + $0x2e0] sm:$0xff] }
  0x1a   :  { %7562 = vmatpush1.bf16.msra.mxu1 %v6598_v26  ;;  %907 = vmatpush1.bf16.msra.mxu0 %v6598_v26  ;;  %v6647_v48 = vcombine.high %v143_v45, %v147_v46  ;;  %v151_v49 = vld [vmem:[%s10792_s1 + $0x300] sm:$0xff]  ;;  %v6646_v51 = vcombine.low %v143_v45, %v147_v46  ;;  %v81_v26 = vld [vmem:[%s10792_s1 + $0xd0] sm:$0xff] }
  0x1b   :  { %7549 = vmatprep.subr.bf16.mxu1 %v6607_v27  ;;  %908 = vmatprep.subr.bf16.mxu0 %v6607_v27  ;;  %v155_v50 = vld [vmem:[%s10792_s1 + $0x320] sm:$0xff]  ;;  %v85_v27 = vld [vmem:[%s10792_s1 + $0xf0] sm:$0xff] }
  0x1c   :  { %v6655_v52 = vcombine.high %v151_v49, %v155_v50  ;;  %v159_v53 = vld [vmem:[%s10792_s1 + $0x340] sm:$0xff]  ;;  %v6654_v55 = vcombine.low %v151_v49, %v155_v50  ;;  %v6586_v42 = vcombine.low %v81_v26, %v85_v27 }
  0x1d   :  { %v163_v54 = vld [vmem:[%s10792_s1 + $0x360] sm:$0xff] }
  0x1e   :  { %7563 = vmatpush1.bf16.msra.mxu1 %v6606_v30  ;;  %909 = vmatpush1.bf16.msra.mxu0 %v6606_v30  ;;  %v6663_v56 = vcombine.high %v159_v53, %v163_v54  ;;  %v6662_v61 = vcombine.low %v159_v53, %v163_v54  ;;  %v8440_v4 = vld [vmem:[%s10793_s0 + $0x84] ss:$8 sps:$4 sm:$0xff]   ;;  %v8485_v22 = vld [vmem:[%s10793_s0 + $0x80] ss:$8 sps:$4 sm:$0xff]   ;;  %v8562_v53 = vld [vmem:[%s10793_s0 + $0x34] ss:$8 sps:$4 sm:$0xff]   ;;  %v6594_v54 = vcombine.low %v89_v37, %v93_v38 }
  0x1f   :  { %7550 = vmatprep.subr.bf16.mxu1 %v6615_v31  ;;  %910 = vmatprep.subr.bf16.mxu0 %v6615_v31  ;;  %v88_v30 = vld [vmem:[%s10792_s1 + $0x108] sm:$0xff] }
  0x20   :  { %v92_v31 = vld [vmem:[%s10792_s1 + $0x128] sm:$0xff] }
  0x21   :  { %v8512_v32 = vld [vmem:[%s10793_s0 + $0x24] ss:$8 sps:$4 sm:$0xff]   ;;  %v6592_v45 = vcombine.low %v88_v30, %v92_v31  ;;  %v8551_v50 = vld [vmem:[%s10793_s0 + $0x20] ss:$8 sps:$4 sm:$0xff]  }
  0x22   :  { %7564 = vmatpush1.bf16.msra.mxu1 %v6614_v34  ;;  %911 = vmatpush1.bf16.msra.mxu0 %v6614_v34  ;;  %v6587_v34 = vcombine.high %v81_v26, %v85_v27  ;;  %v8540_v46 = vld [vmem:[%s10793_s0 + $0xa4] ss:$8 sps:$4 sm:$0xff]   ;;  %v8585_v63 = vld [vmem:[%s10793_s0 + $0xa0] ss:$8 sps:$4 sm:$0xff]   ;;  %v8635_v26 = vld [vmem:[%s10793_s0 + $0xb0] ss:$8 sps:$4 sm:$0xff]  }
  0x23   :  { %7551 = vmatprep.subr.bf16.mxu1 %v6623_v36  ;;  %912 = vmatprep.subr.bf16.mxu0 %v6623_v36  ;;  %v6584_v36 = vcombine.low %v80_v19, %v84_v20  ;;  %v125_v19 = vld [vmem:[%s10792_s1 + $0x230] sm:$0xff] }
  0x26   :  { %7565 = vmatpush1.bf16.msra.mxu1 %v6622_v39  ;;  %913 = vmatpush1.bf16.msra.mxu0 %v6622_v39  ;;  %v6593_v39 = vcombine.high %v88_v30, %v92_v31  ;;  %v8640_v30 = vld [vmem:[%s10793_s0 + $0xc4] ss:$8 sps:$4 sm:$0xff]   ;;  %v129_v31 = vld [vmem:[%s10792_s1 + $0x250] sm:$0xff] }
  0x27   :  { %7552 = vmatprep.subr.bf16.mxu1 %v6631_v40  ;;  %914 = vmatprep.subr.bf16.mxu0 %v6631_v40  ;;  %v96_v40 = vld [vmem:[%s10792_s1 + $0x148] sm:$0xff] }
  0x28   :  { %v6601_v49 = vcombine.high %v96_v40, %v100_v41 }
  0x2a   :  { %7566 = vmatpush1.bf16.msra.mxu1 %v6630_v43  ;;  %915 = vmatpush1.bf16.msra.mxu0 %v6630_v43  ;;  %v8535_v43 = vld [vmem:[%s10793_s0 + $0x90] ss:$8 sps:$4 sm:$0xff]  }
  0x2b   :  { %7553 = vmatprep.subr.bf16.mxu1 %v6639_v44  ;;  %916 = vmatprep.subr.bf16.mxu0 %v6639_v44  ;;  %v6595_v44 = vcombine.high %v89_v37, %v93_v38  ;;  %v136_v37 = vld [vmem:[%s10792_s1 + $0x288] sm:$0xff] }
  0x2c   :  { %v140_v38 = vld [vmem:[%s10792_s1 + $0x2a8] sm:$0xff] }
  0x2e   :  { %7567 = vmatpush1.bf16.msra.mxu1 %v6638_v47  ;;  %917 = vmatpush1.bf16.msra.mxu0 %v6638_v47  ;;  %v97_v47 = vld [vmem:[%s10792_s1 + $0x150] sm:$0xff] }
  0x2f   :  { %7554 = vmatprep.subr.bf16.mxu1 %v6647_v48  ;;  %918 = vmatprep.subr.bf16.mxu0 %v6647_v48  ;;  %v101_v48 = vld [vmem:[%s10792_s1 + $0x170] sm:$0xff] }
  0x32   :  { %7568 = vmatpush1.bf16.msra.mxu1 %v6646_v51  ;;  %919 = vmatpush1.bf16.msra.mxu0 %v6646_v51  ;;  %v104_v51 = vld [vmem:[%s10792_s1 + $0x188] sm:$0xff] }
  0x33   :  { %7555 = vmatprep.subr.bf16.mxu1 %v6655_v52  ;;  %920 = vmatprep.subr.bf16.mxu0 %v6655_v52  ;;  %v108_v52 = vld [vmem:[%s10792_s1 + $0x1a8] sm:$0xff] }
  0x34   :  { %v6609_v59 = vcombine.high %v104_v51, %v108_v52 }
  0x36   :  { %7569 = vmatpush1.bf16.msra.mxu1 %v6654_v55  ;;  %921 = vmatpush1.bf16.msra.mxu0 %v6654_v55  ;;  %v6603_v55 = vcombine.high %v97_v47, %v101_v48 }
  0x37   :  { %7556 = vmatprep.subr.bf16.mxu1 %v6663_v56  ;;  %922 = vmatprep.subr.bf16.mxu0 %v6663_v56  ;;  %v6600_v56 = vcombine.low %v96_v40, %v100_v41 }
  0x3a   :  { %7570 = vmatpush1.bf16.msra.mxu1 %v6662_v61  ;;  %923 = vmatpush1.bf16.msra.mxu0 %v6662_v61  ;;  %v116_v61 = vld [vmem:[%s10792_s1 + $0x1e8] sm:$0xff] }
  0x3b   :  { %1069 = vmatprep.subr.bf16.mxu1 %v6561_v62  ;;  %1242 = vmatprep.subr.bf16.mxu0 %v6563_v1  ;;  %v6602_v62 = vcombine.low %v97_v47, %v101_v48  ;;  %v6608_v1 = vcombine.low %v104_v51, %v108_v52  ;;  %v6616_v16 = vcombine.low %v112_v60, %v116_v61  ;;  %v144_v48 = vld [vmem:[%s10792_s1 + $0x2c8] sm:$0xff] }
  0x3c   :  { %v6641_v47 = vcombine.high %v136_v37, %v140_v38  ;;  %v8685_v52 = vld [vmem:[%s10793_s0 + $0xc0] ss:$8 sps:$4 sm:$0xff]  }
  0x3d   :  { %999 = vmatmul.mubr.bf16.vlgmr.msra.gmra.mrb[0].mxu1 %v8435_v2  ;;  %929 = vmatmul.mubr.bf16.vlgmr.msra.gmra.mrb[0].mxu0 %v8451_v8 }
  0x3e   :  { %1070 = vmatpush1.bf16.msra.mxu1 %v6560_v3  ;;  %6678 = vmatprep.mubr.msk.bf16.mxu1 %vm853_vm0, %v8440_v4  ;;  %v8590_v3 = vld [vmem:[%s10793_s0 + $0xb4] ss:$8 sps:$4 sm:$0xff]  }
  0x3f   :  { %1071 = vmatprep.subr.bf16.mxu1 %v6569_v7  ;;  %6671 = vmatprep.mubr.msk.bf16.mxu0 %vm853_vm0, %v8462_v11  ;;  %v6617_v7 = vcombine.high %v112_v60, %v116_v61  ;;  %v8701_v60 = vld [vmem:[%s10793_s0 + $0x50] ss:$8 sps:$4 sm:$0xff]   ;;  %v152_v61 = vld [vmem:[%s10792_s1 + $0x308] sm:$0xff] }
  0x40   :  { %1243 = vmatpush1.bf16.msra.mxu0 %v6562_v12  ;;  %v124_v12 = vld [vmem:[%s10792_s1 + $0x228] sm:$0xff] }
  0x41   :  { %1244 = vmatprep.subr.bf16.mxu0 %v6571_v13  ;;  %v8612_v13 = vld [vmem:[%s10793_s0 + $0x44] ss:$8 sps:$4 sm:$0xff]   ;;  %v6625_v20 = vcombine.high %v120_v10, %v124_v12 }
  0x42   :  { %1072 = vmatpush1.bf16.msra.mxu1 %v6568_v14  ;;  %v6610_v14 = vcombine.low %v105_v57, %v109_v58  ;;  %v145_v57 = vld [vmem:[%s10792_s1 + $0x2d0] sm:$0xff] }
  0x43   :  { %1073 = vmatprep.subr.bf16.mxu1 %v6577_v18  ;;  %v121_v18 = vld [vmem:[%s10792_s1 + $0x210] sm:$0xff] }
  0x44   :  { %1245 = vmatpush1.bf16.msra.mxu0 %v6570_v21  ;;  %v128_v21 = vld [vmem:[%s10792_s1 + $0x248] sm:$0xff]  ;;  %v6627_v27 = vcombine.high %v121_v18, %v125_v19  ;;  %v6626_v40 = vcombine.low %v121_v18, %v125_v19  ;;  %v149_v58 = vld [vmem:[%s10792_s1 + $0x2f0] sm:$0xff] }
  0x45   :  { %1009 = vmatmul.mubr.bf16.gmra.mrb[4].mxu1 %v8485_v22  ;;  %1246 = vmatprep.subr.bf16.mxu0 %v6579_v23  ;;  %v132_v23 = vld [vmem:[%s10792_s1 + $0x268] sm:$0xff]  ;;  %v8735_v18 = vld [vmem:[%s10793_s0 + $0xd0] ss:$8 sps:$4 sm:$0xff]  }
  0x46   :  { %1074 = vmatpush1.bf16.msra.mxu1 %v6576_v24  ;;  %6679 = vmatprep.mubr.msk.bf16.mxu1 %vm853_vm0, %v8490_v25  ;;  %v6618_v24 = vcombine.low %v113_v5, %v117_v6  ;;  %v6651_v5 = vcombine.high %v145_v57, %v149_v58 }
  0x47   :  { %1075 = vmatprep.subr.bf16.mxu1 %v6585_v28  ;;  %939 = vmatmul.mubr.bf16.gmra.mrb[4].mxu0 %v8501_v29  ;;  %v6624_v28 = vcombine.low %v120_v10, %v124_v12  ;;  %v157_v10 = vld [vmem:[%s10792_s1 + $0x330] sm:$0xff] }
  0x48   :  { %6672 = vmatprep.mubr.msk.bf16.mxu0 %vm853_vm0, %v8512_v32  ;;  %1247 = vmatpush1.bf16.msra.mxu0 %v6578_v33  ;;  %v133_v33 = vld [vmem:[%s10792_s1 + $0x270] sm:$0xff] }
  0x49   :  { %1248 = vmatprep.subr.bf16.mxu0 %v6587_v34  ;;  %v6633_v34 = vcombine.high %v128_v21, %v132_v23  ;;  %v6635_v41 = vcombine.high %v129_v31, %v133_v33  ;;  %v6634_v51 = vcombine.low %v129_v31, %v133_v33  ;;  %v62_v31 = vld [vmem:[%s10792_s1 + $0x38] sm:$0xff] }
  0x4a   :  { %1076 = vmatpush1.bf16.msra.mxu1 %v6584_v36  ;;  %v8651_v36 = vld [vmem:[%s10793_s0 + $0x40] ss:$8 sps:$4 sm:$0xff]  }
  0x4b   :  { %1077 = vmatprep.subr.bf16.mxu1 %v6593_v39  ;;  %v8662_v39 = vld [vmem:[%s10793_s0 + $0x54] ss:$8 sps:$4 sm:$0xff]  }
  0x4c   :  { %1249 = vmatpush1.bf16.msra.mxu0 %v6586_v42  ;;  %v6632_v42 = vcombine.low %v128_v21, %v132_v23  ;;  %v161_v21 = vld [vmem:[%s10792_s1 + $0x350] sm:$0xff] }
  0x4d   :  { %1019 = vmatmul.mubr.bf16.gmra.mrb[8].mxu1 %v8535_v43  ;;  %1250 = vmatprep.subr.bf16.mxu0 %v6595_v44  ;;  %v137_v44 = vld [vmem:[%s10792_s1 + $0x290] sm:$0xff] }
  0x4e   :  { %1078 = vmatpush1.bf16.msra.mxu1 %v6592_v45  ;;  %6680 = vmatprep.mubr.msk.bf16.mxu1 %vm853_vm0, %v8540_v46  ;;  %v141_v45 = vld [vmem:[%s10792_s1 + $0x2b0] sm:$0xff] }
  0x4f   :  { %1079 = vmatprep.subr.bf16.mxu1 %v6601_v49  ;;  %949 = vmatmul.mubr.bf16.gmra.mrb[8].mxu0 %v8551_v50  ;;  %v148_v49 = vld [vmem:[%s10792_s1 + $0x2e8] sm:$0xff]  ;;  %v165_v23 = vld [vmem:[%s10792_s1 + $0x370] sm:$0xff] }
  0x50   :  { %6673 = vmatprep.mubr.msk.bf16.mxu0 %vm853_vm0, %v8562_v53  ;;  %1251 = vmatpush1.bf16.msra.mxu0 %v6594_v54  ;;  %v6643_v54 = vcombine.high %v137_v44, %v141_v45  ;;  %v6648_v6 = vcombine.low %v144_v48, %v148_v49 }
  0x51   :  { %1252 = vmatprep.subr.bf16.mxu0 %v6603_v55  ;;  %v6640_v55 = vcombine.low %v136_v37, %v140_v38 }
  0x52   :  { %1080 = vmatpush1.bf16.msra.mxu1 %v6600_v56  ;;  %v8690_v56 = vld [vmem:[%s10793_s0 + $0xd4] ss:$8 sps:$4 sm:$0xff]  }
  0x53   :  { %1081 = vmatprep.subr.bf16.mxu1 %v6609_v59  ;;  %v6649_v59 = vcombine.high %v144_v48, %v148_v49  ;;  %v78_v48 = vld [vmem:[%s10792_s1 + $0xb8] sm:$0xff] }
  0x54   :  { %1253 = vmatpush1.bf16.msra.mxu0 %v6602_v62  ;;  %v156_v62 = vld [vmem:[%s10792_s1 + $0x328] sm:$0xff] }
  0x55   :  { %1029 = vmatmul.mubr.bf16.gmra.mrb[12].mxu1 %v8585_v63  ;;  %1254 = vmatprep.subr.bf16.mxu0 %v6611_v0  ;;  %v8712_v0 = vld [vmem:[%s10793_s0 + $0x64] ss:$8 sps:$4 sm:$0xff]   ;;  %v6657_v12 = vcombine.high %v152_v61, %v156_v62 }
  0x56   :  { %1082 = vmatpush1.bf16.msra.mxu1 %v6608_v1  ;;  %6681 = vmatprep.mubr.msk.bf16.mxu1 %vm853_vm0, %v8590_v3  ;;  %v6642_v1 = vcombine.low %v137_v44, %v141_v45 }
  0x57   :  { %1083 = vmatprep.subr.bf16.mxu1 %v6617_v7  ;;  %959 = vmatmul.mubr.bf16.gmra.mrb[12].mxu0 %v8601_v9  ;;  %v153_v7 = vld [vmem:[%s10792_s1 + $0x310] sm:$0xff] }
  0x58   :  { %6674 = vmatprep.mubr.msk.bf16.mxu0 %vm853_vm0, %v8612_v13  ;;  %1255 = vmatpush1.bf16.msra.mxu0 %v6610_v14  ;;  %v160_v14 = vld [vmem:[%s10792_s1 + $0x348] sm:$0xff]  ;;  %v6659_v19 = vcombine.high %v153_v7, %v157_v10  ;;  %v6658_v33 = vcombine.low %v153_v7, %v157_v10 }
  0x59   :  { %1256 = vmatprep.subr.bf16.mxu0 %v6619_v15  ;;  %v164_v15 = vld [vmem:[%s10792_s1 + $0x368] sm:$0xff] }
  0x5a   :  { %1084 = vmatpush1.bf16.msra.mxu1 %v6616_v16  ;;  %v6650_v16 = vcombine.low %v145_v57, %v149_v58  ;;  %v6664_v37 = vcombine.low %v160_v14, %v164_v15 }
  0x5b   :  { %1085 = vmatprep.subr.bf16.mxu1 %v6625_v20  ;;  %v6656_v20 = vcombine.low %v152_v61, %v156_v62  ;;  %v94_v61 = vld [vmem:[%s10792_s1 + $0x138] sm:$0xff] }
  0x5c   :  { %1257 = vmatpush1.bf16.msra.mxu0 %v6618_v24  ;;  %v6665_v24 = vcombine.high %v160_v14, %v164_v15  ;;  %v110_v14 = vld [vmem:[%s10792_s1 + $0x1b8] sm:$0xff] }
  0x5d   :  { %1039 = vmatmul.mubr.bf16.gmra.mrb[16].mxu1 %v8635_v26  ;;  %1258 = vmatprep.subr.bf16.mxu0 %v6627_v27  ;;  %v8746_v27 = vld [vmem:[%s10793_s0 + $0x60] ss:$8 sps:$4 sm:$0xff]  }
  0x5e   :  { %1086 = vmatpush1.bf16.msra.mxu1 %v6624_v28  ;;  %6682 = vmatprep.mubr.msk.bf16.mxu1 %vm853_vm0, %v8640_v30  ;;  %v58_v28 = vld [vmem:[%s10792_s1 + $0x18] sm:$0xff] }
  0x5f   :  { %1087 = vmatprep.subr.bf16.mxu1 %v6633_v34  ;;  %969 = vmatmul.mubr.bf16.gmra.mrb[16].mxu0 %v8651_v36  ;;  %v6667_v34 = vcombine.high %v161_v21, %v165_v23  ;;  %v6565_v38 = vcombine.high %v58_v28, %v62_v31  ;;  %v6564_v44 = vcombine.low %v58_v28, %v62_v31  ;;  %v126_v28 = vld [vmem:[%s10792_s1 + $0x238] sm:$0xff] }
  0x60   :  { %6675 = vmatprep.mubr.msk.bf16.mxu0 %vm853_vm0, %v8662_v39  ;;  %1259 = vmatpush1.bf16.msra.mxu0 %v6626_v40  ;;  %v66_v40 = vld [vmem:[%s10792_s1 + $0x58] sm:$0xff] }
  0x61   :  { %1260 = vmatprep.subr.bf16.mxu0 %v6635_v41  ;;  %v70_v41 = vld [vmem:[%s10792_s1 + $0x78] sm:$0xff] }
  0x62   :  { %1088 = vmatpush1.bf16.msra.mxu1 %v6632_v42  ;;  %v6666_v42 = vcombine.low %v161_v21, %v165_v23  ;;  %v6573_v45 = vcombine.high %v66_v40, %v70_v41  ;;  %v6572_v49 = vcombine.low %v66_v40, %v70_v41  ;;  %v138_v41 = vld [vmem:[%s10792_s1 + $0x298] sm:$0xff] }
  0x63   :  { %1089 = vmatprep.subr.bf16.mxu1 %v6641_v47  ;;  %v74_v47 = vld [vmem:[%s10792_s1 + $0x98] sm:$0xff] }
  0x64   :  { %1261 = vmatpush1.bf16.msra.mxu0 %v6634_v51  ;;  %v6581_v51 = vcombine.high %v74_v47, %v78_v48  ;;  %v6580_v57 = vcombine.low %v74_v47, %v78_v48  ;;  %v146_v47 = vld [vmem:[%s10792_s1 + $0x2d8] sm:$0xff] }
  0x65   :  { %1049 = vmatmul.mubr.bf16.gmra.mrb[20].mxu1 %v8685_v52  ;;  %1262 = vmatprep.subr.bf16.mxu0 %v6643_v54  ;;  %v82_v54 = vld [vmem:[%s10792_s1 + $0xd8] sm:$0xff] }
  0x66   :  { %1090 = vmatpush1.bf16.msra.mxu1 %v6640_v55  ;;  %6683 = vmatprep.mubr.msk.bf16.mxu1 %vm853_vm0, %v8690_v56  ;;  %v86_v55 = vld [vmem:[%s10792_s1 + $0xf8] sm:$0xff] }
  0x67   :  { %1091 = vmatprep.subr.bf16.mxu1 %v6649_v59  ;;  %979 = vmatmul.mubr.bf16.gmra.mrb[20].mxu0 %v8701_v60  ;;  %v6589_v58 = vcombine.high %v82_v54, %v86_v55  ;;  %v90_v59 = vld [vmem:[%s10792_s1 + $0x118] sm:$0xff]  ;;  %v6588_v62 = vcombine.low %v82_v54, %v86_v55 }
  0x68   :  { %6676 = vmatprep.mubr.msk.bf16.mxu0 %vm853_vm0, %v8712_v0  ;;  %1263 = vmatpush1.bf16.msra.mxu0 %v6642_v1  ;;  %v6597_v1 = vcombine.high %v90_v59, %v94_v61  ;;  %v6596_v7 = vcombine.low %v90_v59, %v94_v61  ;;  %v150_v48 = vld [vmem:[%s10792_s1 + $0x2f8] sm:$0xff] }
  0x69   :  { %1264 = vmatprep.subr.bf16.mxu0 %v6651_v5  ;;  %v98_v5 = vld [vmem:[%s10792_s1 + $0x158] sm:$0xff] }
  0x6a   :  { %1092 = vmatpush1.bf16.msra.mxu1 %v6648_v6  ;;  %v102_v6 = vld [vmem:[%s10792_s1 + $0x178] sm:$0xff] }
  0x6b   :  { %1093 = vmatprep.subr.bf16.mxu1 %v6657_v12  ;;  %v6605_v10 = vcombine.high %v98_v5, %v102_v6  ;;  %v106_v12 = vld [vmem:[%s10792_s1 + $0x198] sm:$0xff]  ;;  %v6604_v15 = vcombine.low %v98_v5, %v102_v6 }
  0x6c   :  { %1265 = vmatpush1.bf16.msra.mxu0 %v6650_v16  ;;  %v6613_v16 = vcombine.high %v106_v12, %v110_v14  ;;  %v6612_v21 = vcombine.low %v106_v12, %v110_v14  ;;  %v154_v54 = vld [vmem:[%s10792_s1 + $0x318] sm:$0xff]  ;;  %v7952_v12 = vld [vmem:[%s10794_s2 + $0x2a0] ss:$16 sps:$4 sm:$0xff]   ;;  %v7954_v14 = vld [vmem:[%s10794_s2 + $0x2a4] ss:$16 sps:$4 sm:$0xff]  }
  0x6d   :  { %1059 = vmatmul.mubr.bf16.gmra.mrb[24].mxu1 %v8735_v18  ;;  %1266 = vmatprep.subr.bf16.mxu0 %v6659_v19  ;;  %v114_v19 = vld [vmem:[%s10792_s1 + $0x1d8] sm:$0xff] }
  0x6e   :  { %1094 = vmatpush1.bf16.msra.mxu1 %v6656_v20  ;;  %6684 = vmatprep.mubr.msk.bf16.mxu1 %vm853_vm0, %v8380_v35  ;;  %v118_v20 = vld [vmem:[%s10792_s1 + $0x1f8] sm:$0xff] }
  0x6f   :  { %1095 = vmatprep.subr.bf16.mxu1 %v6665_v24  ;;  %989 = vmatmul.mubr.bf16.gmra.mrb[24].mxu0 %v8746_v27  ;;  %v6621_v23 = vcombine.high %v114_v19, %v118_v20  ;;  %v122_v24 = vld [vmem:[%s10792_s1 + $0x218] sm:$0xff]  ;;  %v6620_v31 = vcombine.low %v114_v19, %v118_v20 }
  0x70   :  { %1267 = vmatpush1.bf16.msra.mxu0 %v6658_v33  ;;  %6698 = vmatprep.mubr.msk.bf16.mxu0 %vm853_vm0, %v8380_v35  ;;  %v6629_v33 = vcombine.high %v122_v24, %v126_v28  ;;  %v158_v55 = vld [vmem:[%s10792_s1 + $0x338] sm:$0xff] }
  0x71   :  { %1268 = vmatprep.subr.bf16.mxu0 %v6667_v34  ;;  %v130_v34 = vld [vmem:[%s10792_s1 + $0x258] sm:$0xff] }
  0x72   :  { %1096 = vmatpush1.bf16.msra.mxu1 %v6664_v37  ;;  %v134_v37 = vld [vmem:[%s10792_s1 + $0x278] sm:$0xff] }
  0x73   :  { %1415 = vmatprep.subr.bf16.mxu1 %v6565_v38  ;;  %v6628_v38 = vcombine.low %v122_v24, %v126_v28  ;;  %v6637_v40 = vcombine.high %v130_v34, %v134_v37  ;;  %v162_v59 = vld [vmem:[%s10792_s1 + $0x358] sm:$0xff] }
  0x74   :  { %1269 = vmatpush1.bf16.msra.mxu0 %v6666_v42  ;;  %v142_v42 = vld [vmem:[%s10792_s1 + $0x2b8] sm:$0xff] }
  0x75   :  { %1102 = vmatmul.mubr.bf16.vlgmr.msra.gmra.mrb[28].mxu1 %v8451_v8  ;;  %v166_v61 = vld [vmem:[%s10792_s1 + $0x378] sm:$0xff] }
  0x76   :  { %1416 = vmatpush1.bf16.msra.mxu1 %v6564_v44  ;;  %6685 = vmatprep.mubr.msk.bf16.mxu1 %vm853_vm0, %v8462_v11  ;;  %v6636_v44 = vcombine.low %v130_v34, %v134_v37  ;;  %v6668_v5 = vcombine.low %v162_v59, %v166_v61  ;;  %v7957_v19 = vld [vmem:[%s10794_s2 + $0x2ac] ss:$16 sps:$4 sm:$0xff]  }
  0x77   :  { %1417 = vmatprep.subr.bf16.mxu1 %v6573_v45  ;;  %1275 = vmatmul.mubr.bf16.vlgmr.msra.gmra.mrb[28].mxu0 %v8451_v8  ;;  %v6645_v45 = vcombine.high %v138_v41, %v142_v42  ;;  %v8258_v20 = vld [vmem:[%s10793_s0 + $0x74] ss:$8 sps:$4 sm:$0xff]   ;;  %v8268_v37 = vld [vmem:[%s10793_s0 + $0xc4] ss:$8 sps:$4 sm:$0xff]  }
  0x78   :  { %6699 = vmatprep.mubr.msk.bf16.mxu0 %vm853_vm0, %v8462_v11 }
  0x7a   :  { %1418 = vmatpush1.bf16.msra.mxu1 %v6572_v49  ;;  %v6644_v49 = vcombine.low %v138_v41, %v142_v42  ;;  %v7958_v41 = vld [vmem:[%s10794_s2 + $0x2c0] ss:$16 sps:$4 sm:$0xff]   ;;  %v7960_v42 = vld [vmem:[%s10794_s2 + $0x2c4] ss:$16 sps:$4 sm:$0xff]  }
  0x7b   :  { %1419 = vmatprep.subr.bf16.mxu1 %v6581_v51  ;;  %v6653_v51 = vcombine.high %v146_v47, %v150_v48 }
  0x7d   :  { %1112 = vmatmul.mubr.bf16.gmra.mrb[32].mxu1 %v8501_v29 }
  0x7e   :  { %6686 = vmatprep.mubr.msk.bf16.mxu1 %vm853_vm0, %v8512_v32  ;;  %1420 = vmatpush1.bf16.msra.mxu1 %v6580_v57  ;;  %v6652_v57 = vcombine.low %v146_v47, %v150_v48  ;;  %v7961_v47 = vld [vmem:[%s10794_s2 + $0x2c8] ss:$16 sps:$4 sm:$0xff]   ;;  %v7963_v48 = vld [vmem:[%s10794_s2 + $0x2cc] ss:$16 sps:$4 sm:$0xff]  }
  0x7f   :  { %1421 = vmatprep.subr.bf16.mxu1 %v6589_v58  ;;  %1285 = vmatmul.mubr.bf16.gmra.mrb[32].mxu0 %v8501_v29  ;;  %v6661_v58 = vcombine.high %v154_v54, %v158_v55 }
  0x80   :  { %6700 = vmatprep.mubr.msk.bf16.mxu0 %vm853_vm0, %v8512_v32 }
  0x82   :  { %1422 = vmatpush1.bf16.msra.mxu1 %v6588_v62  ;;  %v6660_v62 = vcombine.low %v154_v54, %v158_v55 }
  0x83   :  { %1423 = vmatprep.subr.bf16.mxu1 %v6597_v1  ;;  %v6669_v1 = vcombine.high %v162_v59, %v166_v61 }
  0x85   :  { %1122 = vmatmul.mubr.bf16.gmra.mrb[36].mxu1 %v8551_v50 }
  0x86   :  { %6687 = vmatprep.mubr.msk.bf16.mxu1 %vm853_vm0, %v8562_v53  ;;  %1424 = vmatpush1.bf16.msra.mxu1 %v6596_v7  ;;  %v8270_v7 = vld [vmem:[%s10793_s0 + $0xd4] ss:$8 sps:$4 sm:$0xff]  }
  0x87   :  { %1425 = vmatprep.subr.bf16.mxu1 %v6605_v10  ;;  %1295 = vmatmul.mubr.bf16.gmra.mrb[36].mxu0 %v8551_v50 }
  0x88   :  { %6701 = vmatprep.mubr.msk.bf16.mxu0 %vm853_vm0, %v8562_v53 }
  0x8a   :  { %1426 = vmatpush1.bf16.msra.mxu1 %v6604_v15 }
  0x8b   :  { %1427 = vmatprep.subr.bf16.mxu1 %v6613_v16  ;;  %v7955_v16 = vld [vmem:[%s10794_s2 + $0x2a8] ss:$16 sps:$4 sm:$0xff]  }
  0x8d   :  { %1132 = vmatmul.mubr.bf16.gmra.mrb[40].mxu1 %v8601_v9 }
  0x8e   :  { %6688 = vmatprep.mubr.msk.bf16.mxu1 %vm853_vm0, %v8612_v13  ;;  %1428 = vmatpush1.bf16.msra.mxu1 %v6612_v21 }
  0x8f   :  { %1429 = vmatprep.subr.bf16.mxu1 %v6621_v23  ;;  %1305 = vmatmul.mubr.bf16.gmra.mrb[40].mxu0 %v8601_v9 }
  0x90   :  { %6702 = vmatprep.mubr.msk.bf16.mxu0 %vm853_vm0, %v8612_v13 }
  0x92   :  { %1430 = vmatpush1.bf16.msra.mxu1 %v6620_v31 }
  0x93   :  { %1431 = vmatprep.subr.bf16.mxu1 %v6629_v33 }
  0x95   :  { %1142 = vmatmul.mubr.bf16.gmra.mrb[44].mxu1 %v8651_v36 }
  0x96   :  { %6689 = vmatprep.mubr.msk.bf16.mxu1 %vm853_vm0, %v8662_v39  ;;  %1432 = vmatpush1.bf16.msra.mxu1 %v6628_v38 }
  0x97   :  { %1433 = vmatprep.subr.bf16.mxu1 %v6637_v40  ;;  %1315 = vmatmul.mubr.bf16.gmra.mrb[44].mxu0 %v8651_v36 }
  0x98   :  { %6703 = vmatprep.mubr.msk.bf16.mxu0 %vm853_vm0, %v8662_v39 }
  0x9a   :  { %1434 = vmatpush1.bf16.msra.mxu1 %v6636_v44  ;;  %v8259_v44 = vld [vmem:[%s10793_s0 + $0x70] ss:$8 sps:$4 sm:$0xff]  }
  0x9b   :  { %1435 = vmatprep.subr.bf16.mxu1 %v6645_v45 }
  0x9d   :  { %1152 = vmatmul.mubr.bf16.gmra.mrb[48].mxu1 %v8701_v60 }
  0x9e   :  { %6690 = vmatprep.mubr.msk.bf16.mxu1 %vm853_vm0, %v8712_v0  ;;  %1436 = vmatpush1.bf16.msra.mxu1 %v6644_v49  ;;  %v8260_v49 = vld [vmem:[%s10793_s0 + $0x84] ss:$8 sps:$4 sm:$0xff]  }
  0x9f   :  { %1437 = vmatprep.subr.bf16.mxu1 %v6653_v51  ;;  %1325 = vmatmul.mubr.bf16.gmra.mrb[48].mxu0 %v8701_v60 }
  0xa0   :  { %6704 = vmatprep.mubr.msk.bf16.mxu0 %vm853_vm0, %v8712_v0 }
  0xa2   :  { %1438 = vmatpush1.bf16.msra.mxu1 %v6652_v57 }
  0xa3   :  { %1439 = vmatprep.subr.bf16.mxu1 %v6661_v58 }
  0xa5   :  { %1162 = vmatmul.mubr.bf16.gmra.mrb[52].mxu1 %v8746_v27 }
  0xa6   :  { %6691 = vmatprep.mubr.msk.bf16.mxu1 %vm853_vm0, %v8349_v17  ;;  %1440 = vmatpush1.bf16.msra.mxu1 %v6660_v62 }
  0xa7   :  { %1441 = vmatprep.subr.bf16.mxu1 %v6669_v1  ;;  %1335 = vmatmul.mubr.bf16.gmra.mrb[52].mxu0 %v8746_v27 }
  0xa8   :  { %6705 = vmatprep.mubr.msk.bf16.mxu0 %vm853_vm0, %v8349_v17  ;;  %v7922_v17 = vld [vmem:[%s10794_s2 + $0x200] ss:$16 sps:$4 sm:$0xff]  }
  0xaa   :  { %1442 = vmatpush1.bf16.msra.mxu1 %v6668_v5  ;;  %v9324_v5 = vld [vmem:[%s10795_s6] ss:$0 sm:$0xff] }
  0xad   :  { %1172 = vmatmul.mubr.bf16.gmra.mrb[56].mxu1 %v8435_v2 }
  0xae   :  { %6692 = vmatprep.mubr.msk.bf16.mxu1 %vm853_vm0, %v8440_v4 }
  0xaf   :  { %1345 = vmatmul.mubr.bf16.gmra.mrb[56].mxu0 %v8435_v2  ;;  %v7925_v2 = vld [vmem:[%s10794_s2 + $0x208] ss:$16 sps:$4 sm:$0xff]  }
  0xb0   :  { %6706 = vmatprep.mubr.msk.bf16.mxu0 %vm853_vm0, %v8440_v4  ;;  %v7927_v4 = vld [vmem:[%s10794_s2 + $0x20c] ss:$16 sps:$4 sm:$0xff]  }
  0xb1   :  { %2908 = vmatprep.subr.bf16.mxu1 %v7927_v4  ;;  %v8261_v4 = vld [vmem:[%s10793_s0 + $0x80] ss:$8 sps:$4 sm:$0xff]  }
  0xb5   :  { %1182 = vmatmul.mubr.bf16.gmra.mrb[60].mxu1 %v8485_v22 }
  0xb6   :  { %6693 = vmatprep.mubr.msk.bf16.mxu1 %vm853_vm0, %v8490_v25 }
  0xb7   :  { %1355 = vmatmul.mubr.bf16.gmra.mrb[60].mxu0 %v8485_v22  ;;  %v7931_v22 = vld [vmem:[%s10794_s2 + $0x228] ss:$16 sps:$4 sm:$0xff]  }
  0xb8   :  { %6707 = vmatprep.mubr.msk.bf16.mxu0 %vm853_vm0, %v8490_v25  ;;  %v7933_v25 = vld [vmem:[%s10794_s2 + $0x22c] ss:$16 sps:$4 sm:$0xff]  }
  0xbd   :  { %1192 = vmatmul.mubr.bf16.gmra.mrb[64].mxu1 %v8535_v43 }
  0xbe   :  { %6694 = vmatprep.mubr.msk.bf16.mxu1 %vm853_vm0, %v8540_v46 }
  0xbf   :  { %1365 = vmatmul.mubr.bf16.gmra.mrb[64].mxu0 %v8535_v43  ;;  %v7937_v43 = vld [vmem:[%s10794_s2 + $0x248] ss:$16 sps:$4 sm:$0xff]  }
  0xc0   :  { %6708 = vmatprep.mubr.msk.bf16.mxu0 %vm853_vm0, %v8540_v46  ;;  %v7939_v46 = vld [vmem:[%s10794_s2 + $0x24c] ss:$16 sps:$4 sm:$0xff]  }
  0xc5   :  { %1202 = vmatmul.mubr.bf16.gmra.mrb[68].mxu1 %v8585_v63 }
  0xc6   :  { %6695 = vmatprep.mubr.msk.bf16.mxu1 %vm853_vm0, %v8590_v3 }
  0xc7   :  { %1375 = vmatmul.mubr.bf16.gmra.mrb[68].mxu0 %v8585_v63  ;;  %v7943_v63 = vld [vmem:[%s10794_s2 + $0x268] ss:$16 sps:$4 sm:$0xff]  }
  0xc8   :  { %6709 = vmatprep.mubr.msk.bf16.mxu0 %vm853_vm0, %v8590_v3  ;;  %v7945_v3 = vld [vmem:[%s10794_s2 + $0x26c] ss:$16 sps:$4 sm:$0xff]  }
  0xcd   :  { %1212 = vmatmul.mubr.bf16.gmra.mrb[72].mxu1 %v8635_v26 }
  0xce   :  { %6696 = vmatprep.mubr.msk.bf16.mxu1 %vm853_vm0, %v8640_v30 }
  0xcf   :  { %1385 = vmatmul.mubr.bf16.gmra.mrb[72].mxu0 %v8635_v26  ;;  %v7949_v26 = vld [vmem:[%s10794_s2 + $0x288] ss:$16 sps:$4 sm:$0xff]  }
  0xd0   :  { %6710 = vmatprep.mubr.msk.bf16.mxu0 %vm853_vm0, %v8640_v30  ;;  %v7951_v30 = vld [vmem:[%s10794_s2 + $0x28c] ss:$16 sps:$4 sm:$0xff]  }
  0xd5   :  { %1222 = vmatmul.mubr.bf16.gmra.mrb[76].mxu1 %v8685_v52 }
  0xd6   :  { %6697 = vmatprep.mubr.msk.bf16.mxu1 %vm853_vm0, %v8690_v56 }
  0xd7   :  { %1395 = vmatmul.mubr.bf16.gmra.mrb[76].mxu0 %v8685_v52  ;;  %v8267_v52 = vld [vmem:[%s10793_s0 + $0xb0] ss:$8 sps:$4 sm:$0xff]  }
  0xd8   :  { %6711 = vmatprep.mubr.msk.bf16.mxu0 %vm853_vm0, %v8690_v56 }
  0xdd   :  { %1232 = vmatmul.mubr.bf16.gmra.mrb[80].mxu1 %v8735_v18 }
  0xde   :  { %6712 = vmatprep.mubr.msk.bf16.mxu1 %vm853_vm0, %v8380_v35  ;;  %v7924_v35 = vld [vmem:[%s10794_s2 + $0x204] ss:$16 sps:$4 sm:$0xff]  }
  0xdf   :  { %1405 = vmatmul.mubr.bf16.gmra.mrb[80].mxu0 %v8735_v18  ;;  %2735 = vmatprep.subr.bf16.mxu0 %v7924_v35  ;;  %v7964_v35 = vld [vmem:[%s10794_s2 + $0x2e0] ss:$16 sps:$4 sm:$0xff]  }
  0xe0   :  { %2736 = vmatpush1.bf16.msra.mxu0 %v7922_v17 }
  0xe5   :  { %1448 = vmatmul.mubr.bf16.vlgmr.msra.gmra.mrb[84].mxu1 %v8451_v8  ;;  %v7928_v8 = vld [vmem:[%s10794_s2 + $0x220] ss:$16 sps:$4 sm:$0xff]  }
  0xe6   :  { %6713 = vmatprep.mubr.msk.bf16.mxu1 %vm853_vm0, %v8462_v11  ;;  %2909 = vmatpush1.bf16.msra.mxu1 %v7925_v2  ;;  %v7930_v11 = vld [vmem:[%s10794_s2 + $0x224] ss:$16 sps:$4 sm:$0xff]  }
  0xe7   :  { %2737 = vmatprep.subr.bf16.mxu0 %v7930_v11  ;;  %2910 = vmatprep.subr.bf16.mxu1 %v7933_v25  ;;  %v7966_v2 = vld [vmem:[%s10794_s2 + $0x2e4] ss:$16 sps:$4 sm:$0xff]   ;;  %v7967_v11 = vld [vmem:[%s10794_s2 + $0x2e8] ss:$16 sps:$4 sm:$0xff]  }
  0xe8   :  { %2738 = vmatpush1.bf16.msra.mxu0 %v7928_v8  ;;  %v8262_v25 = vld [vmem:[%s10793_s0 + $0x94] ss:$8 sps:$4 sm:$0xff]  }
  0xea   :  { %2911 = vmatpush1.bf16.msra.mxu1 %v7931_v22  ;;  %v7969_v22 = vld [vmem:[%s10794_s2 + $0x2ec] ss:$16 sps:$4 sm:$0xff]  }
  0xeb   :  { %2912 = vmatprep.subr.bf16.mxu1 %v7939_v46  ;;  %v7987_v46 = vld [vmem:[%s10794_s2 + $0x34c] ss:$16 sps:$4 sm:$0xff]  }
  0xed   :  { %1458 = vmatmul.mubr.bf16.gmra.mrb[88].mxu1 %v8501_v29  ;;  %v7934_v29 = vld [vmem:[%s10794_s2 + $0x240] ss:$16 sps:$4 sm:$0xff]  }
  0xee   :  { %6714 = vmatprep.mubr.msk.bf16.mxu1 %vm853_vm0, %v8512_v32  ;;  %v7936_v32 = vld [vmem:[%s10794_s2 + $0x244] ss:$16 sps:$4 sm:$0xff]   ;;  %2913 = vmatpush1.bf16.msra.mxu1 %v7937_v43 }
  0xef   :  { %2739 = vmatprep.subr.bf16.mxu0 %v7936_v32  ;;  %2914 = vmatprep.subr.bf16.mxu1 %v7945_v3 }
  0xf0   :  { %2740 = vmatpush1.bf16.msra.mxu0 %v7934_v29  ;;  %v7999_v29 = vld [vmem:[%s10794_s2 + $0x38c] ss:$16 sps:$4 sm:$0xff]  }
  0xf2   :  { %2915 = vmatpush1.bf16.msra.mxu1 %v7943_v63 }
  0xf3   :  { %2916 = vmatprep.subr.bf16.mxu1 %v7951_v30  ;;  %v7970_v30 = vld [vmem:[%s10794_s2 + $0x300] ss:$16 sps:$4 sm:$0xff]  }
  0xf5   :  { %1468 = vmatmul.mubr.bf16.gmra.mrb[92].mxu1 %v8551_v50  ;;  %v7940_v50 = vld [vmem:[%s10794_s2 + $0x260] ss:$16 sps:$4 sm:$0xff]  }
  0xf6   :  { %6715 = vmatprep.mubr.msk.bf16.mxu1 %vm853_vm0, %v8562_v53  ;;  %v7942_v53 = vld [vmem:[%s10794_s2 + $0x264] ss:$16 sps:$4 sm:$0xff]   ;;  %2917 = vmatpush1.bf16.msra.mxu1 %v7949_v26 }
  0xf7   :  { %2741 = vmatprep.subr.bf16.mxu0 %v7942_v53  ;;  %2918 = vmatprep.subr.bf16.mxu1 %v7957_v19  ;;  %v7973_v19 = vld [vmem:[%s10794_s2 + $0x308] ss:$16 sps:$4 sm:$0xff]  }
  0xf8   :  { %2742 = vmatpush1.bf16.msra.mxu0 %v7940_v50 }
  0xfa   :  { %2919 = vmatpush1.bf16.msra.mxu1 %v7955_v16 }
  0xfb   :  { %2920 = vmatprep.subr.bf16.mxu1 %v7963_v48 }
  0xfd   :  { %1478 = vmatmul.mubr.bf16.gmra.mrb[96].mxu1 %v8601_v9  ;;  %v7946_v9 = vld [vmem:[%s10794_s2 + $0x280] ss:$16 sps:$4 sm:$0xff]  }
  0xfe   :  { %6716 = vmatprep.mubr.msk.bf16.mxu1 %vm853_vm0, %v8612_v13  ;;  %v7948_v13 = vld [vmem:[%s10794_s2 + $0x284] ss:$16 sps:$4 sm:$0xff]   ;;  %2921 = vmatpush1.bf16.msra.mxu1 %v7961_v47 }
  0xff   :  { %2743 = vmatprep.subr.bf16.mxu0 %v7948_v13  ;;  %2922 = vmatprep.subr.bf16.mxu1 %v7969_v22  ;;  %v8275_v22 = vmov 0.0   ;;  %v7996_v13 = vld [vmem:[%s10794_s2 + $0x384] ss:$16 sps:$4 sm:$0xff]  }
 0x100   :  { %2744 = vmatpush1.bf16.msra.mxu0 %v7946_v9  ;;  %1930 = vst [vmem:[#allocation2 + $0x1c8] sm:$0xff] %v8275_v22  ;;  %1929 = vst [vmem:[#allocation2 + $0x1c0] sm:$0xff] %v8275_v22 }
 0x101   :  { %2745 = vmatprep.subr.bf16.mxu0 %v7954_v14  ;;  %v8263_v14 = vld [vmem:[%s10793_s0 + $0x90] ss:$8 sps:$4 sm:$0xff]   ;;  %4888 = vst [vmem:[#allocation3 + $0xe0] sm:$0xff] %v8275_v22 }
 0x102   :  { %2923 = vmatpush1.bf16.msra.mxu1 %v7967_v11  ;;  %v8266_v11 = vld [vmem:[%s10793_s0 + $0xb4] ss:$8 sps:$4 sm:$0xff]   ;;  %v7988_v22 = vld [vmem:[%s10794_s2 + $0x360] ss:$16 sps:$4 sm:$0xff]  }
 0x104   :  { %2746 = vmatpush1.bf16.msra.mxu0 %v7952_v12  ;;  %v7972_v12 = vld [vmem:[%s10794_s2 + $0x304] ss:$16 sps:$4 sm:$0xff]  }
 0x105   :  { %1488 = vmatmul.mubr.bf16.gmra.mrb[100].mxu1 %v8651_v36  ;;  %2747 = vmatprep.subr.bf16.mxu0 %v7960_v42 }
 0x106   :  { %6717 = vmatprep.mubr.msk.bf16.mxu1 %vm853_vm0, %v8662_v39 }
 0x108   :  { %2748 = vmatpush1.bf16.msra.mxu0 %v7958_v41  ;;  %v8264_v41 = vld [vmem:[%s10793_s0 + $0xa4] ss:$8 sps:$4 sm:$0xff]  }
 0x109   :  { %2749 = vmatprep.subr.bf16.mxu0 %v7966_v2 }
 0x10c   :  { %2750 = vmatpush1.bf16.msra.mxu0 %v7964_v35 }
 0x10d   :  { %1498 = vmatmul.mubr.bf16.gmra.mrb[104].mxu1 %v8701_v60  ;;  %2751 = vmatprep.subr.bf16.mxu0 %v7972_v12  ;;  %v7978_v12 = vld [vmem:[%s10794_s2 + $0x324] ss:$16 sps:$4 sm:$0xff]  }
 0x10e   :  { %6718 = vmatprep.mubr.msk.bf16.mxu1 %vm853_vm0, %v8712_v0 }
 0x110   :  { %v8998_v36 = vpop.f32.mrb[0].mxu1  ;;  %v9006_v60 = vpop.f32.mrb[0].mxu0  ;;  %2752 = vmatpush1.bf16.msra.mxu0 %v7970_v30  ;;  %v7976_v30 = vld [vmem:[%s10794_s2 + $0x320] ss:$16 sps:$4 sm:$0xff]  }
 0x111   :  { %v9000_v39 = vpop.f32.mrb[1].mxu1  ;;  %v9010_v6 = vpop.f32.mrb[1].mxu0  ;;  %2753 = vmatprep.subr.bf16.mxu0 %v7978_v12 }
 0x112   :  { %v9004_v56 = vpop.f32.mrb[2].mxu1  ;;  %v9016_v10 = vpop.f32.mrb[2].mxu0 }
 0x113   :  { %v9008_v18 = vpop.f32.mrb[3].mxu1  ;;  %v9025_v15 = vpop.f32.mrb[3].mxu0 }
 0x114   :  { %2754 = vmatpush1.bf16.msra.mxu0 %v7976_v30  ;;  %v7984_v30 = vld [vmem:[%s10794_s2 + $0x344] ss:$16 sps:$4 sm:$0xff]  }
 0x115   :  { %1508 = vmatmul.mubr.bf16.gmra.mrb[108].mxu1 %v8746_v27  ;;  %2755 = vmatprep.subr.bf16.mxu0 %v7984_v30  ;;  %v7994_v30 = vld [vmem:[%s10794_s2 + $0x380] ss:$16 sps:$4 sm:$0xff]  }
 0x116   :  { %6719 = vmatprep.mubr.msk.bf16.mxu1 %vm853_vm0, %v8258_v20  ;;  %v7975_v20 = vld [vmem:[%s10794_s2 + $0x30c] ss:$16 sps:$4 sm:$0xff]  }
 0x117   :  { %2924 = vmatprep.subr.bf16.mxu1 %v7975_v20  ;;  %v7979_v20 = vld [vmem:[%s10794_s2 + $0x328] ss:$16 sps:$4 sm:$0xff]  }
 0x118   :  { %v9039_v27 = vpop.f32.mrb[4].mxu1  ;;  %2925 = vmatpush1.bf16.msra.mxu1 %v7973_v19 }
 0x119   :  { %v9041_v23 = vpop.f32.mrb[5].mxu1 }
 0x11a   :  { %v9045_v28 = vpop.f32.mrb[6].mxu1  ;;  %v9047_v31 = vpop.f32.mrb[4].mxu0 }
 0x11b   :  { %v9049_v33 = vpop.f32.mrb[7].mxu1  ;;  %v9051_v34 = vpop.f32.mrb[5].mxu0 }
 0x11c   :  { %v9057_v40 = vpop.f32.mrb[6].mxu0 }
 0x11d   :  { %1518 = vmatmul.mubr.bf16.gmra.mrb[112].mxu1 %v8259_v44  ;;  %v9068_v45 = vpop.f32.mrb[7].mxu0 }
 0x11e   :  { %6720 = vmatprep.mubr.msk.bf16.mxu1 %vm853_vm0, %v8260_v49 }
 0x120   :  { %v9082_v54 = vpop.f32.mrb[8].mxu1 }
 0x121   :  { %v9084_v55 = vpop.f32.mrb[9].mxu1 }
 0x122   :  { %v9088_v58 = vpop.f32.mrb[10].mxu1  ;;  %v9090_v59 = vpop.f32.mrb[8].mxu0 }
 0x123   :  { %v9092_v61 = vpop.f32.mrb[11].mxu1  ;;  %v9094_v62 = vpop.f32.mrb[9].mxu0 }
 0x124   :  { %v9100_v17 = vpop.f32.mrb[10].mxu0 }
 0x125   :  { %1528 = vmatmul.mubr.bf16.gmra.mrb[116].mxu1 %v8261_v4  ;;  %v9111_v8 = vpop.f32.mrb[11].mxu0 }
 0x126   :  { %6721 = vmatprep.mubr.msk.bf16.mxu1 %vm853_vm0, %v8262_v25 }
 0x128   :  { %v9125_v32 = vpop.f32.mrb[12].mxu1 }
 0x129   :  { %v9127_v43 = vpop.f32.mrb[13].mxu1 }
 0x12a   :  { %v9131_v50 = vpop.f32.mrb[14].mxu1  ;;  %v9133_v53 = vpop.f32.mrb[12].mxu0 }
 0x12b   :  { %v9135_v63 = vpop.f32.mrb[15].mxu1  ;;  %v9137_v3 = vpop.f32.mrb[13].mxu0 }
 0x12c   :  { %v9143_v26 = vpop.f32.mrb[14].mxu0 }
 0x12d   :  { %1538 = vmatmul.mubr.bf16.gmra.mrb[120].mxu1 %v8263_v14  ;;  %v9154_v16 = vpop.f32.mrb[15].mxu0  ;;  %v8265_v14 = vld [vmem:[%s10793_s0 + $0xa0] ss:$8 sps:$4 sm:$0xff]  }
 0x12e   :  { %6722 = vmatprep.mubr.msk.bf16.mxu1 %vm853_vm0, %v8264_v41  ;;  %v7981_v41 = vld [vmem:[%s10794_s2 + $0x32c] ss:$16 sps:$4 sm:$0xff]  }
 0x12f   :  { %2926 = vmatprep.subr.bf16.mxu1 %v7981_v41  ;;  %v7985_v41 = vld [vmem:[%s10794_s2 + $0x348] ss:$16 sps:$4 sm:$0xff]  }
 0x130   :  { %v9168_v44 = vpop.f32.mrb[16].mxu1  ;;  %2927 = vmatpush1.bf16.msra.mxu1 %v7979_v20 }
 0x131   :  { %v9170_v47 = vpop.f32.mrb[17].mxu1  ;;  %2928 = vmatprep.subr.bf16.mxu1 %v7987_v46  ;;  %v7993_v46 = vld [vmem:[%s10794_s2 + $0x36c] ss:$16 sps:$4 sm:$0xff]  }
 0x132   :  { %v9174_v49 = vpop.f32.mrb[18].mxu1  ;;  %v9176_v35 = vpop.f32.mrb[16].mxu0 }
 0x133   :  { %10822 = vst [vmem:[#allocation4_spill] sm:$0xff] %v9174_v49  ;;  %v9178_v2 = vpop.f32.mrb[19].mxu1  ;;  %v9180_v4 = vpop.f32.mrb[17].mxu0 }
 0x134   :  { %10823 = vst [vmem:[#allocation5_spill] sm:$0xff] %v9178_v2  ;;  %v9186_v25 = vpop.f32.mrb[18].mxu0  ;;  %2929 = vmatpush1.bf16.msra.mxu1 %v7985_v41 }
 0x135   :  { %1548 = vmatmul.mubr.bf16.gmra.mrb[124].mxu1 %v8265_v14  ;;  %v9197_v19 = vpop.f32.mrb[19].mxu0  ;;  %2930 = vmatprep.subr.bf16.mxu1 %v7993_v46 }
 0x136   :  { %6723 = vmatprep.mubr.msk.bf16.mxu1 %vm853_vm0, %v8266_v11  ;;  %v7982_v11 = vld [vmem:[%s10794_s2 + $0x340] ss:$16 sps:$4 sm:$0xff]  }
 0x137   :  { %2756 = vmatpush1.bf16.msra.mxu0 %v7982_v11 }
 0x138   :  { %v9211_v14 = vpop.f32.mrb[20].mxu1 }
 0x139   :  { %10824 = vst [vmem:[#allocation6_spill] sm:$0xff] %v9211_v14  ;;  %v9213_v9 = vpop.f32.mrb[21].mxu1 }
 0x13a   :  { %10825 = vst [vmem:[#allocation7_spill] sm:$0xff] %v9213_v9  ;;  %v9217_v1 = vpop.f32.mrb[22].mxu1  ;;  %v9219_v57 = vpop.f32.mrb[20].mxu0 }
 0x13b   :  { %10826 = vst [vmem:[#allocation8_spill] sm:$0xff] %v9217_v1  ;;  %v9227_v12 = vpop.f32.mrb[23].mxu1  ;;  %v9229_v20 = vpop.f32.mrb[21].mxu0 }
 0x13c   :  { %10827 = vst [vmem:[#allocation9_spill] sm:$0xff] %v9227_v12  ;;  %v9241_v0 = vpop.f32.mrb[22].mxu0 }
 0x13d   :  { %1558 = vmatmul.mubr.bf16.gmra.mrb[128].mxu1 %v8267_v52  ;;  %v9246_v48 = vpop.f32.mrb[23].mxu0  ;;  %v7990_v52 = vld [vmem:[%s10794_s2 + $0x364] ss:$16 sps:$4 sm:$0xff]  }
 0x13e   :  { %6724 = vmatprep.mubr.msk.bf16.mxu1 %vm853_vm0, %v8268_v37  ;;  %v7991_v37 = vld [vmem:[%s10794_s2 + $0x368] ss:$16 sps:$4 sm:$0xff]   ;;  %2757 = vmatprep.subr.bf16.mxu0 %v7990_v52 }
 0x13f   :  { %2758 = vmatpush1.bf16.msra.mxu0 %v7988_v22  ;;  %2931 = vmatpush1.bf16.msra.mxu1 %v7991_v37  ;;  %v7997_v22 = vld [vmem:[%s10794_s2 + $0x388] ss:$16 sps:$4 sm:$0xff]  }
 0x140   :  { %v9266_v24 = vpop.f32.mrb[24].mxu1  ;;  %2759 = vmatprep.subr.bf16.mxu0 %v7996_v13  ;;  %2932 = vmatprep.subr.bf16.mxu1 %v7999_v29  ;;  %v8269_v37 = vld [vmem:[%s10793_s0 + $0xc0] ss:$8 sps:$4 sm:$0xff]   ;;  %v8002_v29 = vld [vmem:[%s10794_s2 + $0x3a4] ss:$16 sps:$4 sm:$0xff]  }
 0x141   :  { %10828 = vst [vmem:[#allocation10_spill] sm:$0xff] %v9266_v24  ;;  %v9268_v11 = vpop.f32.mrb[25].mxu1  ;;  %v8005_v13 = vld [vmem:[%s10794_s2 + $0x3ac] ss:$16 sps:$4 sm:$0xff]  }
 0x142   :  { %10829 = vst [vmem:[#allocation11_spill] sm:$0xff] %v9268_v11  ;;  %v9272_v42 = vpop.f32.mrb[26].mxu1  ;;  %v9274_v41 = vpop.f32.mrb[24].mxu0  ;;  %v8008_v11 = vld [vmem:[%s10794_s2 + $0x3c4] ss:$16 sps:$4 sm:$0xff]  }
 0x143   :  { %10830 = vst [vmem:[#allocation12_spill] sm:$0xff] %v9272_v42  ;;  %v9282_v52 = vpop.f32.mrb[27].mxu1  ;;  %v9284_v46 = vpop.f32.mrb[25].mxu0  ;;  %2760 = vmatpush1.bf16.msra.mxu0 %v7994_v30  ;;  %2933 = vmatpush1.bf16.msra.mxu1 %v7997_v22 }
 0x144   :  { %10831 = vst [vmem:[#allocation13_spill] sm:$0xff] %v9282_v52  ;;  %v9296_v38 = vpop.f32.mrb[26].mxu0  ;;  %2761 = vmatprep.subr.bf16.mxu0 %v8002_v29  ;;  %2934 = vmatprep.subr.bf16.mxu1 %v8005_v13  ;;  %v8011_v29 = vld [vmem:[%s10794_s2 + $0x3cc] ss:$16 sps:$4 sm:$0xff]  }
 0x145   :  { %1568 = vmatmul.mubr.bf16.gmra.mrb[132].mxu1 %v8269_v37  ;;  %v9301_v21 = vpop.f32.mrb[27].mxu0  ;;  %v8000_v37 = vld [vmem:[%s10794_s2 + $0x3a0] ss:$16 sps:$4 sm:$0xff]  }
 0x146   :  { %6725 = vmatprep.mubr.msk.bf16.mxu1 %vm853_vm0, %v8270_v7  ;;  %v8003_v7 = vld [vmem:[%s10794_s2 + $0x3a8] ss:$16 sps:$4 sm:$0xff]  }
 0x147   :  { %2762 = vmatpush1.bf16.msra.mxu0 %v8000_v37  ;;  %2935 = vmatpush1.bf16.msra.mxu1 %v8003_v7  ;;  %v8009_v37 = vld [vmem:[%s10794_s2 + $0x3c8] ss:$16 sps:$4 sm:$0xff]  }
 0x148   :  { %v1103_v51 = vpop.f32.mrb[28].mxu1  ;;  %2763 = vmatprep.subr.bf16.mxu0 %v8008_v11  ;;  %2936 = vmatprep.subr.bf16.mxu1 %v8011_v29  ;;  %v8271_v7 = vld [vmem:[%s10793_s0 + $0xd0] ss:$8 sps:$4 sm:$0xff]   ;;  %v8014_v11 = vld [vmem:[%s10794_s2 + $0x3e4] ss:$16 sps:$4 sm:$0xff]  }
 0x149   :  { %v1105_v30 = vpop.f32.mrb[29].mxu1 }
 0x14a   :  { %v1616_v52 = vmax.f32 %v1103_v51, %v1105_v30  ;;  %v1107_v42 = vpop.f32.mrb[30].mxu1  ;;  %v9326_v22 = vpop.f32.mrb[28].mxu0  ;;  %v8006_v51 = vld [vmem:[%s10794_s2 + $0x3c0] ss:$16 sps:$4 sm:$0xff]   ;;  %v10832_v30 = vmax.f32 %v9006_v60, %v9010_v6  ;;  %v10833_v60 = vmax.f32 %v9016_v10, %v9025_v15  ;;  %v8015_v10 = vld [vmem:[%s10794_s2 + $0x3e8] ss:$16 sps:$4 sm:$0xff]  }
 0x14b   :  { %v1109_v13 = vpop.f32.mrb[31].mxu1  ;;  %v9334_v24 = vpop.f32.mrb[29].mxu0  ;;  %2764 = vmatpush1.bf16.msra.mxu0 %v8006_v51  ;;  %2937 = vmatpush1.bf16.msra.mxu1 %v8009_v37 }
 0x14c   :  { %v1644_v12 = vmax.f32 %v10832_v30, %v1616_v52  ;;  %v1617_v1 = vmax.f32 %v1107_v42, %v1109_v13  ;;  %v9347_v14 = vpop.f32.mrb[30].mxu0  ;;  %v8017_v52 = vld [vmem:[%s10794_s2 + $0x3ec] ss:$16 sps:$4 sm:$0xff]   ;;  %2765 = vmatprep.subr.bf16.mxu0 %v8014_v11 }
 0x14d   :  { %1578 = vmatmul.mubr.bf16.gmra.mrb[136].mxu1 %v8271_v7  ;;  %v9352_v2 = vpop.f32.mrb[31].mxu0  ;;  %2938 = vmatprep.subr.bf16.mxu1 %v8017_v52 }
 0x14e   :  { %v1761_v49 = vadd.f32 %v9324_v5, %v1644_v12  ;;  %v1645_v6 = vmax.f32 %v10833_v60, %v1617_v1  ;;  %v8012_v12 = vld [vmem:[%s10794_s2 + $0x3e0] ss:$16 sps:$4 sm:$0xff]  }
 0x14f   :  { %2766 = vmatpush1.bf16.msra.mxu0 %v8012_v12  ;;  %2939 = vmatpush1.bf16.msra.mxu1 %v8015_v10  ;;  %v10835_v12 = vmax.f32 %v9057_v40, %v9068_v45  ;;  %v10837_v40 = vmax.f32 %v9090_v59, %v9094_v62 }
 0x150   :  { %v1789_v15 = vmax.f32 %v1761_v49, 0.0  ;;  %v1762_v1 = vadd.f32 %v9324_v5, %v1645_v6  ;;  %v1113_v29 = vpop.f32.mrb[32].mxu1  ;;  %v10834_v49 = vmax.f32 %v9047_v31, %v9051_v34 }
 0x151   :  { %v1115_v13 = vpop.f32.mrb[33].mxu1 }
 0x152   :  { %1817 = vst [vmem:[#allocation2] sm:$0xff] %v1789_v15  ;;  %v1790_v51 = vmax.f32 %v1762_v1, 0.0  ;;  %v1618_v30 = vmax.f32 %v1113_v29, %v1115_v13  ;;  %v1117_v7 = vpop.f32.mrb[34].mxu1  ;;  %v9373_v37 = vpop.f32.mrb[32].mxu0 }
 0x153   :  { %v1119_v60 = vpop.f32.mrb[35].mxu1  ;;  %v9375_v42 = vpop.f32.mrb[33].mxu0 }
 0x154   :  { %1818 = vst [vmem:[#allocation2 + $0x10] sm:$0xff] %v1790_v51  ;;  %v1646_v6 = vmax.f32 %v10834_v49, %v1618_v30  ;;  %v1619_v9 = vmax.f32 %v1117_v7, %v1119_v60  ;;  %v9382_v52 = vpop.f32.mrb[34].mxu0 }
 0x155   :  { %v9384_v15 = vpop.f32.mrb[35].mxu0 }
 0x156   :  { %v1763_v1 = vadd.f32 %v9324_v5, %v1646_v6  ;;  %v1647_v29 = vmax.f32 %v10835_v12, %v1619_v9 }
 0x158   :  { %v1791_v13 = vmax.f32 %v1763_v1, 0.0  ;;  %v9393_v31 = vadd.f32 %v9324_v5, %v1647_v29  ;;  %v1123_v34 = vpop.f32.mrb[36].mxu1 }
 0x159   :  { %v1125_v51 = vpop.f32.mrb[37].mxu1 }
 0x15a   :  { %1819 = vst [vmem:[#allocation2 + $0x20] sm:$0xff] %v1791_v13  ;;  %v1620_v7 = vmax.f32 %v1123_v34, %v1125_v51  ;;  %v1127_v60 = vpop.f32.mrb[38].mxu1  ;;  %v9396_v49 = vpop.f32.mrb[36].mxu0  ;;  %v10838_v34 = vmax.f32 %v9100_v17, %v9111_v8  ;;  %v10841_v17 = vmax.f32 %v9133_v53, %v9137_v3  ;;  %v10842_v53 = vmax.f32 %v9143_v26, %v9154_v16 }
 0x15b   :  { %v1129_v6 = vpop.f32.mrb[39].mxu1  ;;  %v9398_v11 = vpop.f32.mrb[37].mxu0  ;;  %v10843_v26 = vmax.f32 %v9176_v35, %v9180_v4 }
 0x15c   :  { %10836 = vst [vmem:[#allocation14_spill] sm:$0xff] %v9398_v11  ;;  %v1648_v45 = vmax.f32 %v10837_v40, %v1620_v7  ;;  %v1621_v9 = vmax.f32 %v1127_v60, %v1129_v6  ;;  %v9405_v12 = vpop.f32.mrb[38].mxu0 }
 0x15d   :  { %v9407_v29 = vpop.f32.mrb[39].mxu0 }
 0x15e   :  { %v1765_v13 = vadd.f32 %v9324_v5, %v1648_v45  ;;  %v1649_v51 = vmax.f32 %v10838_v34, %v1621_v9 }
 0x160   :  { %v1793_v10 = vmax.f32 %v1765_v13, 0.0  ;;  %v1766_v59 = vadd.f32 %v9324_v5, %v1649_v51  ;;  %v1133_v62 = vpop.f32.mrb[40].mxu1 }
 0x161   :  { %v1135_v7 = vpop.f32.mrb[41].mxu1 }
 0x162   :  { %1821 = vst [vmem:[#allocation2 + $0x40] sm:$0xff] %v1793_v10  ;;  %v1794_v60 = vmax.f32 %v1766_v59, 0.0  ;;  %v1622_v6 = vmax.f32 %v1133_v62, %v1135_v7  ;;  %v1137_v40 = vpop.f32.mrb[42].mxu1  ;;  %v9416_v1 = vpop.f32.mrb[40].mxu0  ;;  %v8020_v10 = vld [vmem:[%s10794_s2 + $0x4] ss:$16 sps:$4 sm:$0xff]  }
 0x163   :  { %10839 = vst [vmem:[#allocation15_spill] sm:$0xff] %v9416_v1  ;;  %v1139_v11 = vpop.f32.mrb[43].mxu1  ;;  %v9418_v45 = vpop.f32.mrb[41].mxu0  ;;  %v8023_v59 = vld [vmem:[%s10794_s2 + $0xc] ss:$16 sps:$4 sm:$0xff]   ;;  %3401 = vmatprep.subr.bf16.mxu0 %v8020_v10 }
 0x164   :  { %10840 = vst [vmem:[#allocation16_spill] sm:$0xff] %v9418_v45  ;;  %1822 = vst [vmem:[#allocation2 + $0x50] sm:$0xff] %v1794_v60  ;;  %v1650_v8 = vmax.f32 %v10841_v17, %v1622_v6  ;;  %v1623_v9 = vmax.f32 %v1137_v40, %v1139_v11  ;;  %v9425_v34 = vpop.f32.mrb[42].mxu0  ;;  %3574 = vmatprep.subr.bf16.mxu1 %v8023_v59 }
 0x165   :  { %v9430_v51 = vpop.f32.mrb[43].mxu0 }
 0x166   :  { %v1767_v62 = vadd.f32 %v9324_v5, %v1650_v8  ;;  %v1651_v3 = vmax.f32 %v10842_v53, %v1623_v9 }
 0x168   :  { %v1795_v7 = vmax.f32 %v1767_v62, 0.0  ;;  %v1768_v60 = vadd.f32 %v9324_v5, %v1651_v3  ;;  %v1143_v6 = vpop.f32.mrb[44].mxu1  ;;  %v10844_v3 = vmax.f32 %v9186_v25, %v9197_v19  ;;  %v10845_v25 = vmax.f32 %v9219_v57, %v9229_v20 }
 0x169   :  { %v1145_v40 = vpop.f32.mrb[45].mxu1 }
 0x16a   :  { %1823 = vst [vmem:[#allocation2 + $0x60] sm:$0xff] %v1795_v7  ;;  %v1796_v17 = vmax.f32 %v1768_v60, 0.0  ;;  %v1624_v13 = vmax.f32 %v1143_v6, %v1145_v40  ;;  %v1147_v30 = vpop.f32.mrb[46].mxu1  ;;  %v9442_v45 = vpop.f32.mrb[44].mxu0 }
 0x16b   :  { %v1149_v8 = vpop.f32.mrb[47].mxu1  ;;  %v9444_v1 = vpop.f32.mrb[45].mxu0 }
 0x16c   :  { %1824 = vst [vmem:[#allocation2 + $0x70] sm:$0xff] %v1796_v17  ;;  %v1652_v16 = vmax.f32 %v10843_v26, %v1624_v13  ;;  %v1625_v9 = vmax.f32 %v1147_v30, %v1149_v8  ;;  %v9451_v59 = vpop.f32.mrb[46].mxu0 }
 0x16d   :  { %v9453_v62 = vpop.f32.mrb[47].mxu0 }
 0x16e   :  { %v1769_v53 = vadd.f32 %v9324_v5, %v1652_v16  ;;  %v1653_v7 = vmax.f32 %v10844_v3, %v1625_v9 }
 0x170   :  { %v1797_v6 = vmax.f32 %v1769_v53, 0.0  ;;  %v1770_v35 = vadd.f32 %v9324_v5, %v1653_v7  ;;  %v1153_v4 = vpop.f32.mrb[48].mxu1 }
 0x171   :  { %v1155_v30 = vpop.f32.mrb[49].mxu1 }
 0x172   :  { %1825 = vst [vmem:[#allocation2 + $0x80] sm:$0xff] %v1797_v6  ;;  %v1798_v13 = vmax.f32 %v1770_v35, 0.0  ;;  %v1626_v40 = vmax.f32 %v1153_v4, %v1155_v30  ;;  %v1157_v17 = vpop.f32.mrb[50].mxu1  ;;  %v9462_v8 = vpop.f32.mrb[48].mxu0  ;;  %v10846_v35 = vmax.f32 %v9241_v0, %v9246_v48  ;;  %v10847_v0 = vmax.f32 %v9274_v41, %v9284_v46 }
 0x173   :  { %v1159_v26 = vpop.f32.mrb[51].mxu1  ;;  %v9464_v16 = vpop.f32.mrb[49].mxu0 }
 0x174   :  { %1826 = vst [vmem:[#allocation2 + $0x90] sm:$0xff] %v1798_v13  ;;  %v1654_v19 = vmax.f32 %v10845_v25, %v1626_v40  ;;  %v1627_v9 = vmax.f32 %v1157_v17, %v1159_v26  ;;  %v9471_v3 = vpop.f32.mrb[50].mxu0 }
 0x175   :  { %v9473_v7 = vpop.f32.mrb[51].mxu0 }
 0x176   :  { %v1771_v6 = vadd.f32 %v9324_v5, %v1654_v19  ;;  %v1655_v4 = vmax.f32 %v10846_v35, %v1627_v9 }
 0x178   :  { %v1799_v13 = vmax.f32 %v1771_v6, 0.0  ;;  %v1772_v57 = vadd.f32 %v9324_v5, %v1655_v4  ;;  %v1163_v20 = vpop.f32.mrb[52].mxu1 }
 0x179   :  { %v1165_v40 = vpop.f32.mrb[53].mxu1 }
 0x17a   :  { %1827 = vst [vmem:[#allocation2 + $0xa0] sm:$0xff] %v1799_v13  ;;  %v1800_v17 = vmax.f32 %v1772_v57, 0.0  ;;  %v1628_v26 = vmax.f32 %v1163_v20, %v1165_v40  ;;  %v1167_v25 = vpop.f32.mrb[54].mxu1  ;;  %v9482_v53 = vpop.f32.mrb[52].mxu0  ;;  %v10848_v57 = vmax.f32 %v9296_v38, %v9301_v21  ;;  %v10849_v21 = vmax.f32 %v8998_v36, %v9000_v39 }
 0x17b   :  { %v1169_v60 = vpop.f32.mrb[55].mxu1  ;;  %v9484_v19 = vpop.f32.mrb[53].mxu0 }
 0x17c   :  { %1828 = vst [vmem:[#allocation2 + $0xb0] sm:$0xff] %v1800_v17  ;;  %v1656_v48 = vmax.f32 %v10847_v0, %v1628_v26  ;;  %v1629_v9 = vmax.f32 %v1167_v25, %v1169_v60  ;;  %v9491_v35 = vpop.f32.mrb[54].mxu0 }
 0x17d   :  { %v9493_v4 = vpop.f32.mrb[55].mxu0 }
 0x17e   :  { %v1773_v13 = vadd.f32 %v9324_v5, %v1656_v48  ;;  %v1657_v20 = vmax.f32 %v10848_v57, %v1629_v9 }
 0x180   :  { %v1801_v17 = vmax.f32 %v1773_v13, 0.0  ;;  %v1774_v41 = vadd.f32 %v9324_v5, %v1657_v20  ;;  %v1173_v46 = vpop.f32.mrb[56].mxu1 }
 0x181   :  { %v1175_v60 = vpop.f32.mrb[57].mxu1 }
 0x182   :  { %1829 = vst [vmem:[#allocation2 + $0xc0] sm:$0xff] %v1801_v17  ;;  %v1802_v26 = vmax.f32 %v1774_v41, 0.0  ;;  %v1630_v25 = vmax.f32 %v1173_v46, %v1175_v60  ;;  %v1177_v0 = vpop.f32.mrb[58].mxu1  ;;  %v9502_v6 = vpop.f32.mrb[56].mxu0  ;;  %v10850_v41 = vmax.f32 %v9004_v56, %v9008_v18  ;;  %v10851_v56 = vmax.f32 %v9039_v27, %v9041_v23 }
 0x183   :  { %v1179_v30 = vpop.f32.mrb[59].mxu1  ;;  %v9504_v48 = vpop.f32.mrb[57].mxu0 }
 0x184   :  { %1830 = vst [vmem:[#allocation2 + $0xd0] sm:$0xff] %v1802_v26  ;;  %v1658_v38 = vmax.f32 %v10849_v21, %v1630_v25  ;;  %v1631_v9 = vmax.f32 %v1177_v0, %v1179_v30  ;;  %v9511_v57 = vpop.f32.mrb[58].mxu0 }
 0x185   :  { %v9513_v20 = vpop.f32.mrb[59].mxu0 }
 0x186   :  { %v1775_v17 = vadd.f32 %v9324_v5, %v1658_v38  ;;  %v1659_v46 = vmax.f32 %v10850_v41, %v1631_v9 }
 0x188   :  { %v1803_v26 = vmax.f32 %v1775_v17, 0.0  ;;  %v1776_v36 = vadd.f32 %v9324_v5, %v1659_v46  ;;  %v1183_v39 = vpop.f32.mrb[60].mxu1 }
 0x189   :  { %v1185_v30 = vpop.f32.mrb[61].mxu1 }
 0x18a   :  { %1831 = vst [vmem:[#allocation2 + $0xe0] sm:$0xff] %v1803_v26  ;;  %v1804_v25 = vmax.f32 %v1776_v36, 0.0  ;;  %v1632_v0 = vmax.f32 %v1183_v39, %v1185_v30  ;;  %v1187_v21 = vpop.f32.mrb[62].mxu1  ;;  %v9522_v13 = vpop.f32.mrb[60].mxu0  ;;  %v10852_v36 = vmax.f32 %v9045_v28, %v9049_v33  ;;  %v10853_v28 = vmax.f32 %v9082_v54, %v9084_v55 }
 0x18b   :  { %v1189_v40 = vpop.f32.mrb[63].mxu1  ;;  %v9524_v38 = vpop.f32.mrb[61].mxu0 }
 0x18c   :  { %1832 = vst [vmem:[#allocation2 + $0xf0] sm:$0xff] %v1804_v25  ;;  %v1660_v18 = vmax.f32 %v10851_v56, %v1632_v0  ;;  %v1633_v9 = vmax.f32 %v1187_v21, %v1189_v40  ;;  %v9531_v41 = vpop.f32.mrb[62].mxu0 }
 0x18d   :  { %v9533_v46 = vpop.f32.mrb[63].mxu0 }
 0x18e   :  { %v1777_v26 = vadd.f32 %v9324_v5, %v1660_v18  ;;  %v1661_v39 = vmax.f32 %v10852_v36, %v1633_v9 }
 0x190   :  { %v1805_v25 = vmax.f32 %v1777_v26, 0.0  ;;  %v1778_v27 = vadd.f32 %v9324_v5, %v1661_v39  ;;  %v1193_v23 = vpop.f32.mrb[64].mxu1 }
 0x191   :  { %v1195_v40 = vpop.f32.mrb[65].mxu1 }
 0x192   :  { %1833 = vst [vmem:[#allocation2 + $0x100] sm:$0xff] %v1805_v25  ;;  %v1806_v0 = vmax.f32 %v1778_v27, 0.0  ;;  %v1634_v21 = vmax.f32 %v1193_v23, %v1195_v40  ;;  %v1197_v56 = vpop.f32.mrb[66].mxu1  ;;  %v9542_v17 = vpop.f32.mrb[64].mxu0  ;;  %v10854_v27 = vmax.f32 %v9088_v58, %v9092_v61  ;;  %v10855_v58 = vmax.f32 %v9125_v32, %v9127_v43 }
 0x193   :  { %v1199_v60 = vpop.f32.mrb[67].mxu1  ;;  %v9544_v18 = vpop.f32.mrb[65].mxu0 }
 0x194   :  { %1834 = vst [vmem:[#allocation2 + $0x110] sm:$0xff] %v1806_v0  ;;  %v1662_v33 = vmax.f32 %v10853_v28, %v1634_v21  ;;  %v1635_v9 = vmax.f32 %v1197_v56, %v1199_v60  ;;  %v9551_v36 = vpop.f32.mrb[66].mxu0 }
 0x195   :  { %v9553_v39 = vpop.f32.mrb[67].mxu0 }
 0x196   :  { %v1779_v25 = vadd.f32 %v9324_v5, %v1662_v33  ;;  %v1663_v23 = vmax.f32 %v10854_v27, %v1635_v9 }
 0x198   :  { %v1807_v0 = vmax.f32 %v1779_v25, 0.0  ;;  %v1780_v54 = vadd.f32 %v9324_v5, %v1663_v23  ;;  %v1203_v55 = vpop.f32.mrb[68].mxu1 }
 0x199   :  { %v1205_v60 = vpop.f32.mrb[69].mxu1 }
 0x19a   :  { %1835 = vst [vmem:[#allocation2 + $0x120] sm:$0xff] %v1807_v0  ;;  %v1808_v21 = vmax.f32 %v1780_v54, 0.0  ;;  %v1636_v56 = vmax.f32 %v1203_v55, %v1205_v60  ;;  %v1207_v28 = vpop.f32.mrb[70].mxu1  ;;  %v9562_v26 = vpop.f32.mrb[68].mxu0  ;;  %v10856_v54 = vmax.f32 %v9131_v50, %v9135_v63  ;;  %v10858_v50 = vmax.f32 %v9168_v44, %v9170_v47 }
 0x19b   :  { %v1209_v30 = vpop.f32.mrb[71].mxu1  ;;  %v9564_v33 = vpop.f32.mrb[69].mxu0 }
 0x19c   :  { %1836 = vst [vmem:[#allocation2 + $0x130] sm:$0xff] %v1808_v21  ;;  %v1664_v61 = vmax.f32 %v10855_v58, %v1636_v56  ;;  %v1637_v9 = vmax.f32 %v1207_v28, %v1209_v30  ;;  %v9571_v27 = vpop.f32.mrb[70].mxu0 }
 0x19d   :  { %v9573_v23 = vpop.f32.mrb[71].mxu0 }
 0x19e   :  { %v1781_v0 = vadd.f32 %v9324_v5, %v1664_v61  ;;  %v1665_v55 = vmax.f32 %v10856_v54, %v1637_v9 }
 0x1a0   :  { %v1809_v21 = vmax.f32 %v1781_v0, 0.0  ;;  %v1782_v32 = vadd.f32 %v9324_v5, %v1665_v55  ;;  %v1213_v43 = vpop.f32.mrb[72].mxu1 }
 0x1a1   :  { %v1215_v30 = vpop.f32.mrb[73].mxu1 }
 0x1a2   :  { %1837 = vst [vmem:[#allocation2 + $0x140] sm:$0xff] %v1809_v21  ;;  %v1810_v56 = vmax.f32 %v1782_v32, 0.0  ;;  %v1638_v28 = vmax.f32 %v1213_v43, %v1215_v30  ;;  %v1217_v58 = vpop.f32.mrb[74].mxu1  ;;  %v9582_v25 = vpop.f32.mrb[72].mxu0  ;;  %v10861_v32 = vld [vmem:[#allocation4_spill] sm:$0xff]  ;;  %v10862_v43 = vld [vmem:[#allocation5_spill] sm:$0xff] }
 0x1a3   :  { %v1219_v40 = vpop.f32.mrb[75].mxu1  ;;  %v9584_v61 = vpop.f32.mrb[73].mxu0  ;;  %v10863_v30 = vmax.f32 %v10861_v32, %v10862_v43  ;;  %v10866_v32 = vld [vmem:[#allocation6_spill] sm:$0xff] }
 0x1a4   :  { %10857 = vst [vmem:[#allocation17_spill] sm:$0xff] %v9584_v61  ;;  %1838 = vst [vmem:[#allocation2 + $0x150] sm:$0xff] %v1810_v56  ;;  %v1666_v63 = vmax.f32 %v10858_v50, %v1638_v28  ;;  %v1639_v9 = vmax.f32 %v1217_v58, %v1219_v40  ;;  %v9591_v54 = vpop.f32.mrb[74].mxu0 }
 0x1a5   :  { %10859 = vst [vmem:[#allocation18_spill] sm:$0xff] %v9591_v54  ;;  %v9593_v55 = vpop.f32.mrb[75].mxu0 }
 0x1a6   :  { %10860 = vst [vmem:[#allocation19_spill] sm:$0xff] %v9593_v55  ;;  %v1783_v21 = vadd.f32 %v9324_v5, %v1666_v63  ;;  %v1667_v60 = vmax.f32 %v10863_v30, %v1639_v9  ;;  %v10867_v9 = vld [vmem:[#allocation7_spill] sm:$0xff] }
 0x1a7   :  { %v10868_v43 = vmax.f32 %v10866_v32, %v10867_v9 }
 0x1a8   :  { %v1811_v10 = vmax.f32 %v1783_v21, 0.0  ;;  %v1784_v44 = vadd.f32 %v9324_v5, %v1667_v60  ;;  %v1223_v47 = vpop.f32.mrb[76].mxu1 }
 0x1a9   :  { %v1225_v40 = vpop.f32.mrb[77].mxu1 }
 0x1aa   :  { %1839 = vst [vmem:[#allocation2 + $0x160] sm:$0xff] %v1811_v10  ;;  %v1812_v28 = vmax.f32 %v1784_v44, 0.0  ;;  %v1640_v58 = vmax.f32 %v1223_v47, %v1225_v40  ;;  %v1227_v50 = vpop.f32.mrb[78].mxu1  ;;  %v9602_v0 = vpop.f32.mrb[76].mxu0  ;;  %v10871_v47 = vld [vmem:[#allocation8_spill] sm:$0xff]  ;;  %v10872_v40 = vld [vmem:[#allocation9_spill] sm:$0xff] }
 0x1ab   :  { %10864 = vst [vmem:[#allocation4_spill] sm:$0xff] %v9602_v0  ;;  %v1229_v11 = vpop.f32.mrb[79].mxu1  ;;  %v9604_v63 = vpop.f32.mrb[77].mxu0  ;;  %v10873_v55 = vmax.f32 %v10871_v47, %v10872_v40  ;;  %v10875_v47 = vld [vmem:[#allocation10_spill] sm:$0xff] }
 0x1ac   :  { %10865 = vst [vmem:[#allocation5_spill] sm:$0xff] %v9604_v63  ;;  %1840 = vst [vmem:[#allocation2 + $0x170] sm:$0xff] %v1812_v28  ;;  %v1668_v30 = vmax.f32 %v10868_v43, %v1640_v58  ;;  %v1641_v56 = vmax.f32 %v1227_v50, %v1229_v11  ;;  %v9611_v21 = vpop.f32.mrb[78].mxu0 }
 0x1ad   :  { %10869 = vst [vmem:[#allocation6_spill] sm:$0xff] %v9611_v21  ;;  %v9613_v10 = vpop.f32.mrb[79].mxu0 }
 0x1ae   :  { %10870 = vst [vmem:[#allocation7_spill] sm:$0xff] %v9613_v10  ;;  %v1785_v44 = vadd.f32 %v9324_v5, %v1668_v30  ;;  %v1669_v54 = vmax.f32 %v10873_v55, %v1641_v56  ;;  %v10876_v55 = vld [vmem:[#allocation11_spill] sm:$0xff] }
 0x1af   :  { %v10877_v56 = vmax.f32 %v10875_v47, %v10876_v55 }
 0x1b0   :  { %v1813_v61 = vmax.f32 %v1785_v44, 0.0  ;;  %v1786_v58 = vadd.f32 %v9324_v5, %v1669_v54  ;;  %v1233_v11 = vpop.f32.mrb[80].mxu1 }
 0x1b1   :  { %v1235_v50 = vpop.f32.mrb[81].mxu1 }
 0x1b2   :  { %1841 = vst [vmem:[#allocation2 + $0x180] sm:$0xff] %v1813_v61  ;;  %v1814_v32 = vmax.f32 %v1786_v58, 0.0  ;;  %v1642_v9 = vmax.f32 %v1233_v11, %v1235_v50  ;;  %v1237_v43 = vpop.f32.mrb[82].mxu1  ;;  %v9622_v60 = vpop.f32.mrb[80].mxu0  ;;  %v10879_v11 = vld [vmem:[#allocation12_spill] sm:$0xff]  ;;  %v10880_v50 = vld [vmem:[#allocation13_spill] sm:$0xff] }
 0x1b3   :  { %v1239_v63 = vpop.f32.mrb[83].mxu1  ;;  %v9624_v30 = vpop.f32.mrb[81].mxu0  ;;  %v10881_v10 = vmax.f32 %v10879_v11, %v10880_v50 }
 0x1b4   :  { %10874 = vst [vmem:[#allocation8_spill] sm:$0xff] %v9624_v30  ;;  %1842 = vst [vmem:[#allocation2 + $0x190] sm:$0xff] %v1814_v32  ;;  %v1670_v40 = vmax.f32 %v10877_v56, %v1642_v9  ;;  %v1643_v28 = vmax.f32 %v1237_v43, %v1239_v63  ;;  %v9631_v44 = vpop.f32.mrb[82].mxu0  ;;  %v1935_v32 = vld [vmem:[#allocation2 + $0x10] sm:$0xff] }
 0x1b5   :  { %v9633_v61 = vpop.f32.mrb[83].mxu0 }
 0x1b6   :  { %10878 = vst [vmem:[#allocation9_spill] sm:$0xff] %v9633_v61  ;;  %v1787_v58 = vadd.f32 %v9324_v5, %v1670_v40  ;;  %v1671_v21 = vmax.f32 %v10881_v10, %v1643_v28  ;;  %v10882_v40 = vmax.f32 %v9326_v22, %v9334_v24  ;;  %v10883_v28 = vmax.f32 %v9347_v14, %v9352_v2  ;;  %v2081_v2 = vld [vmem:[#allocation2] sm:$0xfe] }
 0x1b7   :  { %v10884_v24 = vmax.f32 %v9373_v37, %v9375_v42  ;;  %v2085_v14 = vpack.c.bf16 %v1935_v32, %v2081_v2 }
 0x1b8   :  { %v1815_v0 = vmax.f32 %v1787_v58, 0.0  ;;  %v1788_v9 = vadd.f32 %v9324_v5, %v1671_v21  ;;  %v1449_v63 = vpop.f32.mrb[84].mxu1 }
 0x1b9   :  { %v1451_v43 = vpop.f32.mrb[85].mxu1 }
 0x1ba   :  { %1843 = vst [vmem:[#allocation2 + $0x1a0] sm:$0xff] %v1815_v0  ;;  %v1816_v47 = vmax.f32 %v1788_v9, 0.0  ;;  %v1700_v55 = vmax.f32 %v1449_v63, %v1451_v43  ;;  %v1453_v56 = vpop.f32.mrb[86].mxu1 }
 0x1bb   :  { %v1455_v54 = vpop.f32.mrb[87].mxu1 }
 0x1bc   :  { %1844 = vst [vmem:[#allocation2 + $0x1b0] sm:$0xff] %v1816_v47  ;;  %v1728_v30 = vmax.f32 %v10882_v40, %v1700_v55  ;;  %v1701_v11 = vmax.f32 %v1453_v56, %v1455_v54  ;;  %v1937_v54 = vld [vmem:[#allocation2 + $0x20] sm:$0xff]  ;;  %v10885_v56 = vmax.f32 %v9382_v52, %v9384_v15 }
 0x1bd   :  { %v10887_v52 = vld [vmem:[#allocation14_spill] sm:$0xff] }
 0x1be   :  { %v1845_v10 = vadd.f32 %v9324_v5, %v1728_v30  ;;  %v1729_v58 = vmax.f32 %v10883_v28, %v1701_v11  ;;  %v10886_v11 = vmax.f32 %v9393_v31, 0.0  ;;  %v10888_v15 = vmax.f32 %v9396_v49, %v10887_v52 }
 0x1c0   :  { %v1873_v21 = vmax.f32 %v1845_v10, 0.0  ;;  %v1846_v50 = vadd.f32 %v9324_v5, %v1729_v58  ;;  %v1459_v0 = vpop.f32.mrb[88].mxu1  ;;  %v9659_v10 = vpack.c.bf16 %v10886_v11, %v1937_v54  ;;  %v2156_v11 = vshrl.u32 %v2085_v14, 16 }
 0x1c1   :  { %v1461_v9 = vpop.f32.mrb[89].mxu1 }
 0x1c2   :  { %1901 = vst [vmem:[#allocation2 + $0x8] sm:$0xff] %v1873_v21  ;;  %v1874_v63 = vmax.f32 %v1846_v50, 0.0  ;;  %v1702_v43 = vmax.f32 %v1459_v0, %v1461_v9  ;;  %v1463_v47 = vpop.f32.mrb[90].mxu1 }
 0x1c3   :  { %v1465_v61 = vpop.f32.mrb[91].mxu1 }
 0x1c4   :  { %1902 = vst [vmem:[#allocation2 + $0x18] sm:$0xff] %v1874_v63  ;;  %v1730_v22 = vmax.f32 %v10884_v24, %v1702_v43  ;;  %v1703_v30 = vmax.f32 %v1463_v47, %v1465_v61  ;;  %v2158_v61 = vshll.u32 %v2085_v14, 16  ;;  %v2163_v47 = vshll.u32 %v9659_v10, 16  ;;  %v8018_v14 = vld [vmem:[%s10794_s2] ss:$16 sps:$4 sm:$0xff]  }
 0x1c6   :  { %v1847_v55 = vadd.f32 %v9324_v5, %v1730_v22  ;;  %v1731_v40 = vmax.f32 %v10885_v56, %v1703_v30  ;;  %v1943_v30 = vld [vmem:[#allocation2 + $0x50] sm:$0xff]  ;;  %v2160_v2 = vrot.slane %v2158_v61, 1  ;;  %v10889_v56 = vmax.f32 %v9405_v12, %v9407_v29 }
 0x1c7   :  { %v2165_v49 = vrot.slane %v2163_v47, 1 }
 0x1c8   :  { %v1875_v28 = vmax.f32 %v1847_v55, 0.0  ;;  %v1848_v58 = vadd.f32 %v9324_v5, %v1731_v40  ;;  %v1469_v21 = vpop.f32.mrb[92].mxu1  ;;  %v2161_v52 = vor.u32 %v2160_v2, %v2156_v11 }
 0x1c9   :  { %v1471_v42 = vpop.f32.mrb[93].mxu1  ;;  %v2082_v37 = vld [vmem:[#allocation2 + $0x8] sm:$0xfe] }
 0x1ca   :  { %v1876_v50 = vmax.f32 %v1848_v58, 0.0  ;;  %v1704_v0 = vmax.f32 %v1469_v21, %v1471_v42  ;;  %v1473_v32 = vpop.f32.mrb[94].mxu1  ;;  %v2086_v9 = vpack.c.bf16 %v1874_v63, %v2082_v37  ;;  %v1941_v58 = vld [vmem:[#allocation2 + $0x40] sm:$0xff] }
 0x1cb   :  { %v1475_v43 = vpop.f32.mrb[95].mxu1  ;;  %v9673_v37 = vpack.c.bf16 %v1943_v30, %v1941_v58  ;;  %v8026_v30 = vld [vmem:[%s10794_s2 + $0x24] ss:$16 sps:$4 sm:$0xff]  }
 0x1cc   :  { %v1732_v31 = vmax.f32 %v10888_v15, %v1704_v0  ;;  %v1705_v24 = vmax.f32 %v1473_v32, %v1475_v43  ;;  %v9666_v22 = vpack.c.bf16 %v1876_v50, %v1875_v28  ;;  %v2170_v54 = vshll.u32 %v2086_v9, 16 }
 0x1cd   :  { %v2168_v21 = vshrl.u32 %v2086_v9, 16  ;;  %v8021_v9 = vld [vmem:[%s10794_s2 + $0x8] ss:$16 sps:$4 sm:$0xff]   ;;  %v2183_v2 = vshll.u32 %v9673_v37, 16 }
 0x1ce   :  { %v1849_v55 = vadd.f32 %v9324_v5, %v1732_v31  ;;  %v1733_v40 = vmax.f32 %v10889_v56, %v1705_v24  ;;  %v2175_v63 = vshll.u32 %v9666_v22, 16  ;;  %v2172_v42 = vrot.slane %v2170_v54, 1  ;;  %v8029_v54 = vld [vmem:[%s10794_s2 + $0x2c] ss:$16 sps:$4 sm:$0xff]   ;;  %v10891_v56 = vld [vmem:[#allocation16_spill] sm:$0xff] }
 0x1cf   :  { %v2166_v24 = vsel %vm2154_vm1, %v2161_v52, %v2165_v49  ;;  %v8027_v52 = vld [vmem:[%s10794_s2 + $0x28] ss:$16 sps:$4 sm:$0xff]  }
 0x1d0   :  { %v1877_v28 = vmax.f32 %v1849_v55, 0.0  ;;  %v1850_v50 = vadd.f32 %v9324_v5, %v1733_v40  ;;  %v1479_v0 = vpop.f32.mrb[96].mxu1  ;;  %v2177_v61 = vrot.slane %v2175_v63, 1  ;;  %v2173_v43 = vor.u32 %v2172_v42, %v2168_v21  ;;  %v10890_v55 = vld [vmem:[#allocation15_spill] sm:$0xff]  ;;  %v1947_v21 = vld [vmem:[#allocation2 + $0x70] sm:$0xff] }
 0x1d1   :  { %v1481_v32 = vpop.f32.mrb[97].mxu1  ;;  %v10892_v40 = vmax.f32 %v10890_v55, %v10891_v56  ;;  %v8024_v42 = vld [vmem:[%s10794_s2 + $0x20] ss:$16 sps:$4 sm:$0xff]  }
 0x1d2   :  { %v1878_v12 = vmax.f32 %v1850_v50, 0.0  ;;  %v1706_v29 = vmax.f32 %v1479_v0, %v1481_v32  ;;  %v1483_v15 = vpop.f32.mrb[98].mxu1  ;;  %v2178_v31 = vsel %vm2154_vm1, %v2173_v43, %v2177_v61  ;;  %v10893_v0 = vmax.f32 %v9425_v34, %v9430_v51  ;;  %v8032_v34 = vld [vmem:[%s10794_s2 + $0x44] ss:$16 sps:$4 sm:$0xff]  }
 0x1d3   :  { %v1485_v47 = vpop.f32.mrb[99].mxu1  ;;  %2767 = vmatprep.mubr.bf16.mxu0 %v2178_v31  ;;  %2940 = vmatprep.mubr.bf16.mxu1 %v2178_v31  ;;  %v2187_v43 = vshrl.u32 %v9666_v22, 16 }
 0x1d4   :  { %v1734_v63 = vmax.f32 %v10892_v40, %v1706_v29  ;;  %v1707_v11 = vmax.f32 %v1483_v15, %v1485_v47  ;;  %v9694_v58 = vpack.c.bf16 %v1878_v12, %v1877_v28  ;;  %2768 = vmatmul.mubr.bf16.vlgmr.msra.gmra.mrb[84].mxu0 %v2166_v24  ;;  %2941 = vmatmul.mubr.bf16.vlgmr.msra.gmra.mrb[140].mxu1 %v2166_v24  ;;  %v1945_v12 = vld [vmem:[#allocation2 + $0x60] sm:$0xff]  ;;  %v2179_v29 = vshrl.u32 %v9659_v10, 16 }
 0x1d5   :  { %3402 = vmatpush1.bf16.msra.mxu0 %v8018_v14  ;;  %3575 = vmatpush1.bf16.msra.mxu1 %v8021_v9  ;;  %v2185_v15 = vrot.slane %v2183_v2, 1  ;;  %v9712_v51 = vpack.c.bf16 %v1947_v21, %v1945_v12  ;;  %v2189_v31 = vor.u32 %v2187_v43, %v2177_v61  ;;  %v8033_v61 = vld [vmem:[%s10794_s2 + $0x48] ss:$16 sps:$4 sm:$0xff]   ;;  %v1951_v12 = vld [vmem:[#allocation2 + $0x90] sm:$0xff] }
 0x1d6   :  { %v1851_v50 = vadd.f32 %v9324_v5, %v1734_v63  ;;  %v1735_v32 = vmax.f32 %v10893_v0, %v1707_v11  ;;  %v2191_v28 = vshll.u32 %v9694_v58, 16  ;;  %3403 = vmatprep.subr.bf16.mxu0 %v8026_v30  ;;  %3576 = vmatprep.subr.bf16.mxu1 %v8029_v54  ;;  %v8035_v30 = vld [vmem:[%s10794_s2 + $0x4c] ss:$16 sps:$4 sm:$0xff]   ;;  %v2181_v55 = vor.u32 %v2179_v29, %v2165_v49  ;;  %v8030_v11 = vld [vmem:[%s10794_s2 + $0x40] ss:$16 sps:$4 sm:$0xff]  }
 0x1d7   :  { %v8041_v0 = vld [vmem:[%s10794_s2 + $0x6c] ss:$16 sps:$4 sm:$0xff]   ;;  %v1949_v29 = vld [vmem:[#allocation2 + $0x80] sm:$0xff] }
 0x1d8   :  { %v1879_v14 = vmax.f32 %v1851_v50, 0.0  ;;  %v1852_v9 = vadd.f32 %v9324_v5, %v1735_v32  ;;  %v1489_v47 = vpop.f32.mrb[100].mxu1  ;;  %v2193_v24 = vrot.slane %v2191_v28, 1  ;;  %v2186_v49 = vsel %vm2154_vm1, %v2181_v55, %v2185_v15 }
 0x1d9   :  { %v1491_v54 = vpop.f32.mrb[101].mxu1  ;;  %3404 = vmatpush1.bf16.msra.mxu0 %v8024_v42  ;;  %3577 = vmatpush1.bf16.msra.mxu1 %v8027_v52  ;;  %v2199_v50 = vshll.u32 %v9712_v51, 16  ;;  %v8038_v42 = vld [vmem:[%s10794_s2 + $0x64] ss:$16 sps:$4 sm:$0xff]   ;;  %v10894_v32 = vmax.f32 %v9442_v45, %v9444_v1  ;;  %v8036_v45 = vld [vmem:[%s10794_s2 + $0x60] ss:$16 sps:$4 sm:$0xff]  }
 0x1da   :  { %v1880_v56 = vmax.f32 %v1852_v9, 0.0  ;;  %v1708_v2 = vmax.f32 %v1489_v47, %v1491_v54  ;;  %v1493_v40 = vpop.f32.mrb[102].mxu1  ;;  %v2194_v63 = vsel %vm2154_vm1, %v2189_v31, %v2193_v24  ;;  %3405 = vmatprep.subr.bf16.mxu0 %v8032_v34  ;;  %3578 = vmatprep.subr.bf16.mxu1 %v8035_v30  ;;  %v10895_v47 = vmax.f32 %v9451_v59, %v9453_v62  ;;  %v8039_v34 = vld [vmem:[%s10794_s2 + $0x68] ss:$16 sps:$4 sm:$0xff]   ;;  %v8044_v62 = vld [vmem:[%s10794_s2 + $0x84] ss:$16 sps:$4 sm:$0xff]  }
 0x1db   :  { %v1495_v21 = vpop.f32.mrb[103].mxu1  ;;  %2777 = vmatprep.mubr.bf16.mxu0 %v2194_v63  ;;  %2950 = vmatprep.mubr.bf16.mxu1 %v2194_v63  ;;  %v2203_v54 = vshrl.u32 %v9694_v58, 16  ;;  %v2201_v30 = vrot.slane %v2199_v50, 1  ;;  %v9751_v59 = vpack.c.bf16 %v1951_v12, %v1949_v29  ;;  %v8050_v12 = vld [vmem:[%s10794_s2 + $0xa4] ss:$16 sps:$4 sm:$0xff]  }
 0x1dc   :  { %v1736_v43 = vmax.f32 %v10894_v32, %v1708_v2  ;;  %v1709_v28 = vmax.f32 %v1493_v40, %v1495_v21  ;;  %v9736_v52 = vpack.c.bf16 %v1880_v56, %v1879_v14  ;;  %2778 = vmatmul.mubr.bf16.gmra.mrb[88].mxu0 %v2186_v49  ;;  %2951 = vmatmul.mubr.bf16.gmra.mrb[144].mxu1 %v2186_v49  ;;  %v2195_v14 = vshrl.u32 %v9673_v37, 16  ;;  %v8042_v32 = vld [vmem:[%s10794_s2 + $0x80] ss:$16 sps:$4 sm:$0xff]   ;;  %v8053_v29 = vld [vmem:[%s10794_s2 + $0xac] ss:$16 sps:$4 sm:$0xff]  }
 0x1dd   :  { %3406 = vmatpush1.bf16.msra.mxu0 %v8030_v11  ;;  %3579 = vmatpush1.bf16.msra.mxu1 %v8033_v61  ;;  %v2205_v40 = vor.u32 %v2203_v54, %v2193_v24  ;;  %v8047_v11 = vld [vmem:[%s10794_s2 + $0x8c] ss:$16 sps:$4 sm:$0xff]   ;;  %v8045_v24 = vld [vmem:[%s10794_s2 + $0x88] ss:$16 sps:$4 sm:$0xff]  }
 0x1de   :  { %v1853_v9 = vadd.f32 %v9324_v5, %v1736_v43  ;;  %v1737_v31 = vmax.f32 %v10895_v47, %v1709_v28  ;;  %v2207_v1 = vshll.u32 %v9736_v52, 16  ;;  %3407 = vmatprep.subr.bf16.mxu0 %v8038_v42  ;;  %3580 = vmatprep.subr.bf16.mxu1 %v8041_v0  ;;  %v2197_v21 = vor.u32 %v2195_v14, %v2185_v15 }
 0x1df   :  { %v2215_v28 = vshll.u32 %v9751_v59, 16  ;;  %v10897_v14 = vmax.f32 %v9471_v3, %v9473_v7  ;;  %v8056_v3 = vld [vmem:[%s10794_s2 + $0xc4] ss:$16 sps:$4 sm:$0xff]  }
 0x1e0   :  { %v1881_v55 = vmax.f32 %v1853_v9, 0.0  ;;  %v1854_v56 = vadd.f32 %v9324_v5, %v1737_v31  ;;  %v1499_v2 = vpop.f32.mrb[104].mxu1  ;;  %v2209_v63 = vrot.slane %v2207_v1, 1  ;;  %v2202_v15 = vsel %vm2154_vm1, %v2197_v21, %v2201_v30  ;;  %v1955_v1 = vld [vmem:[#allocation2 + $0xb0] sm:$0xff] }
 0x1e1   :  { %v1501_v61 = vpop.f32.mrb[105].mxu1  ;;  %3408 = vmatpush1.bf16.msra.mxu0 %v8036_v45  ;;  %3581 = vmatpush1.bf16.msra.mxu1 %v8039_v34  ;;  %v10896_v9 = vmax.f32 %v9462_v8, %v9464_v16  ;;  %v1953_v45 = vld [vmem:[#allocation2 + $0xa0] sm:$0xff] }
 0x1e2   :  { %v1882_v49 = vmax.f32 %v1854_v56, 0.0  ;;  %v1710_v50 = vmax.f32 %v1499_v2, %v1501_v61  ;;  %v1503_v42 = vpop.f32.mrb[106].mxu1  ;;  %v2210_v0 = vsel %vm2154_vm1, %v2205_v40, %v2209_v63  ;;  %3409 = vmatprep.subr.bf16.mxu0 %v8044_v62  ;;  %3582 = vmatprep.subr.bf16.mxu1 %v8047_v11  ;;  %v2219_v2 = vshrl.u32 %v9736_v52, 16  ;;  %v8048_v16 = vld [vmem:[%s10794_s2 + $0xa0] ss:$16 sps:$4 sm:$0xff]  }
 0x1e3   :  { %v1505_v43 = vpop.f32.mrb[107].mxu1  ;;  %2787 = vmatprep.mubr.bf16.mxu0 %v2210_v0  ;;  %2960 = vmatprep.mubr.bf16.mxu1 %v2210_v0  ;;  %v8051_v62 = vld [vmem:[%s10794_s2 + $0xa8] ss:$16 sps:$4 sm:$0xff]   ;;  %v2217_v40 = vrot.slane %v2215_v28, 1  ;;  %v9793_v11 = vpack.c.bf16 %v1955_v1, %v1953_v45 }
 0x1e4   :  { %v1738_v47 = vmax.f32 %v10896_v9, %v1710_v50  ;;  %v1711_v31 = vmax.f32 %v1503_v42, %v1505_v43  ;;  %v9778_v54 = vpack.c.bf16 %v1882_v49, %v1881_v55  ;;  %2788 = vmatmul.mubr.bf16.gmra.mrb[92].mxu0 %v2202_v15  ;;  %2961 = vmatmul.mubr.bf16.gmra.mrb[148].mxu1 %v2202_v15  ;;  %v2211_v55 = vshrl.u32 %v9712_v51, 16  ;;  %v8059_v42 = vld [vmem:[%s10794_s2 + $0xcc] ss:$16 sps:$4 sm:$0xff]   ;;  %v8062_v9 = vld [vmem:[%s10794_s2 + $0xe4] ss:$16 sps:$4 sm:$0xff]  }
 0x1e5   :  { %3410 = vmatpush1.bf16.msra.mxu0 %v8042_v32  ;;  %3583 = vmatpush1.bf16.msra.mxu1 %v8045_v24  ;;  %v2221_v49 = vor.u32 %v2219_v2, %v2209_v63  ;;  %v8057_v63 = vld [vmem:[%s10794_s2 + $0xc8] ss:$16 sps:$4 sm:$0xff]   ;;  %v9825_v2 = vld [vmem:[%s10795_s6] ss:$0 sm:$0xff] }
 0x1e6   :  { %v1855_v34 = vadd.f32 %v9324_v5, %v1738_v47  ;;  %v1739_v56 = vmax.f32 %v10897_v14, %v1711_v31  ;;  %v2223_v8 = vshll.u32 %v9778_v54, 16  ;;  %3411 = vmatprep.subr.bf16.mxu0 %v8050_v12  ;;  %3584 = vmatprep.subr.bf16.mxu1 %v8053_v29  ;;  %v2213_v32 = vor.u32 %v2211_v55, %v2201_v30  ;;  %v8065_v47 = vld [vmem:[%s10794_s2 + $0xec] ss:$16 sps:$4 sm:$0xff]   ;;  %v1959_v14 = vld [vmem:[#allocation2 + $0xd0] sm:$0xff] }
 0x1e7   :  { %v2231_v29 = vshll.u32 %v9793_v11, 16  ;;  %v10898_v31 = vmax.f32 %v9482_v53, %v9484_v19  ;;  %v10899_v53 = vmax.f32 %v9491_v35, %v9493_v4  ;;  %v8060_v55 = vld [vmem:[%s10794_s2 + $0xe0] ss:$16 sps:$4 sm:$0xff]   ;;  %v8068_v35 = vld [vmem:[%s10794_s2 + $0x104] ss:$16 sps:$4 sm:$0xff]  }
 0x1e8   :  { %v1883_v7 = vmax.f32 %v1855_v34, 0.0  ;;  %v1856_v61 = vadd.f32 %v9324_v5, %v1739_v56  ;;  %v1509_v21 = vpop.f32.mrb[108].mxu1  ;;  %v2225_v50 = vrot.slane %v2223_v8, 1  ;;  %v8054_v5 = vld [vmem:[%s10794_s2 + $0xc0] ss:$16 sps:$4 sm:$0xff]   ;;  %v2218_v30 = vsel %vm2154_vm1, %v2213_v32, %v2217_v40 }
 0x1e9   :  { %v1511_v0 = vpop.f32.mrb[109].mxu1  ;;  %3412 = vmatpush1.bf16.msra.mxu0 %v8048_v16  ;;  %3585 = vmatpush1.bf16.msra.mxu1 %v8051_v62  ;;  %v1957_v56 = vld [vmem:[#allocation2 + $0xc0] sm:$0xff]  ;;  %v2235_v16 = vshrl.u32 %v9778_v54, 16 }
 0x1ea   :  { %v1884_v24 = vmax.f32 %v1856_v61, 0.0  ;;  %v1712_v43 = vmax.f32 %v1509_v21, %v1511_v0  ;;  %v1513_v15 = vpop.f32.mrb[110].mxu1  ;;  %v2226_v28 = vsel %vm2154_vm1, %v2221_v49, %v2225_v50  ;;  %3413 = vmatprep.subr.bf16.mxu0 %v8056_v3  ;;  %3586 = vmatprep.subr.bf16.mxu1 %v8059_v42  ;;  %v8063_v3 = vld [vmem:[%s10794_s2 + $0xe8] ss:$16 sps:$4 sm:$0xff]   ;;  %v2233_v61 = vrot.slane %v2231_v29, 1 }
 0x1eb   :  { %v1515_v12 = vpop.f32.mrb[111].mxu1  ;;  %2797 = vmatprep.mubr.bf16.mxu0 %v2226_v28  ;;  %2970 = vmatprep.mubr.bf16.mxu1 %v2226_v28  ;;  %v9840_v21 = vpack.c.bf16 %v1959_v14, %v1957_v56  ;;  %v2237_v0 = vor.u32 %v2235_v16, %v2225_v50  ;;  %v8069_v50 = vld [vmem:[%s10794_s2 + $0x108] ss:$16 sps:$4 sm:$0xff]   ;;  %v10901_v16 = vmax.f32 %v9511_v57, %v9513_v20  ;;  %v8080_v57 = vld [vmem:[%s10794_s2 + $0x144] ss:$16 sps:$4 sm:$0xff]  }
 0x1ec   :  { %v1740_v1 = vmax.f32 %v10898_v31, %v1712_v43  ;;  %v1713_v45 = vmax.f32 %v1513_v15, %v1515_v12  ;;  %v9820_v34 = vpack.c.bf16 %v1884_v24, %v1883_v7  ;;  %2798 = vmatmul.mubr.bf16.gmra.mrb[96].mxu0 %v2218_v30  ;;  %2971 = vmatmul.mubr.bf16.gmra.mrb[152].mxu1 %v2218_v30  ;;  %v2227_v7 = vshrl.u32 %v9751_v59, 16  ;;  %v8071_v24 = vld [vmem:[%s10794_s2 + $0x10c] ss:$16 sps:$4 sm:$0xff]   ;;  %v8066_v30 = vld [vmem:[%s10794_s2 + $0x100] ss:$16 sps:$4 sm:$0xff]  }
 0x1ed   :  { %3414 = vmatpush1.bf16.msra.mxu0 %v8054_v5  ;;  %3587 = vmatpush1.bf16.msra.mxu1 %v8057_v63  ;;  %v8077_v31 = vld [vmem:[%s10794_s2 + $0x12c] ss:$16 sps:$4 sm:$0xff]  }
 0x1ee   :  { %v1857_v8 = vadd.f32 %v9825_v2, %v1740_v1  ;;  %v1741_v19 = vmax.f32 %v10899_v53, %v1713_v45  ;;  %v2239_v62 = vshll.u32 %v9820_v34, 16  ;;  %3415 = vmatprep.subr.bf16.mxu0 %v8062_v9  ;;  %3588 = vmatprep.subr.bf16.mxu1 %v8065_v47  ;;  %v2229_v15 = vor.u32 %v2227_v7, %v2217_v40  ;;  %v8074_v47 = vld [vmem:[%s10794_s2 + $0x124] ss:$16 sps:$4 sm:$0xff]  }
 0x1ef   :  { %v2247_v9 = vshll.u32 %v9840_v21, 16  ;;  %v10900_v1 = vmax.f32 %v9502_v6, %v9504_v48  ;;  %v1961_v53 = vld [vmem:[#allocation2 + $0xe0] sm:$0xff]  ;;  %v2243_v7 = vshrl.u32 %v9793_v11, 16 }
 0x1f0   :  { %v1885_v4 = vmax.f32 %v1857_v8, 0.0  ;;  %v1858_v49 = vadd.f32 %v9825_v2, %v1741_v19  ;;  %v1519_v42 = vpop.f32.mrb[112].mxu1  ;;  %v2241_v32 = vrot.slane %v2239_v62, 1  ;;  %v2234_v40 = vsel %vm2154_vm1, %v2229_v15, %v2233_v61  ;;  %v1963_v8 = vld [vmem:[#allocation2 + $0xf0] sm:$0xff] }
 0x1f1   :  { %v1521_v43 = vpop.f32.mrb[113].mxu1  ;;  %3416 = vmatpush1.bf16.msra.mxu0 %v8060_v55  ;;  %3589 = vmatpush1.bf16.msra.mxu1 %v8063_v3  ;;  %v2251_v55 = vshrl.u32 %v9820_v34, 16  ;;  %v8072_v48 = vld [vmem:[%s10794_s2 + $0x120] ss:$16 sps:$4 sm:$0xff]   ;;  %v8075_v3 = vld [vmem:[%s10794_s2 + $0x128] ss:$16 sps:$4 sm:$0xff]  }
 0x1f2   :  { %v1886_v28 = vmax.f32 %v1858_v49, 0.0  ;;  %v1714_v5 = vmax.f32 %v1519_v42, %v1521_v43  ;;  %v1523_v63 = vpop.f32.mrb[114].mxu1  ;;  %v2242_v12 = vsel %vm2154_vm1, %v2237_v0, %v2241_v32  ;;  %3417 = vmatprep.subr.bf16.mxu0 %v8068_v35  ;;  %3590 = vmatprep.subr.bf16.mxu1 %v8071_v24  ;;  %v2249_v35 = vrot.slane %v2247_v9, 1  ;;  %v8083_v43 = vld [vmem:[%s10794_s2 + $0x14c] ss:$16 sps:$4 sm:$0xff]  }
 0x1f3   :  { %v1525_v29 = vpop.f32.mrb[115].mxu1  ;;  %2807 = vmatprep.mubr.bf16.mxu0 %v2242_v12  ;;  %2980 = vmatprep.mubr.bf16.mxu1 %v2242_v12  ;;  %v2253_v0 = vor.u32 %v2251_v55, %v2241_v32  ;;  %v8081_v32 = vld [vmem:[%s10794_s2 + $0x148] ss:$16 sps:$4 sm:$0xff]   ;;  %v8086_v9 = vld [vmem:[%s10794_s2 + $0x164] ss:$16 sps:$4 sm:$0xff]  }
 0x1f4   :  { %v1742_v45 = vmax.f32 %v10900_v1, %v1714_v5  ;;  %v1715_v14 = vmax.f32 %v1523_v63, %v1525_v29  ;;  %v9867_v56 = vpack.c.bf16 %v1886_v28, %v1885_v4  ;;  %2808 = vmatmul.mubr.bf16.gmra.mrb[100].mxu0 %v2234_v40  ;;  %2981 = vmatmul.mubr.bf16.gmra.mrb[156].mxu1 %v2234_v40 }
 0x1f5   :  { %3418 = vmatpush1.bf16.msra.mxu0 %v8066_v30  ;;  %3591 = vmatpush1.bf16.msra.mxu1 %v8069_v50  ;;  %v9882_v4 = vpack.c.bf16 %v1963_v8, %v1961_v53  ;;  %v2245_v28 = vor.u32 %v2243_v7, %v2233_v61  ;;  %v8078_v50 = vld [vmem:[%s10794_s2 + $0x140] ss:$16 sps:$4 sm:$0xff]  }
 0x1f6   :  { %v1859_v19 = vadd.f32 %v9825_v2, %v1742_v45  ;;  %v1743_v62 = vmax.f32 %v10901_v16, %v1715_v14  ;;  %v2255_v6 = vshll.u32 %v9867_v56, 16  ;;  %3419 = vmatprep.subr.bf16.mxu0 %v8074_v47  ;;  %3592 = vmatprep.subr.bf16.mxu1 %v8077_v31  ;;  %v8089_v47 = vld [vmem:[%s10794_s2 + $0x16c] ss:$16 sps:$4 sm:$0xff]   ;;  %v10902_v31 = vmax.f32 %v9522_v13, %v9524_v38  ;;  %v1967_v8 = vld [vmem:[#allocation2 + $0x110] sm:$0xff]  ;;  %v1965_v53 = vld [vmem:[#allocation2 + $0x100] sm:$0xff] }
 0x1f7   :  { %v2250_v61 = vsel %vm2154_vm1, %v2245_v28, %v2249_v35  ;;  %v2263_v40 = vshll.u32 %v9882_v4, 16  ;;  %v10903_v16 = vmax.f32 %v9531_v41, %v9533_v46  ;;  %v2267_v55 = vshrl.u32 %v9867_v56, 16  ;;  %v8084_v38 = vld [vmem:[%s10794_s2 + $0x160] ss:$16 sps:$4 sm:$0xff]   ;;  %v8092_v41 = vld [vmem:[%s10794_s2 + $0x184] ss:$16 sps:$4 sm:$0xff]  }
 0x1f8   :  { %v1887_v20 = vmax.f32 %v1859_v19, 0.0  ;;  %v1860_v49 = vadd.f32 %v9825_v2, %v1743_v62  ;;  %v1529_v42 = vpop.f32.mrb[116].mxu1  ;;  %v2257_v24 = vrot.slane %v2255_v6, 1  ;;  %v8087_v6 = vld [vmem:[%s10794_s2 + $0x168] ss:$16 sps:$4 sm:$0xff]   ;;  %v9924_v7 = vpack.c.bf16 %v1967_v8, %v1965_v53 }
 0x1f9   :  { %v1531_v15 = vpop.f32.mrb[117].mxu1  ;;  %3420 = vmatpush1.bf16.msra.mxu0 %v8072_v48  ;;  %3593 = vmatpush1.bf16.msra.mxu1 %v8075_v3  ;;  %v2259_v48 = vshrl.u32 %v9840_v21, 16  ;;  %v2265_v3 = vrot.slane %v2263_v40, 1  ;;  %v10904_v40 = vmax.f32 %v9542_v17, %v9544_v18  ;;  %v10905_v53 = vmax.f32 %v9551_v36, %v9553_v39  ;;  %v8096_v18 = vld [vmem:[%s10794_s2 + $0x1a0] ss:$16 sps:$4 sm:$0xff]  }
 0x1fa   :  { %v1888_v5 = vmax.f32 %v1860_v49, 0.0  ;;  %v1716_v63 = vmax.f32 %v1529_v42, %v1531_v15  ;;  %v1533_v12 = vpop.f32.mrb[118].mxu1  ;;  %v2258_v30 = vsel %vm2154_vm1, %v2253_v0, %v2257_v24  ;;  %3421 = vmatprep.subr.bf16.mxu0 %v8080_v57  ;;  %3594 = vmatprep.subr.bf16.mxu1 %v8083_v43  ;;  %v2269_v49 = vor.u32 %v2267_v55, %v2257_v24  ;;  %v8095_v0 = vld [vmem:[%s10794_s2 + $0x18c] ss:$16 sps:$4 sm:$0xff]   ;;  %v8093_v24 = vld [vmem:[%s10794_s2 + $0x188] ss:$16 sps:$4 sm:$0xff]  }
 0x1fb   :  { %v1535_v29 = vpop.f32.mrb[119].mxu1  ;;  %2817 = vmatprep.mubr.bf16.mxu0 %v2258_v30  ;;  %2990 = vmatprep.mubr.bf16.mxu1 %v2258_v30  ;;  %v2261_v15 = vor.u32 %v2259_v48, %v2249_v35  ;;  %v8090_v30 = vld [vmem:[%s10794_s2 + $0x180] ss:$16 sps:$4 sm:$0xff]   ;;  %v2275_v55 = vshrl.u32 %v9882_v4, 16  ;;  %v8104_v36 = vld [vmem:[%s10794_s2 + $0x1c4] ss:$16 sps:$4 sm:$0xff]  }
 0x1fc   :  { %v1744_v1 = vmax.f32 %v10902_v31, %v1716_v63  ;;  %v1717_v45 = vmax.f32 %v1533_v12, %v1535_v29  ;;  %v9909_v14 = vpack.c.bf16 %v1888_v5, %v1887_v20  ;;  %2818 = vmatmul.mubr.bf16.gmra.mrb[104].mxu0 %v2250_v61  ;;  %2991 = vmatmul.mubr.bf16.gmra.mrb[160].mxu1 %v2250_v61  ;;  %v8098_v29 = vld [vmem:[%s10794_s2 + $0x1a4] ss:$16 sps:$4 sm:$0xff]   ;;  %v8101_v61 = vld [vmem:[%s10794_s2 + $0x1ac] ss:$16 sps:$4 sm:$0xff]  }
 0x1fd   :  { %3422 = vmatpush1.bf16.msra.mxu0 %v8078_v50  ;;  %3595 = vmatpush1.bf16.msra.mxu1 %v8081_v32  ;;  %v2266_v35 = vsel %vm2154_vm1, %v2261_v15, %v2265_v3  ;;  %v2279_v32 = vshll.u32 %v9924_v7, 16 }
 0x1fe   :  { %v1861_v19 = vadd.f32 %v9825_v2, %v1744_v1  ;;  %v1745_v62 = vmax.f32 %v10903_v16, %v1717_v45  ;;  %v2271_v13 = vshll.u32 %v9909_v14, 16  ;;  %3423 = vmatprep.subr.bf16.mxu0 %v8086_v9  ;;  %3596 = vmatprep.subr.bf16.mxu1 %v8089_v47  ;;  %v1971_v1 = vld [vmem:[#allocation2 + $0x130] sm:$0xff]  ;;  %v1969_v45 = vld [vmem:[#allocation2 + $0x120] sm:$0xff]  ;;  %v2283_v16 = vshrl.u32 %v9909_v14, 16 }
 0x200   :  { %v1889_v46 = vmax.f32 %v1861_v19, 0.0  ;;  %v1862_v57 = vadd.f32 %v9825_v2, %v1745_v62  ;;  %v1539_v20 = vpop.f32.mrb[120].mxu1  ;;  %v2273_v42 = vrot.slane %v2271_v13, 1  ;;  %v8099_v62 = vld [vmem:[%s10794_s2 + $0x1a8] ss:$16 sps:$4 sm:$0xff]   ;;  %v2281_v13 = vrot.slane %v2279_v32, 1 }
 0x201   :  { %v1541_v43 = vpop.f32.mrb[121].mxu1  ;;  %3424 = vmatpush1.bf16.msra.mxu0 %v8084_v38  ;;  %3597 = vmatpush1.bf16.msra.mxu1 %v8087_v6  ;;  %v9966_v38 = vpack.c.bf16 %v1971_v1, %v1969_v45 }
 0x202   :  { %v1890_v28 = vmax.f32 %v1862_v57, 0.0  ;;  %v1718_v5 = vmax.f32 %v1539_v20, %v1541_v43  ;;  %v1543_v63 = vpop.f32.mrb[122].mxu1  ;;  %v2274_v12 = vsel %vm2154_vm1, %v2269_v49, %v2273_v42  ;;  %3425 = vmatprep.subr.bf16.mxu0 %v8092_v41  ;;  %3598 = vmatprep.subr.bf16.mxu1 %v8095_v0  ;;  %v2285_v41 = vor.u32 %v2283_v16, %v2273_v42  ;;  %v8107_v57 = vld [vmem:[%s10794_s2 + $0x1cc] ss:$16 sps:$4 sm:$0xff]   ;;  %v8105_v42 = vld [vmem:[%s10794_s2 + $0x1c8] ss:$16 sps:$4 sm:$0xff]  }
 0x203   :  { %v1545_v50 = vpop.f32.mrb[123].mxu1  ;;  %2827 = vmatprep.mubr.bf16.mxu0 %v2274_v12  ;;  %3000 = vmatprep.mubr.bf16.mxu1 %v2274_v12  ;;  %v2277_v49 = vor.u32 %v2275_v55, %v2265_v3  ;;  %v2295_v12 = vshll.u32 %v9966_v38, 16 }
 0x204   :  { %v1746_v9 = vmax.f32 %v10904_v40, %v1718_v5  ;;  %v1719_v47 = vmax.f32 %v1543_v63, %v1545_v50  ;;  %v9951_v31 = vpack.c.bf16 %v1890_v28, %v1889_v46  ;;  %2828 = vmatmul.mubr.bf16.gmra.mrb[108].mxu0 %v2266_v35  ;;  %3001 = vmatmul.mubr.bf16.gmra.mrb[164].mxu1 %v2266_v35  ;;  %v8102_v5 = vld [vmem:[%s10794_s2 + $0x1c0] ss:$16 sps:$4 sm:$0xff]  }
 0x205   :  { %3426 = vmatpush1.bf16.msra.mxu0 %v8090_v30  ;;  %3599 = vmatpush1.bf16.msra.mxu1 %v8093_v24  ;;  %v2282_v3 = vsel %vm2154_vm1, %v2277_v49, %v2281_v13  ;;  %v8110_v30 = vld [vmem:[%s10794_s2 + $0x1e4] ss:$16 sps:$4 sm:$0xff]   ;;  %v8113_v24 = vld [vmem:[%s10794_s2 + $0x1ec] ss:$16 sps:$4 sm:$0xff]   ;;  %v10906_v50 = vmax.f32 %v9562_v26, %v9564_v33  ;;  %v8108_v33 = vld [vmem:[%s10794_s2 + $0x1e0] ss:$16 sps:$4 sm:$0xff]  }
 0x206   :  { %v1863_v8 = vadd.f32 %v9825_v2, %v1746_v9  ;;  %v1747_v19 = vmax.f32 %v10905_v53, %v1719_v47  ;;  %v2287_v17 = vshll.u32 %v9951_v31, 16  ;;  %3427 = vmatprep.subr.bf16.mxu0 %v8098_v29  ;;  %3600 = vmatprep.subr.bf16.mxu1 %v8101_v61  ;;  %v1975_v61 = vld [vmem:[#allocation2 + $0x150] sm:$0xff]  ;;  %v1973_v40 = vld [vmem:[#allocation2 + $0x140] sm:$0xff]  ;;  %v10907_v47 = vmax.f32 %v9571_v27, %v9573_v23 }
 0x207   :  { %v2299_v45 = vshrl.u32 %v9951_v31, 16  ;;  %v2291_v53 = vshrl.u32 %v9924_v7, 16  ;;  %v10008_v16 = vpack.c.bf16 %v1975_v61, %v1973_v40  ;;  %v8116_v27 = vld [vmem:[%s10794_s2 + $0x404] ss:$16 sps:$4 sm:$0xff]  }
 0x208   :  { %v1891_v39 = vmax.f32 %v1863_v8, 0.0  ;;  %v1864_v6 = vadd.f32 %v9825_v2, %v1747_v19  ;;  %v1549_v48 = vpop.f32.mrb[124].mxu1  ;;  %v2289_v46 = vrot.slane %v2287_v17, 1  ;;  %v8111_v8 = vld [vmem:[%s10794_s2 + $0x1e8] ss:$16 sps:$4 sm:$0xff]   ;;  %v2297_v19 = vrot.slane %v2295_v12, 1 }
 0x209   :  { %v1551_v20 = vpop.f32.mrb[125].mxu1  ;;  %3428 = vmatpush1.bf16.msra.mxu0 %v8096_v18  ;;  %3601 = vmatpush1.bf16.msra.mxu1 %v8099_v62  ;;  %v10911_v12 = vld [vmem:[#allocation19_spill] sm:$0xff] }
 0x20a   :  { %v1892_v0 = vmax.f32 %v1864_v6, 0.0  ;;  %v1720_v43 = vmax.f32 %v1549_v48, %v1551_v20  ;;  %v1553_v15 = vpop.f32.mrb[126].mxu1  ;;  %v2290_v28 = vsel %vm2154_vm1, %v2285_v41, %v2289_v46  ;;  %3429 = vmatprep.subr.bf16.mxu0 %v8104_v36  ;;  %3602 = vmatprep.subr.bf16.mxu1 %v8107_v57  ;;  %v2301_v62 = vor.u32 %v2299_v45, %v2289_v46  ;;  %v8119_v36 = vld [vmem:[%s10794_s2 + $0x40c] ss:$16 sps:$4 sm:$0xff]  }
 0x20b   :  { %v1555_v63 = vpop.f32.mrb[127].mxu1  ;;  %2837 = vmatprep.mubr.bf16.mxu0 %v2290_v28  ;;  %3010 = vmatprep.mubr.bf16.mxu1 %v2290_v28  ;;  %v2293_v6 = vor.u32 %v2291_v53, %v2281_v13  ;;  %v2311_v46 = vshll.u32 %v10008_v16, 16 }
 0x20c   :  { %v1748_v35 = vmax.f32 %v10906_v50, %v1720_v43  ;;  %v1721_v32 = vmax.f32 %v1553_v15, %v1555_v63  ;;  %v9993_v29 = vpack.c.bf16 %v1892_v0, %v1891_v39  ;;  %2838 = vmatmul.mubr.bf16.gmra.mrb[112].mxu0 %v2282_v3  ;;  %3011 = vmatmul.mubr.bf16.gmra.mrb[168].mxu1 %v2282_v3  ;;  %v10908_v43 = vld [vmem:[#allocation17_spill] sm:$0xff]  ;;  %v10910_v3 = vld [vmem:[#allocation18_spill] sm:$0xff] }
 0x20d   :  { %3430 = vmatpush1.bf16.msra.mxu0 %v8102_v5  ;;  %3603 = vmatpush1.bf16.msra.mxu1 %v8105_v42  ;;  %v2298_v0 = vsel %vm2154_vm1, %v2293_v6, %v2297_v19  ;;  %v10909_v15 = vmax.f32 %v9582_v25, %v10908_v43  ;;  %v1979_v42 = vld [vmem:[#allocation2 + $0x170] sm:$0xff]  ;;  %v1977_v25 = vld [vmem:[#allocation2 + $0x160] sm:$0xff]  ;;  %v2313_v61 = vrot.slane %v2311_v46, 1 }
 0x20e   :  { %v1865_v9 = vadd.f32 %v9825_v2, %v1748_v35  ;;  %v1749_v1 = vmax.f32 %v10907_v47, %v1721_v32  ;;  %v2303_v26 = vshll.u32 %v9993_v29, 16  ;;  %3431 = vmatprep.subr.bf16.mxu0 %v8110_v30  ;;  %3604 = vmatprep.subr.bf16.mxu1 %v8113_v24  ;;  %v10912_v30 = vmax.f32 %v10910_v3, %v10911_v12 }
 0x20f   :  { %v2315_v50 = vshrl.u32 %v9993_v29, 16  ;;  %v2307_v32 = vshrl.u32 %v9966_v38, 16  ;;  %v10032_v40 = vpack.c.bf16 %v1979_v42, %v1977_v25  ;;  %v2323_v42 = vshrl.u32 %v10008_v16, 16 }
 0x210   :  { %v1893_v23 = vmax.f32 %v1865_v9, 0.0  ;;  %v1866_v17 = vadd.f32 %v9825_v2, %v1749_v1  ;;  %v1559_v18 = vpop.f32.mrb[128].mxu1  ;;  %v2305_v55 = vrot.slane %v2303_v26, 1 }
 0x211   :  { %v1561_v39 = vpop.f32.mrb[129].mxu1  ;;  %3432 = vmatpush1.bf16.msra.mxu0 %v8108_v33  ;;  %3605 = vmatpush1.bf16.msra.mxu1 %v8111_v8 }
 0x212   :  { %v1894_v48 = vmax.f32 %v1866_v17, 0.0  ;;  %v1722_v41 = vmax.f32 %v1559_v18, %v1561_v39  ;;  %v1563_v57 = vpop.f32.mrb[130].mxu1  ;;  %v2306_v20 = vsel %vm2154_vm1, %v2301_v62, %v2305_v55  ;;  %4257 = vmatprep.subr.bf16.mxu0 %v8116_v27  ;;  %4430 = vmatprep.subr.bf16.mxu1 %v8119_v36  ;;  %v2317_v45 = vor.u32 %v2315_v50, %v2305_v55  ;;  %v10913_v36 = vld [vmem:[#allocation4_spill] sm:$0xff]  ;;  %v10914_v39 = vld [vmem:[#allocation5_spill] sm:$0xff] }
 0x213   :  { %v1565_v49 = vpop.f32.mrb[131].mxu1  ;;  %2847 = vmatprep.mubr.bf16.mxu0 %v2306_v20  ;;  %3020 = vmatprep.mubr.bf16.mxu1 %v2306_v20  ;;  %v2309_v17 = vor.u32 %v2307_v32, %v2297_v19  ;;  %v2327_v62 = vshll.u32 %v10032_v40, 16  ;;  %v10915_v6 = vmax.f32 %v10913_v36, %v10914_v39  ;;  %v1983_v20 = vld [vmem:[#allocation2 + $0x190] sm:$0xff]  ;;  %v10916_v19 = vld [vmem:[#allocation6_spill] sm:$0xff]  ;;  %v2084_v36 = vld [vmem:[#allocation2 + $0x1c8] sm:$0x1] }
 0x214   :  { %v1750_v28 = vmax.f32 %v10909_v15, %v1722_v41  ;;  %v1723_v5 = vmax.f32 %v1563_v57, %v1565_v49  ;;  %v10023_v13 = vpack.c.bf16 %v1894_v48, %v1893_v23  ;;  %2848 = vmatmul.mubr.bf16.gmra.mrb[116].mxu0 %v2298_v0  ;;  %3021 = vmatmul.mubr.bf16.gmra.mrb[172].mxu1 %v2298_v0  ;;  %v10917_v0 = vld [vmem:[#allocation7_spill] sm:$0xff]  ;;  %v10921_v39 = vld [vmem:[#allocation9_spill] sm:$0xff] }
 0x215   :  { %v2314_v55 = vsel %vm2154_vm1, %v2309_v17, %v2313_v61  ;;  %v10918_v46 = vmax.f32 %v10916_v19, %v10917_v0  ;;  %v2088_v0 = vpack.c.bf16 %v2084_v36, %v2084_v36 }
 0x216   :  { %v1867_v63 = vadd.f32 %v9825_v2, %v1750_v28  ;;  %v1751_v24 = vmax.f32 %v10912_v30, %v1723_v5  ;;  %v2319_v35 = vshll.u32 %v10023_v13, 16  ;;  %v2331_v15 = vshrl.u32 %v10023_v13, 16  ;;  %v1981_v5 = vld [vmem:[#allocation2 + $0x180] sm:$0xff] }
 0x217   :  { %v10050_v3 = vpack.c.bf16 %v1983_v20, %v1981_v5  ;;  %v2339_v20 = vshrl.u32 %v10032_v40, 16 }
 0x218   :  { %v1895_v9 = vmax.f32 %v1867_v63, 0.0  ;;  %v1868_v47 = vadd.f32 %v9825_v2, %v1751_v24  ;;  %v1569_v1 = vpop.f32.mrb[132].mxu1  ;;  %v2321_v26 = vrot.slane %v2319_v35, 1  ;;  %v2329_v63 = vrot.slane %v2327_v62, 1  ;;  %v1987_v62 = vld [vmem:[#allocation2 + $0x1b0] sm:$0xff] }
 0x219   :  { %v1571_v33 = vpop.f32.mrb[133].mxu1 }
 0x21a   :  { %v1896_v8 = vmax.f32 %v1868_v47, 0.0  ;;  %v1724_v53 = vmax.f32 %v1569_v1, %v1571_v33  ;;  %v1573_v27 = vpop.f32.mrb[134].mxu1  ;;  %v2322_v23 = vsel %vm2154_vm1, %v2317_v45, %v2321_v26  ;;  %v2333_v50 = vor.u32 %v2331_v15, %v2321_v26 }
 0x21b   :  { %v1575_v18 = vpop.f32.mrb[135].mxu1  ;;  %2857 = vmatprep.mubr.bf16.mxu0 %v2322_v23  ;;  %3030 = vmatprep.mubr.bf16.mxu1 %v2322_v23  ;;  %v2325_v45 = vor.u32 %v2323_v42, %v2313_v61  ;;  %v2341_v42 = vor.u32 %v2339_v20, %v2329_v63 }
 0x21c   :  { %v1752_v48 = vmax.f32 %v10915_v6, %v1724_v53  ;;  %v1725_v41 = vmax.f32 %v1573_v27, %v1575_v18  ;;  %v10041_v57 = vpack.c.bf16 %v1896_v8, %v1895_v9  ;;  %2858 = vmatmul.mubr.bf16.gmra.mrb[120].mxu0 %v2314_v55  ;;  %3031 = vmatmul.mubr.bf16.gmra.mrb[176].mxu1 %v2314_v55  ;;  %v2343_v8 = vshll.u32 %v10050_v3, 16  ;;  %v10919_v53 = vld [vmem:[#allocation8_spill] sm:$0xff]  ;;  %v1985_v55 = vld [vmem:[#allocation2 + $0x1a0] sm:$0xff] }
 0x21d   :  { %v10920_v27 = vmax.f32 %v9622_v60, %v10919_v53  ;;  %v2330_v26 = vsel %vm2154_vm1, %v2325_v45, %v2329_v63  ;;  %v10922_v6 = vmax.f32 %v9631_v44, %v10921_v39  ;;  %v10068_v19 = vpack.c.bf16 %v1987_v62, %v1985_v55  ;;  %v1934_v39 = vld [vmem:[#allocation2 + $0x8] sm:$0xff]  ;;  %v10088_v55 = vld [vmem:[#allocation2 + $0x10] sm:$0xff] }
 0x21e   :  { %v1869_v49 = vadd.f32 %v9825_v2, %v1752_v48  ;;  %v1753_v43 = vmax.f32 %v10918_v46, %v1725_v41  ;;  %v2335_v28 = vshll.u32 %v10041_v57, 16  ;;  %v2347_v41 = vshrl.u32 %v10041_v57, 16 }
 0x21f   :  { %v2371_v62 = vshrl.u32 %v10068_v19, 16 }
 0x220   :  { %v1897_v12 = vmax.f32 %v1869_v49, 0.0  ;;  %v1870_v30 = vadd.f32 %v9825_v2, %v1753_v43  ;;  %v1579_v24 = vpop.f32.mrb[136].mxu1  ;;  %v2337_v35 = vrot.slane %v2335_v28, 1  ;;  %v2345_v49 = vrot.slane %v2343_v8, 1 }
 0x221   :  { %v1581_v25 = vpop.f32.mrb[137].mxu1 }
 0x222   :  { %v1898_v32 = vmax.f32 %v1870_v30, 0.0  ;;  %v1726_v9 = vmax.f32 %v1579_v24, %v1581_v25  ;;  %v1583_v47 = vpop.f32.mrb[138].mxu1  ;;  %v2338_v1 = vsel %vm2154_vm1, %v2333_v50, %v2337_v35  ;;  %v2349_v15 = vor.u32 %v2347_v41, %v2337_v35  ;;  %v2083_v25 = vld [vmem:[#allocation2 + $0x1c0] sm:$0x1] }
 0x223   :  { %v1585_v33 = vpop.f32.mrb[139].mxu1  ;;  %2867 = vmatprep.mubr.bf16.mxu0 %v2338_v1  ;;  %3040 = vmatprep.mubr.bf16.mxu1 %v2338_v1  ;;  %v2346_v30 = vsel %vm2154_vm1, %v2341_v42, %v2345_v49  ;;  %v2359_v50 = vshll.u32 %v10068_v19, 16  ;;  %v2087_v63 = vpack.c.bf16 %v2083_v25, %v2083_v25  ;;  %v8126_v42 = vld [vmem:[%s10794_s2 + $0x440] ss:$16 sps:$4 sm:$0xff]  }
 0x224   :  { %v1754_v23 = vmax.f32 %v10920_v27, %v1726_v9  ;;  %v1727_v17 = vmax.f32 %v1583_v47, %v1585_v33  ;;  %v10059_v18 = vpack.c.bf16 %v1898_v32, %v1897_v12  ;;  %2868 = vmatmul.mubr.bf16.gmra.mrb[124].mxu0 %v2330_v26  ;;  %3041 = vmatmul.mubr.bf16.gmra.mrb[180].mxu1 %v2330_v26  ;;  %v2383_v12 = vshll.u32 %v2088_v0, 16  ;;  %v8117_v0 = vld [vmem:[%s10794_s2 + $0x408] ss:$16 sps:$4 sm:$0xff]   ;;  %v8132_v25 = vld [vmem:[%s10794_s2 + $0x460] ss:$16 sps:$4 sm:$0xff]  }
 0x225   :  { %v2355_v32 = vshrl.u32 %v10050_v3, 16  ;;  %v2361_v45 = vrot.slane %v2359_v50, 1  ;;  %v2375_v26 = vshll.u32 %v2087_v63, 16  ;;  %v8137_v50 = vld [vmem:[%s10794_s2 + $0x46c] ss:$16 sps:$4 sm:$0xff]  }
 0x226   :  { %v1871_v61 = vadd.f32 %v9825_v2, %v1754_v23  ;;  %v1755_v48 = vmax.f32 %v10922_v6, %v1727_v17  ;;  %v2351_v60 = vshll.u32 %v10059_v18, 16  ;;  %v2385_v9 = vrot.slane %v2383_v12, 1  ;;  %v8129_v12 = vld [vmem:[%s10794_s2 + $0x448] ss:$16 sps:$4 sm:$0xff]  }
 0x227   :  { %v2357_v53 = vor.u32 %v2355_v32, %v2345_v49  ;;  %v2373_v36 = vor.u32 %v2371_v62, %v2361_v45  ;;  %v8114_v49 = vld [vmem:[%s10794_s2 + $0x400] ss:$16 sps:$4 sm:$0xff]   ;;  %v8143_v32 = vld [vmem:[%s10794_s2 + $0x48c] ss:$16 sps:$4 sm:$0xff]   ;;  %v8141_v63 = vld [vmem:[%s10794_s2 + $0x488] ss:$16 sps:$4 sm:$0xff]  }
 0x228   :  { %v1899_v46 = vmax.f32 %v1871_v61, 0.0  ;;  %v1872_v43 = vadd.f32 %v9825_v2, %v1755_v48  ;;  %v2353_v28 = vrot.slane %v2351_v60, 1  ;;  %v2363_v2 = vshrl.u32 %v10059_v18, 16  ;;  %v10085_v48 = vld [vmem:[#allocation2 + $0x18] sm:$0xff]  ;;  %v1933_v60 = vld [vmem:[#allocation2] sm:$0xff] }
 0x229   :  { %v2362_v23 = vsel %vm2154_vm1, %v2357_v53, %v2361_v45  ;;  %v2377_v61 = vrot.slane %v2375_v26, 1  ;;  %v1990_v41 = vpack.c.bf16 %v10085_v48, %v1934_v39  ;;  %v1989_v20 = vpack.c.bf16 %v10088_v55, %v1933_v60  ;;  %v8144_v45 = vld [vmem:[%s10794_s2 + $0x4a0] ss:$16 sps:$4 sm:$0xff]   ;;  %v8155_v53 = vld [vmem:[%s10794_s2 + $0x4cc] ss:$16 sps:$4 sm:$0xff]  }
 0x22a   :  { %v1900_v5 = vmax.f32 %v1872_v43, 0.0  ;;  %v2354_v44 = vsel %vm2154_vm1, %v2349_v15, %v2353_v28  ;;  %v2365_v47 = vor.u32 %v2363_v2, %v2353_v28  ;;  %v8125_v43 = vld [vmem:[%s10794_s2 + $0x42c] ss:$16 sps:$4 sm:$0xff]   ;;  %v8120_v15 = vld [vmem:[%s10794_s2 + $0x420] ss:$16 sps:$4 sm:$0xff]  }
 0x22b   :  { %2877 = vmatprep.mubr.bf16.mxu0 %v2354_v44  ;;  %3050 = vmatprep.mubr.bf16.mxu1 %v2354_v44  ;;  %v2378_v6 = vsel %vm2154_vm1, %v2373_v36, %v2377_v61  ;;  %v8123_v28 = vld [vmem:[%s10794_s2 + $0x428] ss:$16 sps:$4 sm:$0xff]   ;;  %v8131_v44 = vld [vmem:[%s10794_s2 + $0x44c] ss:$16 sps:$4 sm:$0xff]   ;;  %v8156_v62 = vld [vmem:[%s10794_s2 + $0x4e0] ss:$16 sps:$4 sm:$0xff]  }
 0x22c   :  { %v10073_v24 = vpack.c.bf16 %v1900_v5, %v1899_v46  ;;  %2878 = vmatmul.mubr.bf16.gmra.mrb[128].mxu0 %v2346_v30  ;;  %3051 = vmatmul.mubr.bf16.gmra.mrb[184].mxu1 %v2346_v30  ;;  %v8122_v46 = vld [vmem:[%s10794_s2 + $0x424] ss:$16 sps:$4 sm:$0xff]   ;;  %v8135_v2 = vld [vmem:[%s10794_s2 + $0x468] ss:$16 sps:$4 sm:$0xff]   ;;  %v8161_v26 = vld [vmem:[%s10794_s2 + $0x4ec] ss:$16 sps:$4 sm:$0xff]  }
 0x22d   :  { %v8128_v5 = vld [vmem:[%s10794_s2 + $0x444] ss:$16 sps:$4 sm:$0xff]   ;;  %v8159_v36 = vld [vmem:[%s10794_s2 + $0x4e8] ss:$16 sps:$4 sm:$0xff]   ;;  %v8167_v39 = vld [vmem:[%s10794_s2 + $0x50c] ss:$16 sps:$4 sm:$0xff]  }
 0x22e   :  { %v2367_v35 = vshll.u32 %v10073_v24, 16  ;;  %v2379_v33 = vshrl.u32 %v10073_v24, 16  ;;  %v8134_v30 = vld [vmem:[%s10794_s2 + $0x464] ss:$16 sps:$4 sm:$0xff]  }
 0x22f   :  { %v8164_v61 = vld [vmem:[%s10794_s2 + $0x504] ss:$16 sps:$4 sm:$0xff]  }
 0x230   :  { %v2369_v1 = vrot.slane %v2367_v35, 1  ;;  %v8140_v35 = vld [vmem:[%s10794_s2 + $0x484] ss:$16 sps:$4 sm:$0xff]  }
 0x231   :  { %v8170_v60 = vld [vmem:[%s10794_s2 + $0x524] ss:$16 sps:$4 sm:$0xff]  }
 0x232   :  { %v2370_v8 = vsel %vm2154_vm1, %v2365_v47, %v2369_v1  ;;  %v2381_v27 = vor.u32 %v2379_v33, %v2369_v1  ;;  %v8146_v47 = vld [vmem:[%s10794_s2 + $0x4a4] ss:$16 sps:$4 sm:$0xff]   ;;  %v8149_v1 = vld [vmem:[%s10794_s2 + $0x4ac] ss:$16 sps:$4 sm:$0xff]   ;;  %v8147_v33 = vld [vmem:[%s10794_s2 + $0x4a8] ss:$16 sps:$4 sm:$0xff]  }
 0x233   :  { %2887 = vmatprep.mubr.bf16.mxu0 %v2370_v8  ;;  %3060 = vmatprep.mubr.bf16.mxu1 %v2370_v8  ;;  %v8152_v8 = vld [vmem:[%s10794_s2 + $0x4c4] ss:$16 sps:$4 sm:$0xff]  }
 0x234   :  { %v2386_v17 = vsel %vm2154_vm1, %v2381_v27, %v2385_v9  ;;  %2888 = vmatmul.mubr.bf16.gmra.mrb[132].mxu0 %v2362_v23  ;;  %3061 = vmatmul.mubr.bf16.gmra.mrb[188].mxu1 %v2362_v23  ;;  %v8138_v9 = vld [vmem:[%s10794_s2 + $0x480] ss:$16 sps:$4 sm:$0xff]   ;;  %v8153_v23 = vld [vmem:[%s10794_s2 + $0x4c8] ss:$16 sps:$4 sm:$0xff]  }
 0x235   :  { %2897 = vmatprep.mubr.bf16.mxu0 %v2386_v17  ;;  %3070 = vmatprep.mubr.bf16.mxu1 %v2386_v17  ;;  %v8150_v27 = vld [vmem:[%s10794_s2 + $0x4c0] ss:$16 sps:$4 sm:$0xff]   ;;  %v8158_v17 = vld [vmem:[%s10794_s2 + $0x4e4] ss:$16 sps:$4 sm:$0xff]  }
 0x23c   :  { %2898 = vmatmul.mubr.bf16.gmra.mrb[136].mxu0 %v2378_v6  ;;  %3071 = vmatmul.mubr.bf16.gmra.mrb[192].mxu1 %v2378_v6  ;;  %v8162_v6 = vld [vmem:[%s10794_s2 + $0x500] ss:$16 sps:$4 sm:$0xff]  }
 0x23d   :  { %3433 = vmatprep.mubr.bf16.mxu0 %v1990_v41  ;;  %3606 = vmatprep.mubr.bf16.mxu1 %v1990_v41  ;;  %v8165_v41 = vld [vmem:[%s10794_s2 + $0x508] ss:$16 sps:$4 sm:$0xff]  }
 0x244   :  { %3434 = vmatmul.mubr.bf16.vlgmr.msra.gmra.mrb[84].mxu0 %v1989_v20  ;;  %3607 = vmatmul.mubr.bf16.vlgmr.msra.gmra.mrb[140].mxu1 %v1989_v20  ;;  %v8173_v20 = vld [vmem:[%s10794_s2 + $0x52c] ss:$16 sps:$4 sm:$0xff]  }
 0x245   :  { %3443 = vmatprep.mubr.bf16.mxu0 %v9666_v22  ;;  %3616 = vmatprep.mubr.bf16.mxu1 %v9666_v22 }
 0x246   :  { %4258 = vmatpush1.bf16.msra.mxu0 %v8114_v49  ;;  %4431 = vmatpush1.bf16.msra.mxu1 %v8117_v0  ;;  %v8168_v49 = vld [vmem:[%s10794_s2 + $0x520] ss:$16 sps:$4 sm:$0xff]   ;;  %v8171_v0 = vld [vmem:[%s10794_s2 + $0x528] ss:$16 sps:$4 sm:$0xff]  }
 0x247   :  { %4259 = vmatprep.subr.bf16.mxu0 %v8122_v46  ;;  %4432 = vmatprep.subr.bf16.mxu1 %v8125_v43  ;;  %v8176_v46 = vld [vmem:[%s10794_s2 + $0x544] ss:$16 sps:$4 sm:$0xff]   ;;  %v8179_v43 = vld [vmem:[%s10794_s2 + $0x54c] ss:$16 sps:$4 sm:$0xff]  }
 0x24a   :  { %4260 = vmatpush1.bf16.msra.mxu0 %v8120_v15  ;;  %4433 = vmatpush1.bf16.msra.mxu1 %v8123_v28  ;;  %v8174_v15 = vld [vmem:[%s10794_s2 + $0x540] ss:$16 sps:$4 sm:$0xff]   ;;  %v8177_v28 = vld [vmem:[%s10794_s2 + $0x548] ss:$16 sps:$4 sm:$0xff]  }
 0x24b   :  { %4261 = vmatprep.subr.bf16.mxu0 %v8128_v5  ;;  %4434 = vmatprep.subr.bf16.mxu1 %v8131_v44  ;;  %v8182_v5 = vld [vmem:[%s10794_s2 + $0x564] ss:$16 sps:$4 sm:$0xff]   ;;  %v8185_v44 = vld [vmem:[%s10794_s2 + $0x56c] ss:$16 sps:$4 sm:$0xff]  }
 0x24c   :  { %3444 = vmatmul.mubr.bf16.gmra.mrb[88].mxu0 %v9659_v10  ;;  %3617 = vmatmul.mubr.bf16.gmra.mrb[144].mxu1 %v9659_v10 }
 0x24d   :  { %3453 = vmatprep.mubr.bf16.mxu0 %v9694_v58  ;;  %3626 = vmatprep.mubr.bf16.mxu1 %v9694_v58 }
 0x24e   :  { %4262 = vmatpush1.bf16.msra.mxu0 %v8126_v42  ;;  %4435 = vmatpush1.bf16.msra.mxu1 %v8129_v12  ;;  %v8180_v42 = vld [vmem:[%s10794_s2 + $0x560] ss:$16 sps:$4 sm:$0xff]   ;;  %v8183_v12 = vld [vmem:[%s10794_s2 + $0x568] ss:$16 sps:$4 sm:$0xff]  }
 0x24f   :  { %4263 = vmatprep.subr.bf16.mxu0 %v8134_v30  ;;  %4436 = vmatprep.subr.bf16.mxu1 %v8137_v50  ;;  %v8188_v30 = vld [vmem:[%s10794_s2 + $0x584] ss:$16 sps:$4 sm:$0xff]   ;;  %v8191_v50 = vld [vmem:[%s10794_s2 + $0x58c] ss:$16 sps:$4 sm:$0xff]  }
 0x252   :  { %4264 = vmatpush1.bf16.msra.mxu0 %v8132_v25  ;;  %4437 = vmatpush1.bf16.msra.mxu1 %v8135_v2  ;;  %v8186_v25 = vld [vmem:[%s10794_s2 + $0x580] ss:$16 sps:$4 sm:$0xff]   ;;  %v8189_v2 = vld [vmem:[%s10794_s2 + $0x588] ss:$16 sps:$4 sm:$0xff]  }
 0x253   :  { %4265 = vmatprep.subr.bf16.mxu0 %v8140_v35  ;;  %4438 = vmatprep.subr.bf16.mxu1 %v8143_v32  ;;  %v8194_v35 = vld [vmem:[%s10794_s2 + $0x5a4] ss:$16 sps:$4 sm:$0xff]   ;;  %v8197_v32 = vld [vmem:[%s10794_s2 + $0x5ac] ss:$16 sps:$4 sm:$0xff]  }
 0x254   :  { %3454 = vmatmul.mubr.bf16.gmra.mrb[92].mxu0 %v9673_v37  ;;  %3627 = vmatmul.mubr.bf16.gmra.mrb[148].mxu1 %v9673_v37 }
 0x255   :  { %3463 = vmatprep.mubr.bf16.mxu0 %v9736_v52  ;;  %3636 = vmatprep.mubr.bf16.mxu1 %v9736_v52 }
 0x256   :  { %4266 = vmatpush1.bf16.msra.mxu0 %v8138_v9  ;;  %4439 = vmatpush1.bf16.msra.mxu1 %v8141_v63  ;;  %v8192_v9 = vld [vmem:[%s10794_s2 + $0x5a0] ss:$16 sps:$4 sm:$0xff]   ;;  %v8195_v63 = vld [vmem:[%s10794_s2 + $0x5a8] ss:$16 sps:$4 sm:$0xff]  }
 0x257   :  { %4267 = vmatprep.subr.bf16.mxu0 %v8146_v47  ;;  %4440 = vmatprep.subr.bf16.mxu1 %v8149_v1  ;;  %v8200_v47 = vld [vmem:[%s10794_s2 + $0x5c4] ss:$16 sps:$4 sm:$0xff]   ;;  %v8203_v1 = vld [vmem:[%s10794_s2 + $0x5cc] ss:$16 sps:$4 sm:$0xff]  }
 0x25a   :  { %4268 = vmatpush1.bf16.msra.mxu0 %v8144_v45  ;;  %4441 = vmatpush1.bf16.msra.mxu1 %v8147_v33  ;;  %v8198_v45 = vld [vmem:[%s10794_s2 + $0x5c0] ss:$16 sps:$4 sm:$0xff]   ;;  %v8201_v33 = vld [vmem:[%s10794_s2 + $0x5c8] ss:$16 sps:$4 sm:$0xff]  }
 0x25b   :  { %4269 = vmatprep.subr.bf16.mxu0 %v8152_v8  ;;  %4442 = vmatprep.subr.bf16.mxu1 %v8155_v53  ;;  %v8206_v8 = vld [vmem:[%s10794_s2 + $0x5e4] ss:$16 sps:$4 sm:$0xff]   ;;  %v8209_v53 = vld [vmem:[%s10794_s2 + $0x5ec] ss:$16 sps:$4 sm:$0xff]  }
 0x25c   :  { %3464 = vmatmul.mubr.bf16.gmra.mrb[96].mxu0 %v9712_v51  ;;  %3637 = vmatmul.mubr.bf16.gmra.mrb[152].mxu1 %v9712_v51 }
 0x25d   :  { %3473 = vmatprep.mubr.bf16.mxu0 %v9778_v54  ;;  %3646 = vmatprep.mubr.bf16.mxu1 %v9778_v54 }
 0x25e   :  { %4270 = vmatpush1.bf16.msra.mxu0 %v8150_v27  ;;  %4443 = vmatpush1.bf16.msra.mxu1 %v8153_v23  ;;  %v8204_v27 = vld [vmem:[%s10794_s2 + $0x5e0] ss:$16 sps:$4 sm:$0xff]   ;;  %v8207_v23 = vld [vmem:[%s10794_s2 + $0x5e8] ss:$16 sps:$4 sm:$0xff]  }
 0x25f   :  { %4271 = vmatprep.subr.bf16.mxu0 %v8158_v17  ;;  %4444 = vmatprep.subr.bf16.mxu1 %v8161_v26  ;;  %v3748_v17 = vld [vmem:[#allocation2 + $0x8] sm:$0xfc]  ;;  %v3747_v26 = vld [vmem:[#allocation2] sm:$0xfc] }
 0x262   :  { %4272 = vmatpush1.bf16.msra.mxu0 %v8156_v62  ;;  %4445 = vmatpush1.bf16.msra.mxu1 %v8159_v36  ;;  %v3751_v62 = vpack.c.bf16 %v10088_v55, %v3747_v26  ;;  %v3752_v36 = vpack.c.bf16 %v10085_v48, %v3748_v17  ;;  %v3855_v55 = vrot.slane %v9666_v22, 1  ;;  %v3859_v48 = vrot.slane %v9694_v58, 1  ;;  %v8211_v58 = vld [vmem:[%s10796_s3 + $0x48] sm:$0xff]  }
 0x263   :  { %4273 = vmatprep.subr.bf16.mxu0 %v8164_v61  ;;  %4446 = vmatprep.subr.bf16.mxu1 %v8167_v39  ;;  %v8210_v39 = vld [vmem:[%s10796_s3 + $0x40] sm:$0xff]   ;;  %v3901_v17 = vrot.slane %v10068_v19, 1 }
 0x264   :  { %3474 = vmatmul.mubr.bf16.gmra.mrb[100].mxu0 %v9751_v59  ;;  %3647 = vmatmul.mubr.bf16.gmra.mrb[156].mxu1 %v9751_v59  ;;  %v3851_v61 = vrot.slane %v3751_v62, 1  ;;  %v3749_v62 = vld [vmem:[#allocation2 + $0x1c0] sm:$0x3] }
 0x265   :  { %3483 = vmatprep.mubr.bf16.mxu0 %v9820_v34  ;;  %3656 = vmatprep.mubr.bf16.mxu1 %v9820_v34 }
 0x266   :  { %4274 = vmatpush1.bf16.msra.mxu0 %v8162_v6  ;;  %4447 = vmatpush1.bf16.msra.mxu1 %v8165_v41  ;;  %v3854_v6 = vrot.slane %v3752_v36, 1  ;;  %v3852_v41 = vrot.slane %v9659_v10, 1 }
 0x267   :  { %4275 = vmatprep.subr.bf16.mxu0 %v8170_v60  ;;  %4448 = vmatprep.subr.bf16.mxu1 %v8173_v20  ;;  %v3860_v60 = vsel %vm3850_vm2, %v3855_v55, %v3859_v48  ;;  %v3857_v20 = vrot.slane %v9673_v37, 1  ;;  %v3861_v37 = vrot.slane %v9712_v51, 1 }
 0x268   :  { %v3856_v10 = vsel %vm3850_vm2, %v3854_v6, %v3855_v55  ;;  %v3853_v22 = vsel %vm3850_vm2, %v3851_v61, %v3852_v41  ;;  %v3753_v61 = vpack.c.bf16 %v3749_v62, %v3749_v62  ;;  %v8214_v6 = vld [vmem:[%s10796_s3 + $0x60] sm:$0xff]   ;;  %v8216_v55 = vld [vmem:[%s10796_s3 + $0x70] sm:$0xff]  }
 0x26a   :  { %4276 = vmatpush1.bf16.msra.mxu0 %v8168_v49  ;;  %4449 = vmatpush1.bf16.msra.mxu1 %v8171_v0  ;;  %v8212_v49 = vld [vmem:[%s10796_s3 + $0x50] sm:$0xff]   ;;  %v3863_v0 = vrot.slane %v9736_v52, 1 }
 0x26b   :  { %4277 = vmatprep.subr.bf16.mxu0 %v8176_v46  ;;  %4450 = vmatprep.subr.bf16.mxu1 %v8179_v43  ;;  %v3858_v46 = vsel %vm3850_vm2, %v3852_v41, %v3857_v20  ;;  %v8215_v41 = vld [vmem:[%s10796_s3 + $0x68] sm:$0xff]  }
 0x26c   :  { %3484 = vmatmul.mubr.bf16.gmra.mrb[104].mxu0 %v9793_v11  ;;  %3657 = vmatmul.mubr.bf16.gmra.mrb[160].mxu1 %v9793_v11  ;;  %v3864_v43 = vsel %vm3850_vm2, %v3859_v48, %v3863_v0  ;;  %v8217_v48 = vld [vmem:[%s10796_s3 + $0x78] sm:$0xff]  }
 0x26d   :  { %3493 = vmatprep.mubr.bf16.mxu0 %v9867_v56  ;;  %3666 = vmatprep.mubr.bf16.mxu1 %v9867_v56 }
 0x26e   :  { %4278 = vmatpush1.bf16.msra.mxu0 %v8174_v15  ;;  %4451 = vmatpush1.bf16.msra.mxu1 %v8177_v28  ;;  %v3867_v15 = vrot.slane %v9778_v54, 1  ;;  %v3862_v28 = vsel %vm3850_vm2, %v3857_v20, %v3861_v37  ;;  %v3869_v54 = vrot.slane %v9793_v11, 1 }
 0x26f   :  { %4279 = vmatprep.subr.bf16.mxu0 %v8182_v5  ;;  %4452 = vmatprep.subr.bf16.mxu1 %v8185_v44  ;;  %v3865_v5 = vrot.slane %v9751_v59, 1  ;;  %v3871_v44 = vrot.slane %v9820_v34, 1  ;;  %v3873_v34 = vrot.slane %v9840_v21, 1 }
 0x270   :  { %v3868_v52 = vsel %vm3850_vm2, %v3863_v0, %v3867_v15 }
 0x271   :  { %v3872_v51 = vsel %vm3850_vm2, %v3867_v15, %v3871_v44 }
 0x272   :  { %4280 = vmatpush1.bf16.msra.mxu0 %v8180_v42  ;;  %4453 = vmatpush1.bf16.msra.mxu1 %v8183_v12  ;;  %v3866_v42 = vsel %vm3850_vm2, %v3861_v37, %v3865_v5  ;;  %v3875_v12 = vrot.slane %v9867_v56, 1  ;;  %v3877_v56 = vrot.slane %v9882_v4, 1  ;;  %v10418_v37 = vld [vmem:[%s10795_s6 + $0x1] ss:$0 sm:$0xff] }
 0x273   :  { %4281 = vmatprep.subr.bf16.mxu0 %v8188_v30  ;;  %4454 = vmatprep.subr.bf16.mxu1 %v8191_v50  ;;  %v3870_v30 = vsel %vm3850_vm2, %v3865_v5, %v3869_v54  ;;  %v3879_v50 = vrot.slane %v9909_v14, 1 }
 0x274   :  { %3494 = vmatmul.mubr.bf16.gmra.mrb[108].mxu0 %v9840_v21  ;;  %3667 = vmatmul.mubr.bf16.gmra.mrb[164].mxu1 %v9840_v21  ;;  %v3876_v59 = vsel %vm3850_vm2, %v3871_v44, %v3875_v12 }
 0x275   :  { %3503 = vmatprep.mubr.bf16.mxu0 %v9909_v14  ;;  %3676 = vmatprep.mubr.bf16.mxu1 %v9909_v14  ;;  %v3880_v11 = vsel %vm3850_vm2, %v3875_v12, %v3879_v50  ;;  %v3881_v14 = vrot.slane %v9924_v7, 1 }
 0x276   :  { %4282 = vmatpush1.bf16.msra.mxu0 %v8186_v25  ;;  %4455 = vmatpush1.bf16.msra.mxu1 %v8189_v2  ;;  %v3874_v25 = vsel %vm3850_vm2, %v3869_v54, %v3873_v34  ;;  %v3883_v2 = vrot.slane %v9951_v31, 1 }
 0x277   :  { %4283 = vmatprep.subr.bf16.mxu0 %v8194_v35  ;;  %4456 = vmatprep.subr.bf16.mxu1 %v8197_v32  ;;  %v3878_v35 = vsel %vm3850_vm2, %v3873_v34, %v3877_v56  ;;  %v3887_v32 = vrot.slane %v9993_v29, 1 }
 0x278   :  { %v3884_v21 = vsel %vm3850_vm2, %v3879_v50, %v3883_v2 }
 0x27a   :  { %4284 = vmatpush1.bf16.msra.mxu0 %v8192_v9  ;;  %4457 = vmatpush1.bf16.msra.mxu1 %v8195_v63  ;;  %v3882_v9 = vsel %vm3850_vm2, %v3877_v56, %v3881_v14  ;;  %v3891_v63 = vrot.slane %v10023_v13, 1 }
 0x27b   :  { %4285 = vmatprep.subr.bf16.mxu0 %v8200_v47  ;;  %4458 = vmatprep.subr.bf16.mxu1 %v8203_v1  ;;  %v3895_v1 = vrot.slane %v10041_v57, 1 }
 0x27c   :  { %3504 = vmatmul.mubr.bf16.gmra.mrb[112].mxu0 %v9882_v4  ;;  %3677 = vmatmul.mubr.bf16.gmra.mrb[168].mxu1 %v9882_v4  ;;  %v3888_v4 = vsel %vm3850_vm2, %v3883_v2, %v3887_v32 }
 0x27d   :  { %3513 = vmatprep.mubr.bf16.mxu0 %v9951_v31  ;;  %3686 = vmatprep.mubr.bf16.mxu1 %v9951_v31  ;;  %v3885_v31 = vrot.slane %v9966_v38, 1 }
 0x27e   :  { %4286 = vmatpush1.bf16.msra.mxu0 %v8198_v45  ;;  %4459 = vmatpush1.bf16.msra.mxu1 %v8201_v33  ;;  %v3899_v33 = vrot.slane %v10059_v18, 1 }
 0x27f   :  { %4287 = vmatprep.subr.bf16.mxu0 %v8206_v8  ;;  %4460 = vmatprep.subr.bf16.mxu1 %v8209_v53  ;;  %v3886_v47 = vsel %vm3850_vm2, %v3881_v14, %v3885_v31  ;;  %v3903_v53 = vrot.slane %v10073_v24, 1 }
 0x282   :  { %4288 = vmatpush1.bf16.msra.mxu0 %v8204_v27  ;;  %4461 = vmatpush1.bf16.msra.mxu1 %v8207_v23  ;;  %v3750_v27 = vld [vmem:[#allocation2 + $0x1c8] sm:$0x3] }
 0x283   :  { %7279 = vmatprep.subr.bf16.mxu0 %v8210_v39 }
 0x284   :  { %3514 = vmatmul.mubr.bf16.gmra.mrb[116].mxu0 %v9924_v7  ;;  %3687 = vmatmul.mubr.bf16.gmra.mrb[172].mxu1 %v9924_v7  ;;  %v3892_v7 = vsel %vm3850_vm2, %v3887_v32, %v3891_v63 }
 0x285   :  { %3523 = vmatprep.mubr.bf16.mxu0 %v9993_v29  ;;  %3696 = vmatprep.mubr.bf16.mxu1 %v9993_v29  ;;  %v3889_v29 = vrot.slane %v10008_v16, 1 }
 0x287   :  { %v3890_v45 = vsel %vm3850_vm2, %v3885_v31, %v3889_v29 }
 0x28c   :  { %3524 = vmatmul.mubr.bf16.gmra.mrb[120].mxu0 %v9966_v38  ;;  %3697 = vmatmul.mubr.bf16.gmra.mrb[176].mxu1 %v9966_v38  ;;  %v3896_v38 = vsel %vm3850_vm2, %v3891_v63, %v3895_v1 }
 0x28d   :  { %3533 = vmatprep.mubr.bf16.mxu0 %v10023_v13  ;;  %3706 = vmatprep.mubr.bf16.mxu1 %v10023_v13  ;;  %v3893_v13 = vrot.slane %v10032_v40, 1 }
 0x28f   :  { %v3894_v8 = vsel %vm3850_vm2, %v3889_v29, %v3893_v13 }
 0x294   :  { %3534 = vmatmul.mubr.bf16.gmra.mrb[124].mxu0 %v10008_v16  ;;  %3707 = vmatmul.mubr.bf16.gmra.mrb[180].mxu1 %v10008_v16  ;;  %v3900_v16 = vsel %vm3850_vm2, %v3895_v1, %v3899_v33 }
 0x295   :  { %3543 = vmatprep.mubr.bf16.mxu0 %v10041_v57  ;;  %3716 = vmatprep.mubr.bf16.mxu1 %v10041_v57  ;;  %v3897_v57 = vrot.slane %v10050_v3, 1 }
 0x297   :  { %v3898_v23 = vsel %vm3850_vm2, %v3893_v13, %v3897_v57  ;;  %v3902_v36 = vsel %vm3850_vm2, %v3897_v57, %v3901_v17 }
 0x29c   :  { %3544 = vmatmul.mubr.bf16.gmra.mrb[128].mxu0 %v10032_v40  ;;  %3717 = vmatmul.mubr.bf16.gmra.mrb[184].mxu1 %v10032_v40  ;;  %v3904_v40 = vsel %vm3850_vm2, %v3899_v33, %v3903_v53 }
 0x29d   :  { %3553 = vmatprep.mubr.bf16.mxu0 %v10059_v18  ;;  %3726 = vmatprep.mubr.bf16.mxu1 %v10059_v18  ;;  %v3754_v18 = vpack.c.bf16 %v3750_v27, %v3750_v27 }
 0x29f   :  { %v3907_v26 = vrot.slane %v3754_v18, 1 }
 0x2a4   :  { %3554 = vmatmul.mubr.bf16.gmra.mrb[132].mxu0 %v10050_v3  ;;  %3727 = vmatmul.mubr.bf16.gmra.mrb[188].mxu1 %v10050_v3  ;;  %v8213_v3 = vld [vmem:[%s10796_s3 + $0x58] sm:$0xff]  }
 0x2a5   :  { %3563 = vmatprep.mubr.bf16.mxu0 %v10073_v24  ;;  %3736 = vmatprep.mubr.bf16.mxu1 %v10073_v24  ;;  %v3908_v24 = vsel %vm3850_vm2, %v3903_v53, %v3907_v26 }
 0x2ac   :  { %3564 = vmatmul.mubr.bf16.gmra.mrb[136].mxu0 %v10068_v19  ;;  %3737 = vmatmul.mubr.bf16.gmra.mrb[192].mxu1 %v10068_v19 }
 0x2ad   :  { %4289 = vmatprep.mubr.bf16.mxu0 %v3856_v10  ;;  %4462 = vmatprep.mubr.bf16.mxu1 %v3856_v10  ;;  %v10412_v10 = vld [vmem:[%s10796_s3] sm:$0xff]  }
 0x2b4   :  { %4290 = vmatmul.mubr.bf16.vlgmr.msra.gmra.mrb[84].mxu0 %v3853_v22  ;;  %4463 = vmatmul.mubr.bf16.vlgmr.msra.gmra.mrb[140].mxu1 %v3853_v22 }
 0x2b5   :  { %4299 = vmatprep.mubr.bf16.mxu0 %v3860_v60  ;;  %4472 = vmatprep.mubr.bf16.mxu1 %v3860_v60 }
 0x2b6   :  { %7280 = vmatpush3.bf16.msra.mxu0 %v8210_v39  ;;  %v3905_v39 = vrot.slane %v3753_v61, 1 }
 0x2b7   :  { %7281 = vmatprep.subr.bf16.mxu0 %v8211_v58 }
 0x2b8   :  { %v3906_v19 = vsel %vm3850_vm2, %v3901_v17, %v3905_v39 }
 0x2ba   :  { %7282 = vmatpush3.bf16.msra.mxu0 %v8211_v58 }
 0x2bb   :  { %7283 = vmatprep.subr.bf16.mxu0 %v8212_v49 }
 0x2bc   :  { %4300 = vmatmul.mubr.bf16.gmra.mrb[88].mxu0 %v3858_v46  ;;  %4473 = vmatmul.mubr.bf16.gmra.mrb[144].mxu1 %v3858_v46 }
 0x2bd   :  { %4309 = vmatprep.mubr.bf16.mxu0 %v3864_v43  ;;  %4482 = vmatprep.mubr.bf16.mxu1 %v3864_v43 }
 0x2be   :  { %7284 = vmatpush3.bf16.msra.mxu0 %v8212_v49 }
 0x2bf   :  { %7285 = vmatprep.subr.bf16.mxu0 %v8213_v3 }
 0x2c2   :  { %7286 = vmatpush3.bf16.msra.mxu0 %v8213_v3 }
 0x2c3   :  { %7287 = vmatprep.subr.bf16.mxu0 %v8214_v6 }
 0x2c4   :  { %4310 = vmatmul.mubr.bf16.gmra.mrb[92].mxu0 %v3862_v28  ;;  %4483 = vmatmul.mubr.bf16.gmra.mrb[148].mxu1 %v3862_v28 }
 0x2c5   :  { %4319 = vmatprep.mubr.bf16.mxu0 %v3868_v52  ;;  %4492 = vmatprep.mubr.bf16.mxu1 %v3868_v52 }
 0x2c6   :  { %7288 = vmatpush3.bf16.msra.mxu0 %v8214_v6 }
 0x2c7   :  { %7289 = vmatprep.subr.bf16.mxu0 %v8215_v41 }
 0x2ca   :  { %7290 = vmatpush3.bf16.msra.mxu0 %v8215_v41 }
 0x2cb   :  { %7291 = vmatprep.subr.bf16.mxu0 %v8216_v55 }
 0x2cc   :  { %4320 = vmatmul.mubr.bf16.gmra.mrb[96].mxu0 %v3866_v42  ;;  %4493 = vmatmul.mubr.bf16.gmra.mrb[152].mxu1 %v3866_v42 }
 0x2cd   :  { %4329 = vmatprep.mubr.bf16.mxu0 %v3872_v51  ;;  %4502 = vmatprep.mubr.bf16.mxu1 %v3872_v51 }
 0x2ce   :  { %7292 = vmatpush3.bf16.msra.mxu0 %v8216_v55 }
 0x2cf   :  { %7293 = vmatprep.subr.bf16.mxu0 %v8217_v48 }
 0x2d2   :  { %7294 = vmatpush3.bf16.msra.mxu0 %v8217_v48 }
 0x2d3   :  { %7323 = vmatprep.subr.bf16.mxu0 %v10412_v10 }
 0x2d4   :  { %4330 = vmatmul.mubr.bf16.gmra.mrb[100].mxu0 %v3870_v30  ;;  %4503 = vmatmul.mubr.bf16.gmra.mrb[156].mxu1 %v3870_v30 }
 0x2d5   :  { %4339 = vmatprep.mubr.bf16.mxu0 %v3876_v59  ;;  %4512 = vmatprep.mubr.bf16.mxu1 %v3876_v59 }
 0x2dc   :  { %4340 = vmatmul.mubr.bf16.gmra.mrb[104].mxu0 %v3874_v25  ;;  %4513 = vmatmul.mubr.bf16.gmra.mrb[160].mxu1 %v3874_v25 }
 0x2dd   :  { %4349 = vmatprep.mubr.bf16.mxu0 %v3880_v11  ;;  %4522 = vmatprep.mubr.bf16.mxu1 %v3880_v11 }
 0x2e4   :  { %4350 = vmatmul.mubr.bf16.gmra.mrb[108].mxu0 %v3878_v35  ;;  %4523 = vmatmul.mubr.bf16.gmra.mrb[164].mxu1 %v3878_v35 }
 0x2e5   :  { %4359 = vmatprep.mubr.bf16.mxu0 %v3884_v21  ;;  %4532 = vmatprep.mubr.bf16.mxu1 %v3884_v21 }
 0x2ec   :  { %4360 = vmatmul.mubr.bf16.gmra.mrb[112].mxu0 %v3882_v9  ;;  %4533 = vmatmul.mubr.bf16.gmra.mrb[168].mxu1 %v3882_v9 }
 0x2ed   :  { %4369 = vmatprep.mubr.bf16.mxu0 %v3888_v4  ;;  %4542 = vmatprep.mubr.bf16.mxu1 %v3888_v4 }
 0x2f4   :  { %4370 = vmatmul.mubr.bf16.gmra.mrb[116].mxu0 %v3886_v47  ;;  %4543 = vmatmul.mubr.bf16.gmra.mrb[172].mxu1 %v3886_v47 }
 0x2f5   :  { %4379 = vmatprep.mubr.bf16.mxu0 %v3892_v7  ;;  %4552 = vmatprep.mubr.bf16.mxu1 %v3892_v7 }
 0x2fc   :  { %4380 = vmatmul.mubr.bf16.gmra.mrb[120].mxu0 %v3890_v45  ;;  %4553 = vmatmul.mubr.bf16.gmra.mrb[176].mxu1 %v3890_v45 }
 0x2fd   :  { %4389 = vmatprep.mubr.bf16.mxu0 %v3896_v38  ;;  %4562 = vmatprep.mubr.bf16.mxu1 %v3896_v38 }
 0x304   :  { %4390 = vmatmul.mubr.bf16.gmra.mrb[124].mxu0 %v3894_v8  ;;  %4563 = vmatmul.mubr.bf16.gmra.mrb[180].mxu1 %v3894_v8 }
 0x305   :  { %4399 = vmatprep.mubr.bf16.mxu0 %v3900_v16  ;;  %4572 = vmatprep.mubr.bf16.mxu1 %v3900_v16 }
 0x30c   :  { %4400 = vmatmul.mubr.bf16.gmra.mrb[128].mxu0 %v3898_v23  ;;  %4573 = vmatmul.mubr.bf16.gmra.mrb[184].mxu1 %v3898_v23 }
 0x30d   :  { %4409 = vmatprep.mubr.bf16.mxu0 %v3904_v40  ;;  %4582 = vmatprep.mubr.bf16.mxu1 %v3904_v40 }
 0x314   :  { %4410 = vmatmul.mubr.bf16.gmra.mrb[132].mxu0 %v3902_v36  ;;  %4583 = vmatmul.mubr.bf16.gmra.mrb[188].mxu1 %v3902_v36 }
 0x315   :  { %4419 = vmatprep.mubr.bf16.mxu0 %v3908_v24  ;;  %4592 = vmatprep.mubr.bf16.mxu1 %v3908_v24 }
 0x31c   :  { %4420 = vmatmul.mubr.bf16.gmra.mrb[136].mxu0 %v3906_v19  ;;  %4593 = vmatmul.mubr.bf16.gmra.mrb[192].mxu1 %v3906_v19 }
 0x387   :  { %v4291_v22 = vpop.f32.mrb[84].mxu0  ;;  %v4464_v58 = vpop.f32.mrb[140].mxu1 }
 0x388   :  { %v4293_v60 = vpop.f32.mrb[85].mxu0  ;;  %v4466_v20 = vpop.f32.mrb[141].mxu1 }
 0x389   :  { %v4715_v49 = vmax.f32 %v4291_v22, %v4293_v60  ;;  %v4743_v0 = vmax.f32 %v4464_v58, %v4466_v20  ;;  %v4295_v46 = vpop.f32.mrb[86].mxu0  ;;  %v4468_v43 = vpop.f32.mrb[142].mxu1 }
 0x38a   :  { %v4297_v15 = vpop.f32.mrb[87].mxu0  ;;  %v4470_v28 = vpop.f32.mrb[143].mxu1 }
 0x38b   :  { %v4771_v52 = vmax.f32 %v4715_v49, %v4743_v0  ;;  %v4716_v5 = vmax.f32 %v4295_v46, %v4297_v15  ;;  %v4744_v44 = vmax.f32 %v4468_v43, %v4470_v28 }
 0x38d   :  { %v4804_v42 = vadd.f32 %v10418_v37, %v4771_v52  ;;  %v4772_v51 = vmax.f32 %v4716_v5, %v4744_v44 }
 0x38f   :  { %v4832_v54 = vmax.f32 %v4804_v42, 0.0  ;;  %v4805_v12 = vadd.f32 %v10418_v37, %v4772_v51  ;;  %v4301_v30 = vpop.f32.mrb[88].mxu0  ;;  %v4474_v59 = vpop.f32.mrb[144].mxu1 }
 0x390   :  { %v4303_v34 = vpop.f32.mrb[89].mxu0  ;;  %v4476_v50 = vpop.f32.mrb[145].mxu1 }
 0x391   :  { %4860 = vst [vmem:[#allocation3] sm:$0xff] %v4832_v54  ;;  %v4833_v25 = vmax.f32 %v4805_v12, 0.0  ;;  %v4717_v11 = vmax.f32 %v4301_v30, %v4303_v34  ;;  %v4745_v56 = vmax.f32 %v4474_v59, %v4476_v50  ;;  %v4305_v2 = vpop.f32.mrb[90].mxu0  ;;  %v4478_v35 = vpop.f32.mrb[146].mxu1 }
 0x392   :  { %v4307_v21 = vpop.f32.mrb[91].mxu0  ;;  %v4480_v14 = vpop.f32.mrb[147].mxu1 }
 0x393   :  { %4861 = vst [vmem:[#allocation3 + $0x8] sm:$0xff] %v4833_v25  ;;  %v4773_v32 = vmax.f32 %v4717_v11, %v4745_v56  ;;  %v4718_v9 = vmax.f32 %v4305_v2, %v4307_v21  ;;  %v4746_v4 = vmax.f32 %v4478_v35, %v4480_v14  ;;  %v10422_v31 = vpack.c.bf16 %v4833_v25, %v4832_v54  ;;  %v8219_v14 = vld [vmem:[%s10796_s3 + $0x8] sm:$0xff]  }
 0x395   :  { %v4806_v63 = vadd.f32 %v10418_v37, %v4773_v32  ;;  %v4774_v47 = vmax.f32 %v4718_v9, %v4746_v4 }
 0x397   :  { %v4834_v7 = vmax.f32 %v4806_v63, 0.0  ;;  %v4807_v29 = vadd.f32 %v10418_v37, %v4774_v47  ;;  %v4311_v1 = vpop.f32.mrb[92].mxu0  ;;  %v4484_v45 = vpop.f32.mrb[148].mxu1 }
 0x398   :  { %v4313_v38 = vpop.f32.mrb[93].mxu0  ;;  %v4486_v13 = vpop.f32.mrb[149].mxu1 }
 0x399   :  { %4862 = vst [vmem:[#allocation3 + $0x10] sm:$0xff] %v4834_v7  ;;  %v4835_v33 = vmax.f32 %v4807_v29, 0.0  ;;  %v4719_v8 = vmax.f32 %v4311_v1, %v4313_v38  ;;  %v4747_v16 = vmax.f32 %v4484_v45, %v4486_v13  ;;  %v4315_v57 = vpop.f32.mrb[94].mxu0  ;;  %v4488_v53 = vpop.f32.mrb[150].mxu1  ;;  %v8220_v45 = vld [vmem:[%s10796_s3 + $0x10] sm:$0xff]  }
 0x39a   :  { %v4317_v27 = vpop.f32.mrb[95].mxu0  ;;  %v4490_v23 = vpop.f32.mrb[151].mxu1  ;;  %v4948_v41 = vld [vmem:[#allocation3 + $0x1] sm:$0xff] }
 0x39b   :  { %4863 = vst [vmem:[#allocation3 + $0x18] sm:$0xff] %v4835_v33  ;;  %v4775_v40 = vmax.f32 %v4719_v8, %v4747_v16  ;;  %v4720_v18 = vmax.f32 %v4315_v57, %v4317_v27  ;;  %v4748_v17 = vmax.f32 %v4488_v53, %v4490_v23  ;;  %v10426_v26 = vpack.c.bf16 %v4835_v33, %v4834_v7 }
 0x39d   :  { %v4808_v62 = vadd.f32 %v10418_v37, %v4775_v40  ;;  %v4776_v36 = vmax.f32 %v4720_v18, %v4748_v17 }
 0x39f   :  { %v4836_v61 = vmax.f32 %v4808_v62, 0.0  ;;  %v4809_v3 = vadd.f32 %v10418_v37, %v4776_v36  ;;  %v4321_v24 = vpop.f32.mrb[96].mxu0  ;;  %v4494_v39 = vpop.f32.mrb[152].mxu1  ;;  %v8221_v36 = vld [vmem:[%s10796_s3 + $0x18] sm:$0xff]  }
 0x3a0   :  { %v4323_v19 = vpop.f32.mrb[97].mxu0  ;;  %v4496_v6 = vpop.f32.mrb[153].mxu1  ;;  %v4949_v55 = vld [vmem:[#allocation3 + $0x9] sm:$0xff] }
 0x3a1   :  { %4864 = vst [vmem:[#allocation3 + $0x20] sm:$0xff] %v4836_v61  ;;  %v4837_v48 = vmax.f32 %v4809_v3, 0.0  ;;  %v4721_v22 = vmax.f32 %v4321_v24, %v4323_v19  ;;  %v4749_v58 = vmax.f32 %v4494_v39, %v4496_v6  ;;  %v4325_v60 = vpop.f32.mrb[98].mxu0  ;;  %v4498_v20 = vpop.f32.mrb[154].mxu1  ;;  %v4976_v49 = vpack.c.bf16 %v4949_v55, %v4948_v41 }
 0x3a2   :  { %v4327_v0 = vpop.f32.mrb[99].mxu0  ;;  %v4500_v46 = vpop.f32.mrb[155].mxu1  ;;  %v4950_v34 = vld [vmem:[#allocation3 + $0x11] sm:$0xff] }
 0x3a3   :  { %4865 = vst [vmem:[#allocation3 + $0x28] sm:$0xff] %v4837_v48  ;;  %v4777_v43 = vmax.f32 %v4721_v22, %v4749_v58  ;;  %v4722_v15 = vmax.f32 %v4325_v60, %v4327_v0  ;;  %v4750_v28 = vmax.f32 %v4498_v20, %v4500_v46  ;;  %7295 = vmatprep.mubr.bf16.mxu0 %v4976_v49 }
 0x3a4   :  { %v10430_v52 = vpack.c.bf16 %v4837_v48, %v4836_v61  ;;  %v8222_v48 = vld [vmem:[%s10796_s3 + $0x20] sm:$0xff]  }
 0x3a5   :  { %v4810_v5 = vadd.f32 %v10418_v37, %v4777_v43  ;;  %v4778_v44 = vmax.f32 %v4722_v15, %v4750_v28 }
 0x3a7   :  { %v4838_v42 = vmax.f32 %v4810_v5, 0.0  ;;  %v4811_v51 = vadd.f32 %v10418_v37, %v4778_v44  ;;  %v4331_v54 = vpop.f32.mrb[100].mxu0  ;;  %v4504_v12 = vpop.f32.mrb[156].mxu1 }
 0x3a8   :  { %v4333_v30 = vpop.f32.mrb[101].mxu0  ;;  %v4506_v59 = vpop.f32.mrb[157].mxu1  ;;  %v4951_v50 = vld [vmem:[#allocation3 + $0x19] sm:$0xff] }
 0x3a9   :  { %4866 = vst [vmem:[#allocation3 + $0x30] sm:$0xff] %v4838_v42  ;;  %v4839_v25 = vmax.f32 %v4811_v51, 0.0  ;;  %v4723_v11 = vmax.f32 %v4331_v54, %v4333_v30  ;;  %v4751_v56 = vmax.f32 %v4504_v12, %v4506_v59  ;;  %v4335_v2 = vpop.f32.mrb[102].mxu0  ;;  %v4508_v35 = vpop.f32.mrb[158].mxu1  ;;  %v4977_v21 = vpack.c.bf16 %v4951_v50, %v4950_v34  ;;  %v8223_v54 = vld [vmem:[%s10796_s3 + $0x28] sm:$0xff]  }
 0x3aa   :  { %v4337_v32 = vpop.f32.mrb[103].mxu0  ;;  %v4510_v9 = vpop.f32.mrb[159].mxu1  ;;  %v4952_v53 = vld [vmem:[#allocation3 + $0x21] sm:$0xff] }
 0x3ab   :  { %4867 = vst [vmem:[#allocation3 + $0x38] sm:$0xff] %v4839_v25  ;;  %v4779_v4 = vmax.f32 %v4723_v11, %v4751_v56  ;;  %v4724_v63 = vmax.f32 %v4335_v2, %v4337_v32  ;;  %v4752_v47 = vmax.f32 %v4508_v35, %v4510_v9  ;;  %7296 = vmatmul.mubr.bf16.vlgmr.msra.gmra.mrb[140].mxu0 %v4977_v21  ;;  %v8224_v2 = vld [vmem:[%s10796_s3 + $0x30] sm:$0xff]  }
 0x3ac   :  { %v10437_v7 = vpack.c.bf16 %v4839_v25, %v4838_v42  ;;  %7324 = vmatpush3.bf16.msra.mxu0 %v10412_v10 }
 0x3ad   :  { %v4812_v29 = vadd.f32 %v10418_v37, %v4779_v4  ;;  %v4780_v1 = vmax.f32 %v4724_v63, %v4752_v47  ;;  %7325 = vmatprep.subr.bf16.mxu0 %v8219_v14 }
 0x3af   :  { %v4840_v38 = vmax.f32 %v4812_v29, 0.0  ;;  %v4813_v13 = vadd.f32 %v10418_v37, %v4780_v1  ;;  %v4341_v33 = vpop.f32.mrb[104].mxu0  ;;  %v4514_v8 = vpop.f32.mrb[160].mxu1 }
 0x3b0   :  { %v4343_v16 = vpop.f32.mrb[105].mxu0  ;;  %v4516_v57 = vpop.f32.mrb[161].mxu1  ;;  %v4953_v27 = vld [vmem:[#allocation3 + $0x29] sm:$0xff]  ;;  %7326 = vmatpush3.bf16.msra.mxu0 %v8219_v14 }
 0x3b1   :  { %4868 = vst [vmem:[#allocation3 + $0x40] sm:$0xff] %v4840_v38  ;;  %v4841_v10 = vmax.f32 %v4813_v13, 0.0  ;;  %v4725_v23 = vmax.f32 %v4341_v33, %v4343_v16  ;;  %v4753_v40 = vmax.f32 %v4514_v8, %v4516_v57  ;;  %v4345_v18 = vpop.f32.mrb[106].mxu0  ;;  %v4518_v17 = vpop.f32.mrb[162].mxu1  ;;  %v4978_v62 = vpack.c.bf16 %v4953_v27, %v4952_v53  ;;  %7327 = vmatprep.subr.bf16.mxu0 %v8220_v45  ;;  %v8225_v8 = vld [vmem:[%s10796_s3 + $0x38] sm:$0xff]  }
 0x3b2   :  { %v4347_v61 = vpop.f32.mrb[107].mxu0  ;;  %v4520_v3 = vpop.f32.mrb[163].mxu1  ;;  %v4954_v46 = vld [vmem:[#allocation3 + $0x31] sm:$0xff] }
 0x3b3   :  { %4869 = vst [vmem:[#allocation3 + $0x48] sm:$0xff] %v4841_v10  ;;  %v4781_v24 = vmax.f32 %v4725_v23, %v4753_v40  ;;  %v4726_v39 = vmax.f32 %v4345_v18, %v4347_v61  ;;  %v4754_v19 = vmax.f32 %v4518_v17, %v4520_v3  ;;  %7299 = vmatprep.mubr.bf16.mxu0 %v4978_v62  ;;  %v10474_v17 = vld [vmem:[%s10796_s3 + $0x80] sm:$0xff]  }
 0x3b4   :  { %v10448_v6 = vpack.c.bf16 %v4841_v10, %v4840_v38  ;;  %7328 = vmatpush3.bf16.msra.mxu0 %v8220_v45 }
 0x3b5   :  { %v4814_v41 = vadd.f32 %v10418_v37, %v4781_v24  ;;  %v4782_v55 = vmax.f32 %v4726_v39, %v4754_v19  ;;  %7329 = vmatprep.subr.bf16.mxu0 %v8221_v36 }
 0x3b7   :  { %v4842_v22 = vmax.f32 %v4814_v41, 0.0  ;;  %v4815_v58 = vadd.f32 %v10418_v37, %v4782_v55  ;;  %v4351_v60 = vpop.f32.mrb[108].mxu0  ;;  %v4524_v20 = vpop.f32.mrb[164].mxu1 }
 0x3b8   :  { %v4353_v49 = vpop.f32.mrb[109].mxu0  ;;  %v4526_v0 = vpop.f32.mrb[165].mxu1  ;;  %v4955_v43 = vld [vmem:[#allocation3 + $0x39] sm:$0xff]  ;;  %7330 = vmatpush3.bf16.msra.mxu0 %v8221_v36 }
 0x3b9   :  { %4870 = vst [vmem:[#allocation3 + $0x50] sm:$0xff] %v4842_v22  ;;  %v4843_v15 = vmax.f32 %v4815_v58, 0.0  ;;  %v4727_v28 = vmax.f32 %v4351_v60, %v4353_v49  ;;  %v4755_v5 = vmax.f32 %v4524_v20, %v4526_v0  ;;  %v4355_v44 = vpop.f32.mrb[110].mxu0  ;;  %v4528_v42 = vpop.f32.mrb[166].mxu1  ;;  %v4979_v51 = vpack.c.bf16 %v4955_v43, %v4954_v46  ;;  %7331 = vmatprep.subr.bf16.mxu0 %v8222_v48 }
 0x3ba   :  { %v4357_v12 = vpop.f32.mrb[111].mxu0  ;;  %v4530_v30 = vpop.f32.mrb[167].mxu1  ;;  %v4956_v63 = vld [vmem:[#allocation3 + $0x41] sm:$0xff] }
 0x3bb   :  { %4871 = vst [vmem:[#allocation3 + $0x58] sm:$0xff] %v4843_v15  ;;  %v4783_v59 = vmax.f32 %v4727_v28, %v4755_v5  ;;  %v4728_v34 = vmax.f32 %v4355_v44, %v4357_v12  ;;  %v4756_v50 = vmax.f32 %v4528_v42, %v4530_v30  ;;  %7300 = vmatmul.mubr.bf16.gmra.mrb[144].mxu0 %v4979_v51 }
 0x3bc   :  { %v10458_v25 = vpack.c.bf16 %v4843_v15, %v4842_v22  ;;  %7332 = vmatpush3.bf16.msra.mxu0 %v8222_v48 }
 0x3bd   :  { %v4816_v11 = vadd.f32 %v10418_v37, %v4783_v59  ;;  %v4784_v56 = vmax.f32 %v4728_v34, %v4756_v50  ;;  %7333 = vmatprep.subr.bf16.mxu0 %v8223_v54 }
 0x3bf   :  { %v4844_v35 = vmax.f32 %v4816_v11, 0.0  ;;  %v4817_v21 = vadd.f32 %v10418_v37, %v4784_v56  ;;  %v4361_v14 = vpop.f32.mrb[112].mxu0  ;;  %v4534_v32 = vpop.f32.mrb[168].mxu1 }
 0x3c0   :  { %v4363_v9 = vpop.f32.mrb[113].mxu0  ;;  %v4536_v4 = vpop.f32.mrb[169].mxu1  ;;  %v4957_v47 = vld [vmem:[#allocation3 + $0x49] sm:$0xff]  ;;  %7334 = vmatpush3.bf16.msra.mxu0 %v8223_v54 }
 0x3c1   :  { %4872 = vst [vmem:[#allocation3 + $0x60] sm:$0xff] %v4844_v35  ;;  %v4845_v29 = vmax.f32 %v4817_v21, 0.0  ;;  %v4729_v1 = vmax.f32 %v4361_v14, %v4363_v9  ;;  %v4757_v45 = vmax.f32 %v4534_v32, %v4536_v4  ;;  %v4365_v38 = vpop.f32.mrb[114].mxu0  ;;  %v4538_v13 = vpop.f32.mrb[170].mxu1  ;;  %v4980_v33 = vpack.c.bf16 %v4957_v47, %v4956_v63  ;;  %7335 = vmatprep.subr.bf16.mxu0 %v8224_v2 }
 0x3c2   :  { %v4367_v16 = vpop.f32.mrb[115].mxu0  ;;  %v4540_v57 = vpop.f32.mrb[171].mxu1  ;;  %v4958_v19 = vld [vmem:[#allocation3 + $0x51] sm:$0xff] }
 0x3c3   :  { %4873 = vst [vmem:[#allocation3 + $0x68] sm:$0xff] %v4845_v29  ;;  %v4785_v53 = vmax.f32 %v4729_v1, %v4757_v45  ;;  %v4730_v27 = vmax.f32 %v4365_v38, %v4367_v16  ;;  %v4758_v10 = vmax.f32 %v4538_v13, %v4540_v57  ;;  %7303 = vmatprep.mubr.bf16.mxu0 %v4980_v33 }
 0x3c4   :  { %v10468_v23 = vpack.c.bf16 %v4845_v29, %v4844_v35  ;;  %7336 = vmatpush3.bf16.msra.mxu0 %v8224_v2 }
 0x3c5   :  { %v4818_v40 = vadd.f32 %v10418_v37, %v4785_v53  ;;  %v4786_v18 = vmax.f32 %v4730_v27, %v4758_v10  ;;  %7337 = vmatprep.subr.bf16.mxu0 %v8225_v8 }
 0x3c7   :  { %v4846_v62 = vmax.f32 %v4818_v40, 0.0  ;;  %v4819_v36 = vadd.f32 %v10418_v37, %v4786_v18  ;;  %v4371_v61 = vpop.f32.mrb[116].mxu0  ;;  %v4544_v3 = vpop.f32.mrb[172].mxu1 }
 0x3c8   :  { %v4373_v24 = vpop.f32.mrb[117].mxu0  ;;  %v4546_v39 = vpop.f32.mrb[173].mxu1  ;;  %v4959_v41 = vld [vmem:[#allocation3 + $0x59] sm:$0xff]  ;;  %7338 = vmatpush3.bf16.msra.mxu0 %v8225_v8 }
 0x3c9   :  { %4874 = vst [vmem:[#allocation3 + $0x70] sm:$0xff] %v4846_v62  ;;  %v4847_v55 = vmax.f32 %v4819_v36, 0.0  ;;  %v4731_v48 = vmax.f32 %v4371_v61, %v4373_v24  ;;  %v4759_v22 = vmax.f32 %v4544_v3, %v4546_v39  ;;  %v4375_v58 = vpop.f32.mrb[118].mxu0  ;;  %v4548_v60 = vpop.f32.mrb[174].mxu1  ;;  %v4981_v20 = vpack.c.bf16 %v4959_v41, %v4958_v19  ;;  %7367 = vmatprep.subr.bf16.mxu0 %v10474_v17 }
 0x3ca   :  { %v4377_v49 = vpop.f32.mrb[119].mxu0  ;;  %v4550_v0 = vpop.f32.mrb[175].mxu1  ;;  %v4960_v34 = vld [vmem:[#allocation3 + $0x61] sm:$0xff] }
 0x3cb   :  { %4875 = vst [vmem:[#allocation3 + $0x78] sm:$0xff] %v4847_v55  ;;  %v4787_v46 = vmax.f32 %v4731_v48, %v4759_v22  ;;  %v4732_v43 = vmax.f32 %v4375_v58, %v4377_v49  ;;  %v4760_v15 = vmax.f32 %v4548_v60, %v4550_v0  ;;  %7304 = vmatmul.mubr.bf16.gmra.mrb[148].mxu0 %v4981_v20 }
 0x3cc   :  { %v10478_v28 = vpack.c.bf16 %v4847_v55, %v4846_v62 }
 0x3cd   :  { %v4820_v5 = vadd.f32 %v10418_v37, %v4787_v46  ;;  %v4788_v44 = vmax.f32 %v4732_v43, %v4760_v15 }
 0x3cf   :  { %v4848_v42 = vmax.f32 %v4820_v5, 0.0  ;;  %v4821_v51 = vadd.f32 %v10418_v37, %v4788_v44  ;;  %v4381_v54 = vpop.f32.mrb[120].mxu0  ;;  %v4554_v12 = vpop.f32.mrb[176].mxu1 }
 0x3d0   :  { %v4383_v30 = vpop.f32.mrb[121].mxu0  ;;  %v4556_v59 = vpop.f32.mrb[177].mxu1  ;;  %v4961_v50 = vld [vmem:[#allocation3 + $0x69] sm:$0xff] }
 0x3d1   :  { %4876 = vst [vmem:[#allocation3 + $0x80] sm:$0xff] %v4848_v42  ;;  %v4849_v11 = vmax.f32 %v4821_v51, 0.0  ;;  %v4733_v56 = vmax.f32 %v4381_v54, %v4383_v30  ;;  %v4761_v2 = vmax.f32 %v4554_v12, %v4556_v59  ;;  %v4385_v35 = vpop.f32.mrb[122].mxu0  ;;  %v4558_v21 = vpop.f32.mrb[178].mxu1  ;;  %v4982_v14 = vpack.c.bf16 %v4961_v50, %v4960_v34 }
 0x3d2   :  { %v4387_v32 = vpop.f32.mrb[123].mxu0  ;;  %v4560_v9 = vpop.f32.mrb[179].mxu1  ;;  %v4962_v53 = vld [vmem:[#allocation3 + $0x71] sm:$0xff] }
 0x3d3   :  { %4877 = vst [vmem:[#allocation3 + $0x88] sm:$0xff] %v4849_v11  ;;  %v4789_v4 = vmax.f32 %v4733_v56, %v4761_v2  ;;  %v4734_v63 = vmax.f32 %v4385_v35, %v4387_v32  ;;  %v4762_v47 = vmax.f32 %v4558_v21, %v4560_v9  ;;  %7307 = vmatprep.mubr.bf16.mxu0 %v4982_v14 }
 0x3d4   :  { %v10482_v29 = vpack.c.bf16 %v4849_v11, %v4848_v42 }
 0x3d5   :  { %v4822_v1 = vadd.f32 %v10418_v37, %v4789_v4  ;;  %v4790_v45 = vmax.f32 %v4734_v63, %v4762_v47 }
 0x3d7   :  { %v4850_v38 = vmax.f32 %v4822_v1, 0.0  ;;  %v4823_v13 = vadd.f32 %v10418_v37, %v4790_v45  ;;  %v4391_v33 = vpop.f32.mrb[124].mxu0  ;;  %v4564_v8 = vpop.f32.mrb[180].mxu1 }
 0x3d8   :  { %v4393_v16 = vpop.f32.mrb[125].mxu0  ;;  %v4566_v57 = vpop.f32.mrb[181].mxu1  ;;  %v4963_v27 = vld [vmem:[#allocation3 + $0x79] sm:$0xff] }
 0x3d9   :  { %4878 = vst [vmem:[#allocation3 + $0x90] sm:$0xff] %v4850_v38  ;;  %v4851_v10 = vmax.f32 %v4823_v13, 0.0  ;;  %v4735_v40 = vmax.f32 %v4391_v33, %v4393_v16  ;;  %v4763_v18 = vmax.f32 %v4564_v8, %v4566_v57  ;;  %v4395_v62 = vpop.f32.mrb[126].mxu0  ;;  %v4568_v36 = vpop.f32.mrb[182].mxu1  ;;  %v4983_v61 = vpack.c.bf16 %v4963_v27, %v4962_v53 }
 0x3da   :  { %v4397_v3 = vpop.f32.mrb[127].mxu0  ;;  %v4570_v24 = vpop.f32.mrb[183].mxu1  ;;  %v4964_v43 = vld [vmem:[#allocation3 + $0x81] sm:$0xff] }
 0x3db   :  { %4879 = vst [vmem:[#allocation3 + $0x98] sm:$0xff] %v4851_v10  ;;  %v4791_v39 = vmax.f32 %v4735_v40, %v4763_v18  ;;  %v4736_v19 = vmax.f32 %v4395_v62, %v4397_v3  ;;  %v4764_v41 = vmax.f32 %v4568_v36, %v4570_v24  ;;  %7308 = vmatmul.mubr.bf16.gmra.mrb[152].mxu0 %v4983_v61 }
 0x3dc   :  { %v10486_v55 = vpack.c.bf16 %v4851_v10, %v4850_v38 }
 0x3dd   :  { %v4824_v48 = vadd.f32 %v10418_v37, %v4791_v39  ;;  %v4792_v22 = vmax.f32 %v4736_v19, %v4764_v41 }
 0x3df   :  { %v4852_v58 = vmax.f32 %v4824_v48, 0.0  ;;  %v4825_v60 = vadd.f32 %v10418_v37, %v4792_v22  ;;  %v4401_v20 = vpop.f32.mrb[128].mxu0  ;;  %v4574_v49 = vpop.f32.mrb[184].mxu1 }
 0x3e0   :  { %v4403_v0 = vpop.f32.mrb[129].mxu0  ;;  %v4576_v46 = vpop.f32.mrb[185].mxu1  ;;  %v4965_v15 = vld [vmem:[#allocation3 + $0x89] sm:$0xff] }
 0x3e1   :  { %4880 = vst [vmem:[#allocation3 + $0xa0] sm:$0xff] %v4852_v58  ;;  %v4853_v5 = vmax.f32 %v4825_v60, 0.0  ;;  %v4737_v44 = vmax.f32 %v4401_v20, %v4403_v0  ;;  %v4765_v42 = vmax.f32 %v4574_v49, %v4576_v46  ;;  %v4405_v51 = vpop.f32.mrb[130].mxu0  ;;  %v4578_v54 = vpop.f32.mrb[186].mxu1  ;;  %v4984_v12 = vpack.c.bf16 %v4965_v15, %v4964_v43 }
 0x3e2   :  { %v4407_v30 = vpop.f32.mrb[131].mxu0  ;;  %v4580_v59 = vpop.f32.mrb[187].mxu1  ;;  %v4966_v47 = vld [vmem:[#allocation3 + $0x91] sm:$0xff] }
 0x3e3   :  { %4881 = vst [vmem:[#allocation3 + $0xa8] sm:$0xff] %v4853_v5  ;;  %v4793_v34 = vmax.f32 %v4737_v44, %v4765_v42  ;;  %v4738_v50 = vmax.f32 %v4405_v51, %v4407_v30  ;;  %v4766_v11 = vmax.f32 %v4578_v54, %v4580_v59  ;;  %7311 = vmatprep.mubr.bf16.mxu0 %v4984_v12 }
 0x3e4   :  { %v10490_v56 = vpack.c.bf16 %v4853_v5, %v4852_v58 }
 0x3e5   :  { %v4826_v2 = vadd.f32 %v10418_v37, %v4793_v34  ;;  %v4794_v35 = vmax.f32 %v4738_v50, %v4766_v11 }
 0x3e7   :  { %v4854_v21 = vmax.f32 %v4826_v2, 0.0  ;;  %v4827_v14 = vadd.f32 %v10418_v37, %v4794_v35  ;;  %v4411_v32 = vpop.f32.mrb[132].mxu0  ;;  %v4584_v9 = vpop.f32.mrb[188].mxu1 }
 0x3e8   :  { %v4413_v4 = vpop.f32.mrb[133].mxu0  ;;  %v4586_v63 = vpop.f32.mrb[189].mxu1  ;;  %v4967_v1 = vld [vmem:[#allocation3 + $0x99] sm:$0xff] }
 0x3e9   :  { %4882 = vst [vmem:[#allocation3 + $0xb0] sm:$0xff] %v4854_v21  ;;  %v4855_v45 = vmax.f32 %v4827_v14, 0.0  ;;  %v4739_v38 = vmax.f32 %v4411_v32, %v4413_v4  ;;  %v4767_v13 = vmax.f32 %v4584_v9, %v4586_v63  ;;  %v4415_v33 = vpop.f32.mrb[134].mxu0  ;;  %v4588_v8 = vpop.f32.mrb[190].mxu1  ;;  %v4985_v16 = vpack.c.bf16 %v4967_v1, %v4966_v47  ;;  %v8228_v47 = vld [vmem:[%s10796_s3 + $0x90] sm:$0xff]   ;;  %v5393_v1 = vld [vmem:[#allocation3 + $0x2] sm:$0xff] }
 0x3ea   :  { %v4417_v57 = vpop.f32.mrb[135].mxu0  ;;  %v4590_v53 = vpop.f32.mrb[191].mxu1  ;;  %v4968_v48 = vld [vmem:[#allocation3 + $0xa1] sm:$0xff] }
 0x3eb   :  { %4883 = vst [vmem:[#allocation3 + $0xb8] sm:$0xff] %v4855_v45  ;;  %v4795_v27 = vmax.f32 %v4739_v38, %v4767_v13  ;;  %v4740_v10 = vmax.f32 %v4415_v33, %v4417_v57  ;;  %v4768_v40 = vmax.f32 %v4588_v8, %v4590_v53  ;;  %7312 = vmatmul.mubr.bf16.gmra.mrb[156].mxu0 %v4985_v16  ;;  %v8247_v38 = vld [vmem:[%s10797_s4 + $0x28] sm:$0xff]   ;;  %v5396_v13 = vld [vmem:[#allocation3 + $0x1a] sm:$0xff]  ;;  %v5395_v8 = vld [vmem:[#allocation3 + $0x12] sm:$0xff] }
 0x3ec   :  { %v10494_v18 = vpack.c.bf16 %v4855_v45, %v4854_v21  ;;  %v5398_v33 = vld [vmem:[#allocation3 + $0x2a] sm:$0xff]  ;;  %v5422_v16 = vpack.c.bf16 %v5396_v13, %v5395_v8  ;;  %v5397_v57 = vld [vmem:[#allocation3 + $0x22] sm:$0xff] }
 0x3ed   :  { %v4828_v62 = vadd.f32 %v10418_v37, %v4795_v27  ;;  %v4796_v36 = vmax.f32 %v4740_v10, %v4768_v40  ;;  %v8235_v53 = vld [vmem:[%s10796_s3 + $0xc8] sm:$0xff]   ;;  %v8248_v27 = vld [vmem:[%s10797_s4 + $0x30] sm:$0xff]   ;;  %v5423_v10 = vpack.c.bf16 %v5398_v33, %v5397_v57  ;;  %v8249_v40 = vld [vmem:[%s10797_s4 + $0x38] sm:$0xff]  }
 0x3ee   :  { %v5686_v13 = vld [vmem:[#allocation3 + $0x6b] sm:$0xff]  ;;  %v5683_v33 = vld [vmem:[#allocation3 + $0x53] sm:$0xff] }
 0x3ef   :  { %v4856_v61 = vmax.f32 %v4828_v62, 0.0  ;;  %v4829_v3 = vadd.f32 %v10418_v37, %v4796_v36  ;;  %v4421_v24 = vpop.f32.mrb[136].mxu0  ;;  %v4594_v39 = vpop.f32.mrb[192].mxu1  ;;  %v5400_v62 = vld [vmem:[#allocation3 + $0x3a] sm:$0xff]  ;;  %v5402_v36 = vld [vmem:[#allocation3 + $0x4a] sm:$0xff] }
 0x3f0   :  { %v4423_v19 = vpop.f32.mrb[137].mxu0  ;;  %v4596_v41 = vpop.f32.mrb[193].mxu1  ;;  %v4969_v22 = vld [vmem:[#allocation3 + $0xa9] sm:$0xff] }
 0x3f1   :  { %4884 = vst [vmem:[#allocation3 + $0xc0] sm:$0xff] %v4856_v61  ;;  %v4857_v58 = vmax.f32 %v4829_v3, 0.0  ;;  %v4741_v60 = vmax.f32 %v4421_v24, %v4423_v19  ;;  %v4769_v20 = vmax.f32 %v4594_v39, %v4596_v41  ;;  %v4425_v49 = vpop.f32.mrb[138].mxu0  ;;  %v4598_v0 = vpop.f32.mrb[194].mxu1  ;;  %v4986_v46 = vpack.c.bf16 %v4969_v22, %v4968_v48  ;;  %v5401_v24 = vld [vmem:[#allocation3 + $0x42] sm:$0xff]  ;;  %v8237_v39 = vld [vmem:[%s10796_s3 + $0xd8] sm:$0xff]  }
 0x3f2   :  { %v4427_v43 = vpop.f32.mrb[139].mxu0  ;;  %v4600_v15 = vpop.f32.mrb[195].mxu1  ;;  %v4970_v34 = vld [vmem:[#allocation3 + $0xb1] sm:$0xff]  ;;  %v5425_v19 = vpack.c.bf16 %v5402_v36, %v5401_v24  ;;  %v8238_v41 = vld [vmem:[%s10796_s3 + $0xe0] sm:$0xff]  }
 0x3f3   :  { %4885 = vst [vmem:[#allocation3 + $0xc8] sm:$0xff] %v4857_v58  ;;  %v4797_v5 = vmax.f32 %v4741_v60, %v4769_v20  ;;  %v4742_v44 = vmax.f32 %v4425_v49, %v4427_v43  ;;  %v4770_v42 = vmax.f32 %v4598_v0, %v4600_v15  ;;  %7315 = vmatprep.mubr.bf16.mxu0 %v4986_v46  ;;  %v5404_v48 = vld [vmem:[#allocation3 + $0x5a] sm:$0xff]  ;;  %v5406_v22 = vld [vmem:[#allocation3 + $0x6a] sm:$0xff]  ;;  %v5405_v20 = vld [vmem:[#allocation3 + $0x62] sm:$0xff] }
 0x3f4   :  { %v10498_v51 = vpack.c.bf16 %v4857_v58, %v4856_v61  ;;  %v5399_v61 = vld [vmem:[#allocation3 + $0x32] sm:$0xff]  ;;  %v8239_v49 = vld [vmem:[%s10796_s3 + $0xe8] sm:$0xff]   ;;  %v5427_v0 = vpack.c.bf16 %v5406_v22, %v5405_v20  ;;  %v5408_v43 = vld [vmem:[#allocation3 + $0x7a] sm:$0xff] }
 0x3f5   :  { %v4830_v54 = vadd.f32 %v10418_v37, %v4797_v5  ;;  %v4798_v12 = vmax.f32 %v4742_v44, %v4770_v42  ;;  %v5424_v3 = vpack.c.bf16 %v5400_v62, %v5399_v61  ;;  %v5403_v58 = vld [vmem:[#allocation3 + $0x52] sm:$0xff]  ;;  %v5410_v15 = vld [vmem:[#allocation3 + $0x8a] sm:$0xff]  ;;  %v5409_v42 = vld [vmem:[#allocation3 + $0x82] sm:$0xff] }
 0x3f6   :  { %v5426_v60 = vpack.c.bf16 %v5404_v48, %v5403_v58  ;;  %v8240_v46 = vld [vmem:[%s10796_s3 + $0xf0] sm:$0xff]   ;;  %v5692_v36 = vld [vmem:[#allocation3 + $0x9b] sm:$0xff] }
 0x3f7   :  { %v4858_v30 = vmax.f32 %v4830_v54, 0.0  ;;  %v4831_v59 = vadd.f32 %v10418_v37, %v4798_v12  ;;  %v8227_v37 = vld [vmem:[%s10796_s3 + $0x88] sm:$0xff]   ;;  %v5407_v5 = vld [vmem:[#allocation3 + $0x72] sm:$0xff]  ;;  %v5429_v54 = vpack.c.bf16 %v5410_v15, %v5409_v42  ;;  %v5412_v12 = vld [vmem:[#allocation3 + $0x9a] sm:$0xff] }
 0x3f8   :  { %v4971_v50 = vld [vmem:[#allocation3 + $0xb9] sm:$0xff]  ;;  %v5428_v44 = vpack.c.bf16 %v5408_v43, %v5407_v5  ;;  %v5694_v61 = vld [vmem:[#allocation3 + $0xab] sm:$0xff]  ;;  %v10591_v15 = vld [vmem:[%s10795_s6 + $0x2] ss:$0 sm:$0xff] }
 0x3f9   :  { %4886 = vst [vmem:[#allocation3 + $0xd0] sm:$0xff] %v4858_v30  ;;  %v4859_v11 = vmax.f32 %v4831_v59, 0.0  ;;  %v4987_v2 = vpack.c.bf16 %v4971_v50, %v4970_v34  ;;  %v5411_v59 = vld [vmem:[#allocation3 + $0x92] sm:$0xff]  ;;  %v5413_v50 = vld [vmem:[#allocation3 + $0xa2] sm:$0xff] }
 0x3fa   :  { %v4972_v21 = vld [vmem:[#allocation3 + $0xc1] sm:$0xff]  ;;  %v5430_v34 = vpack.c.bf16 %v5412_v12, %v5411_v59  ;;  %v5695_v22 = vld [vmem:[#allocation3 + $0xb3] sm:$0xff] }
 0x3fb   :  { %4887 = vst [vmem:[#allocation3 + $0xd8] sm:$0xff] %v4859_v11  ;;  %7316 = vmatmul.mubr.bf16.gmra.mrb[160].mxu0 %v4987_v2  ;;  %v4931_v35 = vpack.c.bf16 %v4859_v11, %v4858_v30  ;;  %v5414_v30 = vld [vmem:[#allocation3 + $0xaa] sm:$0xff]  ;;  %v5416_v2 = vld [vmem:[#allocation3 + $0xba] sm:$0xff] }
 0x3fc   :  { %v5431_v11 = vpack.c.bf16 %v5414_v30, %v5413_v50  ;;  %v8250_v43 = vld [vmem:[%s10798_s5] sm:$0xff]  }
 0x400   :  { %v4973_v14 = vld [vmem:[#allocation3 + $0xc9] sm:$0xff] }
 0x401   :  { %v4988_v32 = vpack.c.bf16 %v4973_v14, %v4972_v21  ;;  %v5415_v21 = vld [vmem:[#allocation3 + $0xb2] sm:$0xff] }
 0x402   :  { %v4974_v9 = vld [vmem:[#allocation3 + $0xd1] sm:$0xff]  ;;  %v4975_v4 = vld [vmem:[#allocation3 + $0xd9] sm:$0xff]  ;;  %v5432_v14 = vpack.c.bf16 %v5416_v2, %v5415_v21 }
 0x403   :  { %7319 = vmatprep.mubr.bf16.mxu0 %v4988_v32  ;;  %v4989_v63 = vpack.c.bf16 %v4975_v4, %v4974_v9  ;;  %v5417_v32 = vld [vmem:[#allocation3 + $0xc2] sm:$0xff]  ;;  %v5419_v4 = vld [vmem:[#allocation3 + $0xd2] sm:$0xff] }
 0x404   :  { %v5698_v48 = vld [vmem:[#allocation3 + $0xcb] sm:$0xff] }
 0x405   :  { %7320 = vmatmul.mubr.bf16.gmra.mrb[164].mxu0 %v4989_v63  ;;  %v5420_v63 = vld [vmem:[#allocation3 + $0xda] sm:$0xff] }
 0x406   :  { %7339 = vmatprep.mubr.bf16.mxu0 %v10422_v31  ;;  %v8229_v31 = vld [vmem:[%s10796_s3 + $0x98] sm:$0xff]  }
 0x40d   :  { %7340 = vmatmul.mubr.bf16.vlgmr.msra.gmra.mrb[140].mxu0 %v10426_v26  ;;  %v8230_v26 = vld [vmem:[%s10796_s3 + $0xa0] sm:$0xff]  }
 0x40e   :  { %7343 = vmatprep.mubr.bf16.mxu0 %v10430_v52  ;;  %7368 = vmatpush3.bf16.msra.mxu0 %v10474_v17  ;;  %v8231_v52 = vld [vmem:[%s10796_s3 + $0xa8] sm:$0xff]  }
 0x40f   :  { %7369 = vmatprep.subr.bf16.mxu0 %v8227_v37  ;;  %v8243_v17 = vld [vmem:[%s10797_s4 + $0x8] sm:$0xff]  }
 0x412   :  { %7370 = vmatpush3.bf16.msra.mxu0 %v8227_v37  ;;  %v5674_v37 = vld [vmem:[#allocation3 + $0xb] sm:$0xff] }
 0x413   :  { %7371 = vmatprep.subr.bf16.mxu0 %v8228_v47 }
 0x415   :  { %7344 = vmatmul.mubr.bf16.gmra.mrb[144].mxu0 %v10437_v7  ;;  %v8232_v7 = vld [vmem:[%s10796_s3 + $0xb0] sm:$0xff]  }
 0x416   :  { %7347 = vmatprep.mubr.bf16.mxu0 %v10448_v6  ;;  %7372 = vmatpush3.bf16.msra.mxu0 %v8228_v47  ;;  %v8233_v6 = vld [vmem:[%s10796_s3 + $0xb8] sm:$0xff]   ;;  %v5434_v47 = vpack.c.bf16 %v5420_v63, %v5419_v4  ;;  %v8251_v4 = vld [vmem:[%s10798_s5 + $0x8] sm:$0xff]  }
 0x417   :  { %7373 = vmatprep.subr.bf16.mxu0 %v8229_v31 }
 0x41a   :  { %7374 = vmatpush3.bf16.msra.mxu0 %v8229_v31  ;;  %v5673_v31 = vld [vmem:[#allocation3 + $0x3] sm:$0xff] }
 0x41b   :  { %7375 = vmatprep.subr.bf16.mxu0 %v8230_v26 }
 0x41d   :  { %7348 = vmatmul.mubr.bf16.gmra.mrb[148].mxu0 %v10458_v25  ;;  %v8234_v25 = vld [vmem:[%s10796_s3 + $0xc0] sm:$0xff]  }
 0x41e   :  { %7351 = vmatprep.mubr.bf16.mxu0 %v10468_v23  ;;  %7376 = vmatpush3.bf16.msra.mxu0 %v8230_v26  ;;  %v8242_v23 = vld [vmem:[%s10797_s4] sm:$0xff]   ;;  %v5701_v26 = vpack.c.bf16 %v5674_v37, %v5673_v31 }
 0x41f   :  { %7377 = vmatprep.subr.bf16.mxu0 %v8231_v52  ;;  %7455 = vmatprep.subr.bf16.mxu1 %v8242_v23 }
 0x420   :  { %7456 = vmatpush3.bf16.msra.mxu1 %v8242_v23  ;;  %v5677_v23 = vld [vmem:[#allocation3 + $0x23] sm:$0xff] }
 0x421   :  { %7457 = vmatprep.subr.bf16.mxu1 %v8243_v17 }
 0x422   :  { %7378 = vmatpush3.bf16.msra.mxu0 %v8231_v52  ;;  %v5676_v52 = vld [vmem:[#allocation3 + $0x1b] sm:$0xff] }
 0x423   :  { %7379 = vmatprep.subr.bf16.mxu0 %v8232_v7 }
 0x424   :  { %7458 = vmatpush3.bf16.msra.mxu1 %v8243_v17 }
 0x425   :  { %7352 = vmatmul.mubr.bf16.gmra.mrb[152].mxu0 %v10478_v28  ;;  %v8244_v28 = vld [vmem:[%s10797_s4 + $0x10] sm:$0xff]  }
 0x426   :  { %7355 = vmatprep.mubr.bf16.mxu0 %v10482_v29  ;;  %7380 = vmatpush3.bf16.msra.mxu0 %v8232_v7  ;;  %v8245_v29 = vld [vmem:[%s10797_s4 + $0x18] sm:$0xff]   ;;  %v5678_v7 = vld [vmem:[#allocation3 + $0x2b] sm:$0xff] }
 0x427   :  { %7381 = vmatprep.subr.bf16.mxu0 %v8233_v6  ;;  %7459 = vmatprep.subr.bf16.mxu1 %v8244_v28  ;;  %v5703_v17 = vpack.c.bf16 %v5678_v7, %v5677_v23 }
 0x428   :  { %7460 = vmatpush3.bf16.msra.mxu1 %v8244_v28  ;;  %v5680_v28 = vld [vmem:[#allocation3 + $0x3b] sm:$0xff] }
 0x429   :  { %7461 = vmatprep.subr.bf16.mxu1 %v8245_v29 }
 0x42a   :  { %7382 = vmatpush3.bf16.msra.mxu0 %v8233_v6  ;;  %v5675_v6 = vld [vmem:[#allocation3 + $0x13] sm:$0xff] }
 0x42b   :  { %7411 = vmatprep.subr.bf16.mxu0 %v8234_v25 }
 0x42c   :  { %7462 = vmatpush3.bf16.msra.mxu1 %v8245_v29  ;;  %v5682_v29 = vld [vmem:[#allocation3 + $0x4b] sm:$0xff] }
 0x42d   :  { %7356 = vmatmul.mubr.bf16.gmra.mrb[156].mxu0 %v10486_v55  ;;  %v5394_v55 = vld [vmem:[#allocation3 + $0xa] sm:$0xff] }
 0x42e   :  { %7359 = vmatprep.mubr.bf16.mxu0 %v10490_v56  ;;  %v8246_v56 = vld [vmem:[%s10797_s4 + $0x20] sm:$0xff]   ;;  %v5421_v45 = vpack.c.bf16 %v5394_v55, %v5393_v1  ;;  %v5679_v55 = vld [vmem:[#allocation3 + $0x33] sm:$0xff] }
 0x42f   :  { %7463 = vmatprep.subr.bf16.mxu1 %v8246_v56  ;;  %v5681_v1 = vld [vmem:[#allocation3 + $0x43] sm:$0xff] }
 0x430   :  { %7464 = vmatpush3.bf16.msra.mxu1 %v8246_v56  ;;  %v5704_v56 = vpack.c.bf16 %v5680_v28, %v5679_v55 }
 0x431   :  { %7465 = vmatprep.subr.bf16.mxu1 %v8247_v38 }
 0x434   :  { %7466 = vmatpush3.bf16.msra.mxu1 %v8247_v38  ;;  %v5684_v38 = vld [vmem:[#allocation3 + $0x5b] sm:$0xff] }
 0x435   :  { %7360 = vmatmul.mubr.bf16.gmra.mrb[160].mxu0 %v10494_v18  ;;  %v8236_v18 = vld [vmem:[%s10796_s3 + $0xd0] sm:$0xff]   ;;  %7467 = vmatprep.subr.bf16.mxu1 %v8248_v27  ;;  %v5706_v8 = vpack.c.bf16 %v5684_v38, %v5683_v33 }
 0x436   :  { %7363 = vmatprep.mubr.bf16.mxu0 %v10498_v51  ;;  %v8241_v51 = vld [vmem:[%s10796_s3 + $0xf8] sm:$0xff]  }
 0x438   :  { %7468 = vmatpush3.bf16.msra.mxu1 %v8248_v27  ;;  %v5690_v27 = vld [vmem:[#allocation3 + $0x8b] sm:$0xff] }
 0x439   :  { %7469 = vmatprep.subr.bf16.mxu1 %v8249_v40 }
 0x43c   :  { %7470 = vmatpush3.bf16.msra.mxu1 %v8249_v40 }
 0x43d   :  { %7364 = vmatmul.mubr.bf16.gmra.mrb[164].mxu0 %v4931_v35  ;;  %v5418_v35 = vld [vmem:[#allocation3 + $0xca] sm:$0xff]  ;;  %7499 = vmatprep.subr.bf16.mxu1 %v8250_v43 }
 0x43e   :  { %7383 = vmatprep.mubr.bf16.mxu0 %v5421_v45  ;;  %v5433_v9 = vpack.c.bf16 %v5418_v35, %v5417_v32  ;;  %v5705_v45 = vpack.c.bf16 %v5682_v29, %v5681_v1  ;;  %v8253_v1 = vld [vmem:[%s10798_s5 + $0x18] sm:$0xff]  }
 0x445   :  { %7384 = vmatmul.mubr.bf16.vlgmr.msra.gmra.mrb[140].mxu0 %v5422_v16  ;;  %v5685_v16 = vld [vmem:[#allocation3 + $0x63] sm:$0xff] }
 0x446   :  { %7387 = vmatprep.mubr.bf16.mxu0 %v5423_v10  ;;  %7412 = vmatpush3.bf16.msra.mxu0 %v8234_v25  ;;  %v5702_v25 = vpack.c.bf16 %v5676_v52, %v5675_v6  ;;  %v5707_v57 = vpack.c.bf16 %v5686_v13, %v5685_v16  ;;  %v5687_v10 = vld [vmem:[#allocation3 + $0x73] sm:$0xff] }
 0x447   :  { %7413 = vmatprep.subr.bf16.mxu0 %v8235_v53  ;;  %v8252_v6 = vld [vmem:[%s10798_s5 + $0x10] sm:$0xff]  }
 0x44a   :  { %7414 = vmatpush3.bf16.msra.mxu0 %v8235_v53  ;;  %v5688_v53 = vld [vmem:[#allocation3 + $0x7b] sm:$0xff] }
 0x44b   :  { %7415 = vmatprep.subr.bf16.mxu0 %v8236_v18  ;;  %v5708_v40 = vpack.c.bf16 %v5688_v53, %v5687_v10  ;;  %v8254_v53 = vld [vmem:[%s10798_s5 + $0x20] sm:$0xff]  }
 0x44d   :  { %7388 = vmatmul.mubr.bf16.gmra.mrb[144].mxu0 %v5424_v3  ;;  %v5691_v3 = vld [vmem:[#allocation3 + $0x93] sm:$0xff] }
 0x44e   :  { %7391 = vmatprep.mubr.bf16.mxu0 %v5425_v19  ;;  %7416 = vmatpush3.bf16.msra.mxu0 %v8236_v18  ;;  %v5689_v18 = vld [vmem:[#allocation3 + $0x83] sm:$0xff]  ;;  %v5710_v24 = vpack.c.bf16 %v5692_v36, %v5691_v3 }
 0x44f   :  { %7417 = vmatprep.subr.bf16.mxu0 %v8237_v39  ;;  %v5709_v62 = vpack.c.bf16 %v5690_v27, %v5689_v18  ;;  %v8255_v3 = vld [vmem:[%s10798_s5 + $0x28] sm:$0xff]  }
 0x452   :  { %7418 = vmatpush3.bf16.msra.mxu0 %v8237_v39  ;;  %v5693_v39 = vld [vmem:[#allocation3 + $0xa3] sm:$0xff] }
 0x453   :  { %7419 = vmatprep.subr.bf16.mxu0 %v8238_v41  ;;  %v5711_v19 = vpack.c.bf16 %v5694_v61, %v5693_v39 }
 0x455   :  { %7392 = vmatmul.mubr.bf16.gmra.mrb[148].mxu0 %v5426_v60  ;;  %v5697_v60 = vld [vmem:[#allocation3 + $0xc3] sm:$0xff] }
 0x456   :  { %7395 = vmatprep.mubr.bf16.mxu0 %v5427_v0  ;;  %7420 = vmatpush3.bf16.msra.mxu0 %v8238_v41  ;;  %v5696_v41 = vld [vmem:[#allocation3 + $0xbb] sm:$0xff]  ;;  %v5713_v20 = vpack.c.bf16 %v5698_v48, %v5697_v60  ;;  %v8256_v60 = vld [vmem:[%s10798_s5 + $0x30] sm:$0xff]  }
 0x457   :  { %7421 = vmatprep.subr.bf16.mxu0 %v8239_v49  ;;  %v5712_v58 = vpack.c.bf16 %v5696_v41, %v5695_v22  ;;  %v5700_v0 = vld [vmem:[#allocation3 + $0xdb] sm:$0xff] }
 0x45a   :  { %7422 = vmatpush3.bf16.msra.mxu0 %v8239_v49  ;;  %v5699_v49 = vld [vmem:[#allocation3 + $0xd3] sm:$0xff] }
 0x45b   :  { %7423 = vmatprep.subr.bf16.mxu0 %v8240_v46 }
 0x45d   :  { %7396 = vmatmul.mubr.bf16.gmra.mrb[152].mxu0 %v5428_v44 }
 0x45e   :  { %7399 = vmatprep.mubr.bf16.mxu0 %v5429_v54  ;;  %7424 = vmatpush3.bf16.msra.mxu0 %v8240_v46  ;;  %v5714_v46 = vpack.c.bf16 %v5700_v0, %v5699_v49 }
 0x45f   :  { %7425 = vmatprep.subr.bf16.mxu0 %v8241_v51 }
 0x462   :  { %7426 = vmatpush3.bf16.msra.mxu0 %v8241_v51 }
 0x465   :  { %7400 = vmatmul.mubr.bf16.gmra.mrb[156].mxu0 %v5430_v34 }
 0x466   :  { %7403 = vmatprep.mubr.bf16.mxu0 %v5431_v11 }
 0x46d   :  { %7404 = vmatmul.mubr.bf16.gmra.mrb[160].mxu0 %v5432_v14 }
 0x46e   :  { %7407 = vmatprep.mubr.bf16.mxu0 %v5433_v9 }
 0x475   :  { %7408 = vmatmul.mubr.bf16.gmra.mrb[164].mxu0 %v5434_v47 }
 0x476   :  { %7427 = vmatprep.mubr.bf16.mxu0 %v5701_v26 }
 0x47d   :  { %7428 = vmatmul.mubr.bf16.vlgmr.msra.gmra.mrb[140].mxu0 %v5702_v25 }
 0x47e   :  { %7431 = vmatprep.mubr.bf16.mxu0 %v5703_v17 }
 0x485   :  { %7432 = vmatmul.mubr.bf16.gmra.mrb[144].mxu0 %v5704_v56 }
 0x486   :  { %7435 = vmatprep.mubr.bf16.mxu0 %v5705_v45 }
 0x48d   :  { %7436 = vmatmul.mubr.bf16.gmra.mrb[148].mxu0 %v5706_v8 }
 0x48e   :  { %7439 = vmatprep.mubr.bf16.mxu0 %v5707_v57 }
 0x495   :  { %7440 = vmatmul.mubr.bf16.gmra.mrb[152].mxu0 %v5708_v40 }
 0x496   :  { %7443 = vmatprep.mubr.bf16.mxu0 %v5709_v62 }
 0x49d   :  { %7444 = vmatmul.mubr.bf16.gmra.mrb[156].mxu0 %v5710_v24 }
 0x49e   :  { %7447 = vmatprep.mubr.bf16.mxu0 %v5711_v19 }
 0x4a5   :  { %7448 = vmatmul.mubr.bf16.gmra.mrb[160].mxu0 %v5712_v58 }
 0x4a6   :  { %7451 = vmatprep.mubr.bf16.mxu0 %v5713_v20 }
 0x4ad   :  { %7452 = vmatmul.mubr.bf16.gmra.mrb[164].mxu0 %v5714_v46 }
 0x550   :  { %v7429_v5 = vpop.f32.mrb[140].mxu0 }
 0x551   :  { %v5960_v44 = vadd.f32 %v7429_v5, %v10591_v15  ;;  %v5814_v42 = vpop.f32.mrb[141].mxu0 }
 0x552   :  { %v5958_v51 = vadd.f32 %v10591_v15, %v5814_v42  ;;  %v7430_v54 = vpop.f32.mrb[142].mxu0 }
 0x553   :  { %v5961_v12 = vadd.f32 %v7430_v54, %v10591_v15  ;;  %v5817_v30 = vpop.f32.mrb[143].mxu0  ;;  %v5988_v34 = vmax.f32 %v5960_v44, 0.0 }
 0x554   :  { %v5959_v59 = vadd.f32 %v10591_v15, %v5817_v30  ;;  %v5986_v11 = vmax.f32 %v5958_v51, 0.0 }
 0x555   :  { %v5989_v50 = vmax.f32 %v5961_v12, 0.0 }
 0x556   :  { %v5987_v2 = vmax.f32 %v5959_v59, 0.0 }
 0x557   :  { %v6015_v35 = vpack.c.bf16 %v5989_v50, %v5988_v34 }
 0x558   :  { %v6014_v21 = vpack.c.bf16 %v5987_v2, %v5986_v11  ;;  %v7433_v14 = vpop.f32.mrb[144].mxu0 }
 0x559   :  { %v5964_v32 = vadd.f32 %v7433_v14, %v10591_v15  ;;  %v5830_v9 = vpop.f32.mrb[145].mxu0 }
 0x55a   :  { %v5962_v63 = vadd.f32 %v10591_v15, %v5830_v9  ;;  %v7434_v37 = vpop.f32.mrb[146].mxu0  ;;  %7471 = vmatprep.mubr.bf16.mxu1 %v6014_v21 }
 0x55b   :  { %v5965_v47 = vadd.f32 %v7434_v37, %v10591_v15  ;;  %v5833_v31 = vpop.f32.mrb[147].mxu0  ;;  %7472 = vmatmul.mubr.bf16.vlgmr.msra.gmra.mrb[196].mxu1 %v6015_v35  ;;  %v5992_v52 = vmax.f32 %v5964_v32, 0.0 }
 0x55c   :  { %v5963_v26 = vadd.f32 %v10591_v15, %v5833_v31  ;;  %7500 = vmatpush3.bf16.msra.mxu1 %v8250_v43  ;;  %v5990_v25 = vmax.f32 %v5962_v63, 0.0 }
 0x55d   :  { %v5993_v7 = vmax.f32 %v5965_v47, 0.0  ;;  %7501 = vmatprep.subr.bf16.mxu1 %v8251_v4 }
 0x55e   :  { %v5991_v23 = vmax.f32 %v5963_v26, 0.0 }
 0x55f   :  { %v6017_v17 = vpack.c.bf16 %v5993_v7, %v5992_v52 }
 0x560   :  { %v6016_v28 = vpack.c.bf16 %v5991_v23, %v5990_v25  ;;  %v7437_v29 = vpop.f32.mrb[148].mxu0  ;;  %7502 = vmatpush3.bf16.msra.mxu1 %v8251_v4 }
 0x561   :  { %v5968_v55 = vadd.f32 %v7437_v29, %v10591_v15  ;;  %v5846_v56 = vpop.f32.mrb[149].mxu0  ;;  %7503 = vmatprep.subr.bf16.mxu1 %v8252_v6 }
 0x562   :  { %v5966_v45 = vadd.f32 %v10591_v15, %v5846_v56  ;;  %v7438_v38 = vpop.f32.mrb[150].mxu0  ;;  %7475 = vmatprep.mubr.bf16.mxu1 %v6016_v28 }
 0x563   :  { %v5969_v13 = vadd.f32 %v7438_v38, %v10591_v15  ;;  %v5849_v33 = vpop.f32.mrb[151].mxu0  ;;  %7476 = vmatmul.mubr.bf16.gmra.mrb[200].mxu1 %v6017_v17  ;;  %v5996_v16 = vmax.f32 %v5968_v55, 0.0 }
 0x564   :  { %v5967_v8 = vadd.f32 %v10591_v15, %v5849_v33  ;;  %7504 = vmatpush3.bf16.msra.mxu1 %v8252_v6  ;;  %v5994_v27 = vmax.f32 %v5966_v45, 0.0 }
 0x565   :  { %v5997_v57 = vmax.f32 %v5969_v13, 0.0  ;;  %7505 = vmatprep.subr.bf16.mxu1 %v8253_v1 }
 0x566   :  { %v5995_v10 = vmax.f32 %v5967_v8, 0.0 }
 0x567   :  { %v6019_v40 = vpack.c.bf16 %v5997_v57, %v5996_v16 }
 0x568   :  { %v6018_v18 = vpack.c.bf16 %v5995_v10, %v5994_v27  ;;  %v7441_v62 = vpop.f32.mrb[152].mxu0  ;;  %7506 = vmatpush3.bf16.msra.mxu1 %v8253_v1  ;;  %v10645_v27 = vld [vmem:[%s10795_s6 + $0x3] ss:$0 sm:$0xff] }
 0x569   :  { %v5972_v36 = vadd.f32 %v7441_v62, %v10591_v15  ;;  %v5862_v61 = vpop.f32.mrb[153].mxu0  ;;  %7507 = vmatprep.subr.bf16.mxu1 %v8254_v53 }
 0x56a   :  { %v5970_v24 = vadd.f32 %v10591_v15, %v5862_v61  ;;  %v7442_v39 = vpop.f32.mrb[154].mxu0  ;;  %7479 = vmatprep.mubr.bf16.mxu1 %v6018_v18 }
 0x56b   :  { %v5973_v19 = vadd.f32 %v7442_v39, %v10591_v15  ;;  %v5865_v41 = vpop.f32.mrb[155].mxu0  ;;  %7480 = vmatmul.mubr.bf16.gmra.mrb[204].mxu1 %v6019_v40  ;;  %v6000_v22 = vmax.f32 %v5972_v36, 0.0 }
 0x56c   :  { %v5971_v48 = vadd.f32 %v10591_v15, %v5865_v41  ;;  %7508 = vmatpush3.bf16.msra.mxu1 %v8254_v53  ;;  %v5998_v20 = vmax.f32 %v5970_v24, 0.0  ;;  %v8257_v53 = vld [vmem:[%s10798_s5 + $0x38] sm:$0xff]  }
 0x56d   :  { %v6001_v58 = vmax.f32 %v5973_v19, 0.0  ;;  %7509 = vmatprep.subr.bf16.mxu1 %v8255_v3 }
 0x56e   :  { %v5999_v49 = vmax.f32 %v5971_v48, 0.0 }
 0x56f   :  { %v6021_v0 = vpack.c.bf16 %v6001_v58, %v6000_v22 }
 0x570   :  { %v6020_v46 = vpack.c.bf16 %v5999_v49, %v5998_v20  ;;  %v7445_v43 = vpop.f32.mrb[156].mxu0  ;;  %7510 = vmatpush3.bf16.msra.mxu1 %v8255_v3 }
 0x571   :  { %v5976_v5 = vadd.f32 %v7445_v43, %v10591_v15  ;;  %v5878_v44 = vpop.f32.mrb[157].mxu0  ;;  %7511 = vmatprep.subr.bf16.mxu1 %v8256_v60 }
 0x572   :  { %v5974_v42 = vadd.f32 %v10591_v15, %v5878_v44  ;;  %v7446_v51 = vpop.f32.mrb[158].mxu0  ;;  %7483 = vmatprep.mubr.bf16.mxu1 %v6020_v46 }
 0x573   :  { %v5977_v54 = vadd.f32 %v7446_v51, %v10591_v15  ;;  %v5881_v12 = vpop.f32.mrb[159].mxu0  ;;  %7484 = vmatmul.mubr.bf16.gmra.mrb[208].mxu1 %v6021_v0  ;;  %v6004_v59 = vmax.f32 %v5976_v5, 0.0 }
 0x574   :  { %v5975_v30 = vadd.f32 %v10591_v15, %v5881_v12  ;;  %7512 = vmatpush3.bf16.msra.mxu1 %v8256_v60  ;;  %v6002_v50 = vmax.f32 %v5974_v42, 0.0 }
 0x575   :  { %v6005_v34 = vmax.f32 %v5977_v54, 0.0  ;;  %7513 = vmatprep.subr.bf16.mxu1 %v8257_v53 }
 0x576   :  { %v6003_v11 = vmax.f32 %v5975_v30, 0.0 }
 0x577   :  { %v6023_v2 = vpack.c.bf16 %v6005_v34, %v6004_v59 }
 0x578   :  { %v6022_v35 = vpack.c.bf16 %v6003_v11, %v6002_v50  ;;  %v7449_v21 = vpop.f32.mrb[160].mxu0  ;;  %7514 = vmatpush3.bf16.msra.mxu1 %v8257_v53 }
 0x579   :  { %v5980_v14 = vadd.f32 %v7449_v21, %v10591_v15  ;;  %v5894_v32 = vpop.f32.mrb[161].mxu0 }
 0x57a   :  { %v5978_v9 = vadd.f32 %v10591_v15, %v5894_v32  ;;  %v7450_v4 = vpop.f32.mrb[162].mxu0  ;;  %7487 = vmatprep.mubr.bf16.mxu1 %v6022_v35 }
 0x57b   :  { %v5981_v63 = vadd.f32 %v7450_v4, %v10591_v15  ;;  %v5897_v37 = vpop.f32.mrb[163].mxu0  ;;  %7488 = vmatmul.mubr.bf16.gmra.mrb[212].mxu1 %v6023_v2  ;;  %v6008_v31 = vmax.f32 %v5980_v14, 0.0 }
 0x57c   :  { %v5979_v47 = vadd.f32 %v10591_v15, %v5897_v37  ;;  %v6006_v52 = vmax.f32 %v5978_v9, 0.0 }
 0x57d   :  { %v6009_v26 = vmax.f32 %v5981_v63, 0.0 }
 0x57e   :  { %v6007_v7 = vmax.f32 %v5979_v47, 0.0 }
 0x57f   :  { %v6025_v6 = vpack.c.bf16 %v6009_v26, %v6008_v31 }
 0x580   :  { %v6024_v25 = vpack.c.bf16 %v6007_v7, %v6006_v52  ;;  %v7453_v23 = vpop.f32.mrb[164].mxu0 }
 0x581   :  { %v5984_v17 = vadd.f32 %v7453_v23, %v10591_v15  ;;  %v5910_v28 = vpop.f32.mrb[165].mxu0 }
 0x582   :  { %v5982_v29 = vadd.f32 %v10591_v15, %v5910_v28  ;;  %v7454_v55 = vpop.f32.mrb[166].mxu0  ;;  %7491 = vmatprep.mubr.bf16.mxu1 %v6024_v25 }
 0x583   :  { %v5985_v56 = vadd.f32 %v7454_v55, %v10591_v15  ;;  %v5913_v1 = vpop.f32.mrb[167].mxu0  ;;  %7492 = vmatmul.mubr.bf16.gmra.mrb[216].mxu1 %v6025_v6  ;;  %v6012_v38 = vmax.f32 %v5984_v17, 0.0 }
 0x584   :  { %v5983_v45 = vadd.f32 %v10591_v15, %v5913_v1  ;;  %v6010_v33 = vmax.f32 %v5982_v29, 0.0 }
 0x585   :  { %v6013_v13 = vmax.f32 %v5985_v56, 0.0 }
 0x586   :  { %v6011_v8 = vmax.f32 %v5983_v45, 0.0 }
 0x587   :  { %v6027_v16 = vpack.c.bf16 %v6013_v13, %v6012_v38 }
 0x588   :  { %v6026_v57 = vpack.c.bf16 %v6011_v8, %v6010_v33 }
 0x58a   :  { %7495 = vmatprep.mubr.bf16.mxu1 %v6026_v57 }
 0x58b   :  { %7496 = vmatmul.mubr.bf16.gmra.mrb[220].mxu1 %v6027_v16 }
 0x62e   :  { %v7473_v15 = vpop.f32.mrb[196].mxu1 }
 0x62f   :  { %v6140_v10 = vadd.f32 %v7473_v15, %v10645_v27  ;;  %v6131_v40 = vpop.f32.mrb[197].mxu1 }
 0x630   :  { %v6132_v18 = vadd.f32 %v10645_v27, %v6131_v40  ;;  %v7474_v62 = vpop.f32.mrb[198].mxu1 }
 0x631   :  { %v6143_v36 = vadd.f32 %v7474_v62, %v10645_v27  ;;  %v6134_v61 = vpop.f32.mrb[199].mxu1  ;;  %v6244_v24 = vmax.f32 %v6140_v10, 0.0 }
 0x632   :  { %v6135_v3 = vadd.f32 %v10645_v27, %v6134_v61  ;;  %v6242_v19 = vmax.f32 %v6132_v18, 0.0 }
 0x633   :  { %v6245_v39 = vmax.f32 %v6143_v36, 0.0 }
 0x634   :  { %v6243_v41 = vmax.f32 %v6135_v3, 0.0 }
 0x635   :  { %v6271_v48 = vpack.c.bf16 %v6245_v39, %v6244_v24 }
 0x636   :  { %v6270_v22 = vpack.c.bf16 %v6243_v41, %v6242_v19  ;;  %v7477_v58 = vpop.f32.mrb[200].mxu1 }
 0x637   :  { %v6156_v60 = vadd.f32 %v7477_v58, %v10645_v27  ;;  %v6147_v20 = vpop.f32.mrb[201].mxu1 }
 0x638   :  { %v6148_v49 = vadd.f32 %v10645_v27, %v6147_v20  ;;  %v7478_v0 = vpop.f32.mrb[202].mxu1  ;;  %7515 = vmatprep.mubr.bf16.mxu1 %v6270_v22 }
 0x639   :  { %v6159_v46 = vadd.f32 %v7478_v0, %v10645_v27  ;;  %v6150_v43 = vpop.f32.mrb[203].mxu1  ;;  %7516 = vmatmul.mubr.bf16.vlgmr.msra.gmra.mrb[224].mxu1 %v6271_v48  ;;  %v6248_v44 = vmax.f32 %v6156_v60, 0.0 }
 0x63a   :  { %v6151_v5 = vadd.f32 %v10645_v27, %v6150_v43  ;;  %v6246_v51 = vmax.f32 %v6148_v49, 0.0 }
 0x63b   :  { %v6249_v42 = vmax.f32 %v6159_v46, 0.0 }
 0x63c   :  { %v6247_v54 = vmax.f32 %v6151_v5, 0.0 }
 0x63d   :  { %v6273_v12 = vpack.c.bf16 %v6249_v42, %v6248_v44 }
 0x63e   :  { %v6272_v30 = vpack.c.bf16 %v6247_v54, %v6246_v51  ;;  %v7481_v59 = vpop.f32.mrb[204].mxu1 }
 0x63f   :  { %v6172_v34 = vadd.f32 %v7481_v59, %v10645_v27  ;;  %v6163_v50 = vpop.f32.mrb[205].mxu1 }
 0x640   :  { %v6164_v11 = vadd.f32 %v10645_v27, %v6163_v50  ;;  %v7482_v2 = vpop.f32.mrb[206].mxu1  ;;  %7519 = vmatprep.mubr.bf16.mxu1 %v6272_v30 }
 0x641   :  { %v6175_v35 = vadd.f32 %v7482_v2, %v10645_v27  ;;  %v6166_v21 = vpop.f32.mrb[207].mxu1  ;;  %7520 = vmatmul.mubr.bf16.gmra.mrb[228].mxu1 %v6273_v12  ;;  %v6252_v32 = vmax.f32 %v6172_v34, 0.0 }
 0x642   :  { %v6167_v14 = vadd.f32 %v10645_v27, %v6166_v21  ;;  %v6250_v4 = vmax.f32 %v6164_v11, 0.0 }
 0x643   :  { %v6253_v9 = vmax.f32 %v6175_v35, 0.0 }
 0x644   :  { %v6251_v63 = vmax.f32 %v6167_v14, 0.0  ;;  %v10678_v14 = vld [vmem:[%s10795_s6 + $0x4] ss:$0 sm:$0xff] }
 0x645   :  { %v6275_v37 = vpack.c.bf16 %v6253_v9, %v6252_v32 }
 0x646   :  { %v6274_v47 = vpack.c.bf16 %v6251_v63, %v6250_v4  ;;  %v7485_v31 = vpop.f32.mrb[208].mxu1 }
 0x647   :  { %v6188_v26 = vadd.f32 %v7485_v31, %v10645_v27  ;;  %v6179_v52 = vpop.f32.mrb[209].mxu1 }
 0x648   :  { %v6180_v7 = vadd.f32 %v10645_v27, %v6179_v52  ;;  %v7486_v6 = vpop.f32.mrb[210].mxu1  ;;  %7523 = vmatprep.mubr.bf16.mxu1 %v6274_v47 }
 0x649   :  { %v6191_v25 = vadd.f32 %v7486_v6, %v10645_v27  ;;  %v6182_v23 = vpop.f32.mrb[211].mxu1  ;;  %7524 = vmatmul.mubr.bf16.gmra.mrb[232].mxu1 %v6275_v37  ;;  %v6256_v28 = vmax.f32 %v6188_v26, 0.0 }
 0x64a   :  { %v6183_v17 = vadd.f32 %v10645_v27, %v6182_v23  ;;  %v6254_v55 = vmax.f32 %v6180_v7, 0.0 }
 0x64b   :  { %v6257_v29 = vmax.f32 %v6191_v25, 0.0 }
 0x64c   :  { %v6255_v56 = vmax.f32 %v6183_v17, 0.0 }
 0x64d   :  { %v6277_v1 = vpack.c.bf16 %v6257_v29, %v6256_v28 }
 0x64e   :  { %v6276_v45 = vpack.c.bf16 %v6255_v56, %v6254_v55  ;;  %v7489_v38 = vpop.f32.mrb[212].mxu1 }
 0x64f   :  { %v6204_v13 = vadd.f32 %v7489_v38, %v10645_v27  ;;  %v6195_v33 = vpop.f32.mrb[213].mxu1 }
 0x650   :  { %v6196_v8 = vadd.f32 %v10645_v27, %v6195_v33  ;;  %v7490_v16 = vpop.f32.mrb[214].mxu1  ;;  %7527 = vmatprep.mubr.bf16.mxu1 %v6276_v45 }
 0x651   :  { %v6207_v57 = vadd.f32 %v7490_v16, %v10645_v27  ;;  %v6198_v53 = vpop.f32.mrb[215].mxu1  ;;  %7528 = vmatmul.mubr.bf16.gmra.mrb[236].mxu1 %v6277_v1  ;;  %v6260_v10 = vmax.f32 %v6204_v13, 0.0 }
 0x652   :  { %v6199_v15 = vadd.f32 %v10645_v27, %v6198_v53  ;;  %v6258_v18 = vmax.f32 %v6196_v8, 0.0 }
 0x653   :  { %v6261_v40 = vmax.f32 %v6207_v57, 0.0 }
 0x654   :  { %v6259_v62 = vmax.f32 %v6199_v15, 0.0 }
 0x655   :  { %v6279_v36 = vpack.c.bf16 %v6261_v40, %v6260_v10 }
 0x656   :  { %v6278_v61 = vpack.c.bf16 %v6259_v62, %v6258_v18  ;;  %v7493_v3 = vpop.f32.mrb[216].mxu1 }
 0x657   :  { %v6220_v24 = vadd.f32 %v7493_v3, %v10645_v27  ;;  %v6211_v39 = vpop.f32.mrb[217].mxu1 }
 0x658   :  { %v6212_v19 = vadd.f32 %v10645_v27, %v6211_v39  ;;  %v7494_v41 = vpop.f32.mrb[218].mxu1  ;;  %7531 = vmatprep.mubr.bf16.mxu1 %v6278_v61 }
 0x659   :  { %v6223_v48 = vadd.f32 %v7494_v41, %v10645_v27  ;;  %v6214_v22 = vpop.f32.mrb[219].mxu1  ;;  %7532 = vmatmul.mubr.bf16.gmra.mrb[240].mxu1 %v6279_v36  ;;  %v6264_v60 = vmax.f32 %v6220_v24, 0.0 }
 0x65a   :  { %v6215_v58 = vadd.f32 %v10645_v27, %v6214_v22  ;;  %v6262_v49 = vmax.f32 %v6212_v19, 0.0 }
 0x65b   :  { %v6265_v20 = vmax.f32 %v6223_v48, 0.0 }
 0x65c   :  { %v6263_v0 = vmax.f32 %v6215_v58, 0.0 }
 0x65d   :  { %v6281_v46 = vpack.c.bf16 %v6265_v20, %v6264_v60 }
 0x65e   :  { %v6280_v43 = vpack.c.bf16 %v6263_v0, %v6262_v49  ;;  %v7497_v5 = vpop.f32.mrb[220].mxu1 }
 0x65f   :  { %v6236_v44 = vadd.f32 %v7497_v5, %v10645_v27  ;;  %v6227_v42 = vpop.f32.mrb[221].mxu1 }
 0x660   :  { %v6228_v51 = vadd.f32 %v10645_v27, %v6227_v42  ;;  %v7498_v54 = vpop.f32.mrb[222].mxu1  ;;  %7535 = vmatprep.mubr.bf16.mxu1 %v6280_v43 }
 0x661   :  { %v6239_v12 = vadd.f32 %v7498_v54, %v10645_v27  ;;  %v6230_v30 = vpop.f32.mrb[223].mxu1  ;;  %7536 = vmatmul.mubr.bf16.gmra.mrb[244].mxu1 %v6281_v46  ;;  %v6268_v34 = vmax.f32 %v6236_v44, 0.0 }
 0x662   :  { %v6231_v59 = vadd.f32 %v10645_v27, %v6230_v30  ;;  %v6266_v11 = vmax.f32 %v6228_v51, 0.0 }
 0x663   :  { %v6269_v50 = vmax.f32 %v6239_v12, 0.0 }
 0x664   :  { %v6267_v2 = vmax.f32 %v6231_v59, 0.0 }
 0x665   :  { %v6283_v35 = vpack.c.bf16 %v6269_v50, %v6268_v34 }
 0x666   :  { %v6282_v21 = vpack.c.bf16 %v6267_v2, %v6266_v11 }
 0x668   :  { %7539 = vmatprep.mubr.bf16.mxu1 %v6282_v21 }
 0x669   :  { %7540 = vmatmul.mubr.bf16.gmra.mrb[248].mxu1 %v6283_v35 }
 0x70c   :  { %v7517_v32 = vpop.f32.mrb[224].mxu1 }
 0x70d   :  { %v6396_v9 = vadd.f32 %v7517_v32, %v10678_v14  ;;  %v6387_v4 = vpop.f32.mrb[225].mxu1 }
 0x70e   :  { %v6388_v63 = vadd.f32 %v10678_v14, %v6387_v4  ;;  %v7518_v27 = vpop.f32.mrb[226].mxu1 }
 0x70f   :  { %6500 = vst [vmem:[%s10799_s7 + $0x10] sm:$0xff] %v6396_v9  ;;  %v6399_v37 = vadd.f32 %v7518_v27, %v10678_v14  ;;  %v6390_v47 = vpop.f32.mrb[227].mxu1 }
 0x710   :  { %6498 = vst [vmem:[%s10799_s7] sm:$0xff] %v6388_v63  ;;  %v6391_v31 = vadd.f32 %v10678_v14, %v6390_v47 }
 0x711   :  { %6501 = vst [vmem:[%s10799_s7 + $0x18] sm:$0xff] %v6399_v37 }
 0x712   :  { %6499 = vst [vmem:[%s10799_s7 + $0x8] sm:$0xff] %v6391_v31 }
 0x714   :  { %v7521_v26 = vpop.f32.mrb[228].mxu1 }
 0x715   :  { %v6412_v52 = vadd.f32 %v7521_v26, %v10678_v14  ;;  %v6403_v7 = vpop.f32.mrb[229].mxu1 }
 0x716   :  { %v6404_v6 = vadd.f32 %v10678_v14, %v6403_v7  ;;  %v7522_v25 = vpop.f32.mrb[230].mxu1 }
 0x717   :  { %6504 = vst [vmem:[%s10799_s7 + $0x30] sm:$0xff] %v6412_v52  ;;  %v6415_v23 = vadd.f32 %v7522_v25, %v10678_v14  ;;  %v6406_v17 = vpop.f32.mrb[231].mxu1 }
 0x718   :  { %6502 = vst [vmem:[%s10799_s7 + $0x20] sm:$0xff] %v6404_v6  ;;  %v6407_v28 = vadd.f32 %v10678_v14, %v6406_v17 }
 0x719   :  { %6505 = vst [vmem:[%s10799_s7 + $0x38] sm:$0xff] %v6415_v23 }
 0x71a   :  { %6503 = vst [vmem:[%s10799_s7 + $0x28] sm:$0xff] %v6407_v28 }
 0x71c   :  { %v7525_v29 = vpop.f32.mrb[232].mxu1 }
 0x71d   :  { %v6428_v55 = vadd.f32 %v7525_v29, %v10678_v14  ;;  %v6419_v56 = vpop.f32.mrb[233].mxu1 }
 0x71e   :  { %v6420_v1 = vadd.f32 %v10678_v14, %v6419_v56  ;;  %v7526_v45 = vpop.f32.mrb[234].mxu1 }
 0x71f   :  { %6508 = vst [vmem:[%s10799_s7 + $0x50] sm:$0xff] %v6428_v55  ;;  %v6431_v38 = vadd.f32 %v7526_v45, %v10678_v14  ;;  %v6422_v13 = vpop.f32.mrb[235].mxu1 }
 0x720   :  { %6506 = vst [vmem:[%s10799_s7 + $0x40] sm:$0xff] %v6420_v1  ;;  %v6423_v33 = vadd.f32 %v10678_v14, %v6422_v13 }
 0x721   :  { %6509 = vst [vmem:[%s10799_s7 + $0x58] sm:$0xff] %v6431_v38 }
 0x722   :  { %6507 = vst [vmem:[%s10799_s7 + $0x48] sm:$0xff] %v6423_v33 }
 0x724   :  { %v7529_v8 = vpop.f32.mrb[236].mxu1 }
 0x725   :  { %v6444_v16 = vadd.f32 %v7529_v8, %v10678_v14  ;;  %v6435_v57 = vpop.f32.mrb[237].mxu1 }
 0x726   :  { %v6436_v53 = vadd.f32 %v10678_v14, %v6435_v57  ;;  %v7530_v15 = vpop.f32.mrb[238].mxu1 }
 0x727   :  { %6512 = vst [vmem:[%s10799_s7 + $0x70] sm:$0xff] %v6444_v16  ;;  %v6447_v10 = vadd.f32 %v7530_v15, %v10678_v14  ;;  %v6438_v40 = vpop.f32.mrb[239].mxu1 }
 0x728   :  { %6510 = vst [vmem:[%s10799_s7 + $0x60] sm:$0xff] %v6436_v53  ;;  %v6439_v18 = vadd.f32 %v10678_v14, %v6438_v40 }
 0x729   :  { %6513 = vst [vmem:[%s10799_s7 + $0x78] sm:$0xff] %v6447_v10 }
 0x72a   :  { %6511 = vst [vmem:[%s10799_s7 + $0x68] sm:$0xff] %v6439_v18 }
 0x72c   :  { %v7533_v62 = vpop.f32.mrb[240].mxu1 }
 0x72d   :  { %v6460_v36 = vadd.f32 %v7533_v62, %v10678_v14  ;;  %v6451_v61 = vpop.f32.mrb[241].mxu1 }
 0x72e   :  { %v6452_v3 = vadd.f32 %v10678_v14, %v6451_v61  ;;  %v7534_v24 = vpop.f32.mrb[242].mxu1 }
 0x72f   :  { %6516 = vst [vmem:[%s10799_s7 + $0x90] sm:$0xff] %v6460_v36  ;;  %v6463_v39 = vadd.f32 %v7534_v24, %v10678_v14  ;;  %v6454_v19 = vpop.f32.mrb[243].mxu1 }
 0x730   :  { %6514 = vst [vmem:[%s10799_s7 + $0x80] sm:$0xff] %v6452_v3  ;;  %v6455_v41 = vadd.f32 %v10678_v14, %v6454_v19 }
 0x731   :  { %6517 = vst [vmem:[%s10799_s7 + $0x98] sm:$0xff] %v6463_v39 }
 0x732   :  { %6515 = vst [vmem:[%s10799_s7 + $0x88] sm:$0xff] %v6455_v41 }
 0x734   :  { %v7537_v48 = vpop.f32.mrb[244].mxu1 }
 0x735   :  { %v6476_v22 = vadd.f32 %v7537_v48, %v10678_v14  ;;  %v6467_v58 = vpop.f32.mrb[245].mxu1 }
 0x736   :  { %v6468_v60 = vadd.f32 %v10678_v14, %v6467_v58  ;;  %v7538_v20 = vpop.f32.mrb[246].mxu1 }
 0x737   :  { %6520 = vst [vmem:[%s10799_s7 + $0xb0] sm:$0xff] %v6476_v22  ;;  %v6479_v49 = vadd.f32 %v7538_v20, %v10678_v14  ;;  %v6470_v0 = vpop.f32.mrb[247].mxu1 }
 0x738   :  { %6518 = vst [vmem:[%s10799_s7 + $0xa0] sm:$0xff] %v6468_v60  ;;  %v6471_v46 = vadd.f32 %v10678_v14, %v6470_v0 }
 0x739   :  { %6521 = vst [vmem:[%s10799_s7 + $0xb8] sm:$0xff] %v6479_v49 }
 0x73a   :  { %6519 = vst [vmem:[%s10799_s7 + $0xa8] sm:$0xff] %v6471_v46 }
 0x73c   :  { %v7541_v43 = vpop.f32.mrb[248].mxu1 }
 0x73d   :  { %v6492_v5 = vadd.f32 %v7541_v43, %v10678_v14  ;;  %v6483_v44 = vpop.f32.mrb[249].mxu1 }
 0x73e   :  { %v6484_v42 = vadd.f32 %v10678_v14, %v6483_v44  ;;  %v7542_v51 = vpop.f32.mrb[250].mxu1 }
 0x73f   :  { %6524 = vst [vmem:[%s10799_s7 + $0xd0] sm:$0xff] %v6492_v5  ;;  %v6495_v54 = vadd.f32 %v7542_v51, %v10678_v14  ;;  %v6486_v12 = vpop.f32.mrb[251].mxu1 }
 0x740   :  { %6522 = vst [vmem:[%s10799_s7 + $0xc0] sm:$0xff] %v6484_v42  ;;  %v6487_v30 = vadd.f32 %v10678_v14, %v6486_v12 }
 0x741   :  { %6525 = vst [vmem:[%s10799_s7 + $0xd8] sm:$0xff] %v6495_v54 }
 0x742   :  { %6523 = vst [vmem:[%s10799_s7 + $0xc8] sm:$0xff] %v6487_v30 }

</bundles_post_ra>
